<compile_context>
chip_gen: v7x
topology: tpu7x:2x2x1
jax: 0.10.0
libtpu: 0.0.40
codegen_flags: <defaults>
</compile_context>

<pallas_src>
import math
from functools import partial

import numpy as np
import jax
import jax.numpy as jnp
from jax.experimental import pallas as pl
from jax.experimental.pallas import tpu as pltpu

LANE = 128
_EPS = 1e-5          # nn.GroupNorm default
_VMEM_LIMIT = 48 * 1024 * 1024   # safe on v5e/v6e (128 MiB) and v7x (64 MiB)


def _round_up(n, m=LANE):
    return ((n + m - 1) // m) * m


def _silu(x):
    return x * (1.0 / (1.0 + jnp.exp(-x)))


# --------------------------------------------------------------------------
# fused conv3x3 + bias + GroupNorm + SiLU (per-sample, everything in VMEM)
# --------------------------------------------------------------------------

def _conv_gn_silu(x_img, w_ref, b_ref, g_ref, be_ref, pool_ref, xp_ref,
                  *, H, W, eps):
    """x_img: (H, W, Cin) f32 value. Returns SiLU(GN(conv3x3(x)+b)), (H*W, Cout) f32."""
    Cin = xp_ref.shape[-1]
    Cout = b_ref.shape[-1]

    # zero-padded 1-pixel halo staged in VMEM scratch (no HBM pad pass)
    xp_ref[...] = jnp.zeros(xp_ref.shape, jnp.float32)
    xp_ref[1:H + 1, 1:W + 1, :] = x_img

    acc = jnp.zeros((H * W, Cout), jnp.float32)
    # in-VMEM im2col: 3 W-shifted slabs, each reused across the 3 dy taps
    for dx in range(3):
        slab = xp_ref[:, dx:dx + W, :].astype(jnp.bfloat16)      # (H+2, W, Cin)
        for dy in range(3):
            patch = slab[dy:dy + H].reshape(H * W, Cin)
            acc = acc + jnp.dot(patch, w_ref[dy * 3 + dx],
                                preferred_element_type=jnp.float32)
    acc = acc + b_ref[...]                                       # (1, Cout)

    # GroupNorm(groups): per-(sample, group) stats via a block-diagonal
    # group-average pooling matrix (zero rows/cols on padded channels).
    mean_ch = jnp.mean(acc, axis=0, keepdims=True)               # (1, Cout)
    ex2_ch = jnp.mean(acc * acc, axis=0, keepdims=True)
    mean = jnp.dot(mean_ch, pool_ref[...], preferred_element_type=jnp.float32)
    ex2 = jnp.dot(ex2_ch, pool_ref[...], preferred_element_type=jnp.float32)
    var = ex2 - mean * mean
    xn = (acc - mean) * jax.lax.rsqrt(var + eps)
    y = xn * g_ref[...] + be_ref[...]
    return _silu(y)


def _block1_kernel(x_ref, w_ref, b_ref, g_ref, be_ref, pool_ref, o_ref, xp_ref,
                   *, H, W, eps):
    y = _conv_gn_silu(x_ref[0], w_ref, b_ref, g_ref, be_ref, pool_ref, xp_ref,
                      H=H, W=W, eps=eps)
    o_ref[0] = y.reshape(H, W, -1)


def _block2_kernel(h_ref, cond_ref, xres_ref, w_ref, b_ref, g_ref, be_ref,
                   pool_ref, wr_ref, br_ref, o_ref, xp_ref,
                   *, H, W, eps, identity_res):
    # fuse the time/cond conditioning add into the conv prologue
    hin = h_ref[0] + cond_ref[0]                                 # (H,W,C)+(1,C)
    y = _conv_gn_silu(hin, w_ref, b_ref, g_ref, be_ref, pool_ref, xp_ref,
                      H=H, W=W, eps=eps)
    # fuse the residual 1x1 conv (or identity) + final add into the epilogue
    xres = xres_ref[0].reshape(H * W, xres_ref.shape[-1])
    if identity_res:
        res = xres
    else:
        res = jnp.dot(xres.astype(jnp.bfloat16), wr_ref[...],
                      preferred_element_type=jnp.float32) + br_ref[...]
    o_ref[0] = (y + res).reshape(H, W, -1)


def _emb_mlp_kernel(e_ref, w_ref, b_ref, o_ref):
    # nn.Sequential(SiLU(), Linear(E, dim_out)) fused into one tiny kernel
    s = _silu(e_ref[...])
    o_ref[...] = jnp.dot(s, w_ref[...],
                         preferred_element_type=jnp.float32) + b_ref[...]


# --------------------------------------------------------------------------
# pallas_call wrappers
# --------------------------------------------------------------------------

def _cparams():
    return pltpu.CompilerParams(dimension_semantics=("parallel",),
                                vmem_limit_bytes=_VMEM_LIMIT)


def conv3x3_gn_silu(x, w, b, g, be, pool, *, eps=_EPS):
    B, H, W, Cin = x.shape
    Cout = w.shape[-1]
    return pl.pallas_call(
        partial(_block1_kernel, H=H, W=W, eps=eps),
        grid=(B,),
        in_specs=[
            pl.BlockSpec((1, H, W, Cin), lambda bb: (bb, 0, 0, 0)),
            pl.BlockSpec((9, Cin, Cout), lambda bb: (0, 0, 0)),
            pl.BlockSpec((1, Cout), lambda bb: (0, 0)),
            pl.BlockSpec((1, Cout), lambda bb: (0, 0)),
            pl.BlockSpec((1, Cout), lambda bb: (0, 0)),
            pl.BlockSpec((Cout, Cout), lambda bb: (0, 0)),
        ],
        out_specs=pl.BlockSpec((1, H, W, Cout), lambda bb: (bb, 0, 0, 0)),
        out_shape=jax.ShapeDtypeStruct((B, H, W, Cout), jnp.float32),
        scratch_shapes=[pltpu.VMEM((H + 2, W + 2, Cin), jnp.float32)],
        compiler_params=_cparams(),
    )(x, w, b, g, be, pool)


def conv3x3_gn_silu_res(h, cond, xres, w, b, g, be, pool, wr, br,
                        *, identity_res, eps=_EPS):
    B, H, W, Cin = h.shape
    Cout = w.shape[-1]
    Cres = xres.shape[-1]
    return pl.pallas_call(
        partial(_block2_kernel, H=H, W=W, eps=eps, identity_res=identity_res),
        grid=(B,),
        in_specs=[
            pl.BlockSpec((1, H, W, Cin), lambda bb: (bb, 0, 0, 0)),
            pl.BlockSpec((1, 1, Cout), lambda bb: (bb, 0, 0)),
            pl.BlockSpec((1, H, W, Cres), lambda bb: (bb, 0, 0, 0)),
            pl.BlockSpec((9, Cin, Cout), lambda bb: (0, 0, 0)),
            pl.BlockSpec((1, Cout), lambda bb: (0, 0)),
            pl.BlockSpec((1, Cout), lambda bb: (0, 0)),
            pl.BlockSpec((1, Cout), lambda bb: (0, 0)),
            pl.BlockSpec((Cout, Cout), lambda bb: (0, 0)),
            pl.BlockSpec((Cres, Cout), lambda bb: (0, 0)),
            pl.BlockSpec((1, Cout), lambda bb: (0, 0)),
        ],
        out_specs=pl.BlockSpec((1, H, W, Cout), lambda bb: (bb, 0, 0, 0)),
        out_shape=jax.ShapeDtypeStruct((B, H, W, Cout), jnp.float32),
        scratch_shapes=[pltpu.VMEM((H + 2, W + 2, Cin), jnp.float32)],
        compiler_params=_cparams(),
    )(h, cond, xres, w, b, g, be, pool, wr, br)


def emb_mlp(e, w, b):
    B = e.shape[0]
    Cout = w.shape[1]
    return pl.pallas_call(
        _emb_mlp_kernel,
        out_shape=jax.ShapeDtypeStruct((B, Cout), jnp.float32),
    )(e, w, b)


# --------------------------------------------------------------------------
# module forward (NCHW in / NCHW out, matching the PyTorch reference)
# --------------------------------------------------------------------------

def resnet_block_forward(params, x_nchw, time_emb=None, cond_emb=None, *, dim_out):
    B, Cin, H, W = x_nchw.shape
    Cpi = params["w1"].shape[1]
    Cpo = params["w1"].shape[2]

    # NCHW -> NHWC and lane-pad the channel dim (single boundary layout op)
    x = jnp.transpose(x_nchw, (0, 2, 3, 1))
    if Cpi > Cin:
        x = jnp.pad(x, ((0, 0), (0, 0), (0, 0), (0, Cpi - Cin)))

    # block1: conv3x3 + bias + GroupNorm + SiLU, fully fused
    h = conv3x3_gn_silu(x, params["w1"], params["b1"], params["g1"],
                        params["be1"], params["pool"])

    # time / cond conditioning, SiLU fused into the projection matmul
    cond = jnp.zeros((B, 1, Cpo), jnp.float32)
    if time_emb is not None and "mlp_w" in params:
        cond = cond + emb_mlp(time_emb, params["mlp_w"], params["mlp_b"])[:, None, :]
    if cond_emb is not None and "mlpc_w" in params:
        cond = cond + emb_mlp(cond_emb, params["mlpc_w"], params["mlpc_b"])[:, None, :]

    # block2: (h + cond) -> conv3x3+GN+SiLU, fused with residual 1x1 conv + add
    identity_res = "res_w" not in params
    if identity_res:
        wr = jnp.zeros((Cpi, Cpo), jnp.bfloat16)
        br = jnp.zeros((1, Cpo), jnp.float32)
    else:
        wr, br = params["res_w"], params["res_b"]
    out = conv3x3_gn_silu_res(h, cond, x, params["w2"], params["b2"],
                              params["g2"], params["be2"], params["pool"],
                              wr, br, identity_res=identity_res)

    out = out[..., :dim_out]
    return jnp.transpose(out, (0, 3, 1, 2))


# --------------------------------------------------------------------------
# parameter init (PyTorch-style) and kernel-layout packing
# --------------------------------------------------------------------------

def _uniform(key, shape, fan_in):
    bound = 1.0 / math.sqrt(fan_in)
    return jax.random.uniform(key, shape, jnp.float32, -bound, bound)


def init_resnet_block(key, dim, dim_out, *, time_emb_dim=None, cond_emb_dim=None,
                      groups=8):
    ks = jax.random.split(key, 10)
    p = {
        "conv1_w": _uniform(ks[0], (3, 3, dim, dim_out), 9 * dim),     # HWIO
        "conv1_b": _uniform(ks[1], (dim_out,), 9 * dim),
        "gn1_g": jnp.ones((dim_out,), jnp.float32),
        "gn1_b": jnp.zeros((dim_out,), jnp.float32),
        "conv2_w": _uniform(ks[2], (3, 3, dim_out, dim_out), 9 * dim_out),
        "conv2_b": _uniform(ks[3], (dim_out,), 9 * dim_out),
        "gn2_g": jnp.ones((dim_out,), jnp.float32),
        "gn2_b": jnp.zeros((dim_out,), jnp.float32),
    }
    if time_emb_dim is not None:
        p["mlp_w"] = _uniform(ks[4], (time_emb_dim, dim_out), time_emb_dim)
        p["mlp_b"] = _uniform(ks[5], (dim_out,), time_emb_dim)
    if cond_emb_dim is not None:
        p["mlpc_w"] = _uniform(ks[6], (cond_emb_dim, dim_out), cond_emb_dim)
        p["mlpc_b"] = _uniform(ks[7], (dim_out,), cond_emb_dim)
    if dim != dim_out:
        p["res_w"] = _uniform(ks[8], (dim, dim_out), dim)
        p["res_b"] = _uniform(ks[9], (dim_out,), dim)
    return p


def pack_params(p, dim, dim_out, groups=8):
    """Pad channels to the 128-lane width, cast matmul weights to bf16 and build
    the GroupNorm group-average pooling matrix. Done once, outside jit."""
    Cpi, Cpo = _round_up(dim), _round_up(dim_out)

    def pad_taps(w, ci, co, cpi, cpo):
        wt = jnp.zeros((9, cpi, cpo), jnp.float32)
        wt = wt.at[:, :ci, :co].set(w.reshape(9, ci, co))
        return wt.astype(jnp.bfloat16)

    def pad_vec(v, co, cpo):
        return jnp.zeros((1, cpo), jnp.float32).at[0, :co].set(v)

    def pad_mat(w, ci, co, cpi, cpo, dtype=jnp.float32):
        return jnp.zeros((cpi, cpo), dtype).at[:ci, :co].set(w.astype(dtype))

    cg = dim_out // groups
    pool = np.zeros((Cpo, Cpo), np.float32)
    for gi in range(groups):
        pool[gi * cg:(gi + 1) * cg, gi * cg:(gi + 1) * cg] = 1.0 / cg

    out = {
        "w1": pad_taps(p["conv1_w"], dim, dim_out, Cpi, Cpo),
        "b1": pad_vec(p["conv1_b"], dim_out, Cpo),
        "g1": pad_vec(p["gn1_g"], dim_out, Cpo),
        "be1": pad_vec(p["gn1_b"], dim_out, Cpo),
        "w2": pad_taps(p["conv2_w"], dim_out, dim_out, Cpo, Cpo),
        "b2": pad_vec(p["conv2_b"], dim_out, Cpo),
        "g2": pad_vec(p["gn2_g"], dim_out, Cpo),
        "be2": pad_vec(p["gn2_b"], dim_out, Cpo),
        "pool": jnp.asarray(pool),
    }
    if "mlp_w" in p:
        E = p["mlp_w"].shape[0]
        out["mlp_w"] = pad_mat(p["mlp_w"], E, dim_out, E, Cpo)
        out["mlp_b"] = pad_vec(p["mlp_b"], dim_out, Cpo)
    if "mlpc_w" in p:
        E = p["mlpc_w"].shape[0]
        out["mlpc_w"] = pad_mat(p["mlpc_w"], E, dim_out, E, Cpo)
        out["mlpc_b"] = pad_vec(p["mlpc_b"], dim_out, Cpo)
    if "res_w" in p:
        out["res_w"] = pad_mat(p["res_w"], dim, dim_out, Cpi, Cpo, jnp.bfloat16)
        out["res_b"] = pad_vec(p["res_b"], dim_out, Cpo)
    return out


# ----------------------------------- main ----------------------------------

if __name__ == "__main__":
    key = jax.random.PRNGKey(0)
    kx, kt, kc, kp = jax.random.split(key, 4)

    B, dim_in, H, W = 2, 4, 16, 16
    dim_out, time_emb_dim, cond_emb_dim, groups = 8, 32, 16, 8

    x = jax.random.normal(kx, (B, dim_in, H, W), jnp.float32)     # NCHW
    t = jax.random.normal(kt, (B, time_emb_dim), jnp.float32)
    c = jax.random.normal(kc, (B, cond_emb_dim), jnp.float32)

    raw = init_resnet_block(kp, dim_in, dim_out,
                            time_emb_dim=time_emb_dim,
                            cond_emb_dim=cond_emb_dim, groups=groups)
    params = pack_params(raw, dim_in, dim_out, groups=groups)

    fwd = jax.jit(partial(resnet_block_forward, dim_out=dim_out))
    out = fwd(params, x, t, c)
    jax.block_until_ready(out)
    assert out.shape == (B, dim_out, H, W), out.shape
    assert bool(jnp.all(jnp.isfinite(out)))
    print("KERNEL_OK")
</pallas_src>

<mosaic_0001>
module attributes {stable_mosaic.version = 11 : i64} {
  func.func @_emb_mlp_kernel(%arg0: memref<2x32xf32, #tpu.memory_space<vmem>>, %arg1: memref<32x128xf32, #tpu.memory_space<vmem>>, %arg2: memref<1x128xf32, #tpu.memory_space<vmem>>, %arg3: memref<2x128xf32, #tpu.memory_space<vmem>>) attributes {dimension_semantics = [], scalar_prefetch = 0 : i64, scratch_operands = 0 : i64, tpu.core_type = #tpu.core_type<tc>} {
    %c0 = arith.constant 0 : index
    %c0_0 = arith.constant 0 : index
    %0 = vector.load %arg0[%c0, %c0_0] : memref<2x32xf32, #tpu.memory_space<vmem>>, vector<2x32xf32>
    %cst = arith.constant 0.000000e+00 : f32
    %1 = vector.broadcast %cst : f32 to vector<2x32xf32>
    %2 = arith.subf %1, %0 : vector<2x32xf32>
    %3 = math.exp %2 : vector<2x32xf32>
    %cst_1 = arith.constant 1.000000e+00 : f32
    %4 = vector.broadcast %cst_1 : f32 to vector<2x32xf32>
    %5 = arith.addf %4, %3 : vector<2x32xf32>
    %cst_2 = arith.constant 1.000000e+00 : f32
    %6 = vector.broadcast %cst_2 : f32 to vector<2x32xf32>
    %7 = arith.divf %6, %5 : vector<2x32xf32>
    %8 = arith.mulf %0, %7 : vector<2x32xf32>
    %c0_3 = arith.constant 0 : index
    %c0_4 = arith.constant 0 : index
    %9 = vector.load %arg1[%c0_3, %c0_4] : memref<32x128xf32, #tpu.memory_space<vmem>>, vector<32x128xf32>
    %cst_5 = arith.constant dense<0.000000e+00> : vector<2x128xf32>
    %10 = tpu.matmul %8, %9, %cst_5 {dimension_numbers = #tpu.dot_dimension_numbers<[1], [0], [0], [1], [0, 0, 1, 1], [], []>} : vector<2x32xf32>, vector<32x128xf32>, vector<2x128xf32> -> vector<2x128xf32>
    %c0_6 = arith.constant 0 : index
    %c0_7 = arith.constant 0 : index
    %11 = vector.load %arg2[%c0_6, %c0_7] : memref<1x128xf32, #tpu.memory_space<vmem>>, vector<1x128xf32>
    %12 = vector.broadcast %11 : vector<1x128xf32> to vector<2x128xf32>
    %13 = arith.addf %10, %12 : vector<2x128xf32>
    %c0_8 = arith.constant 0 : index
    %c0_9 = arith.constant 0 : index
    %14 = vector.load %arg3[%c0_8, %c0_9] : memref<2x128xf32, #tpu.memory_space<vmem>>, vector<2x128xf32>
    tpu.vector_store %arg3[%c0_8, %c0_9], %13 {strides = array<i32>} : memref<2x128xf32, #tpu.memory_space<vmem>>, vector<2x128xf32>,
    return
  }
}

module attributes {stable_mosaic.version = 11 : i64} {
  func.func @_emb_mlp_kernel(%arg0: memref<2x16xf32, #tpu.memory_space<vmem>>, %arg1: memref<16x128xf32, #tpu.memory_space<vmem>>, %arg2: memref<1x128xf32, #tpu.memory_space<vmem>>, %arg3: memref<2x128xf32, #tpu.memory_space<vmem>>) attributes {dimension_semantics = [], scalar_prefetch = 0 : i64, scratch_operands = 0 : i64, tpu.core_type = #tpu.core_type<tc>} {
    %c0 = arith.constant 0 : index
    %c0_0 = arith.constant 0 : index
    %0 = vector.load %arg0[%c0, %c0_0] : memref<2x16xf32, #tpu.memory_space<vmem>>, vector<2x16xf32>
    %cst = arith.constant 0.000000e+00 : f32
    %1 = vector.broadcast %cst : f32 to vector<2x16xf32>
    %2 = arith.subf %1, %0 : vector<2x16xf32>
    %3 = math.exp %2 : vector<2x16xf32>
    %cst_1 = arith.constant 1.000000e+00 : f32
    %4 = vector.broadcast %cst_1 : f32 to vector<2x16xf32>
    %5 = arith.addf %4, %3 : vector<2x16xf32>
    %cst_2 = arith.constant 1.000000e+00 : f32
    %6 = vector.broadcast %cst_2 : f32 to vector<2x16xf32>
    %7 = arith.divf %6, %5 : vector<2x16xf32>
    %8 = arith.mulf %0, %7 : vector<2x16xf32>
    %c0_3 = arith.constant 0 : index
    %c0_4 = arith.constant 0 : index
    %9 = vector.load %arg1[%c0_3, %c0_4] : memref<16x128xf32, #tpu.memory_space<vmem>>, vector<16x128xf32>
    %cst_5 = arith.constant dense<0.000000e+00> : vector<2x128xf32>
    %10 = tpu.matmul %8, %9, %cst_5 {dimension_numbers = #tpu.dot_dimension_numbers<[1], [0], [0], [1], [0, 0, 1, 1], [], []>} : vector<2x16xf32>, vector<16x128xf32>, vector<2x128xf32> -> vector<2x128xf32>
    %c0_6 = arith.constant 0 : index
    %c0_7 = arith.constant 0 : index
    %11 = vector.load %arg2[%c0_6, %c0_7] : memref<1x128xf32, #tpu.memory_space<vmem>>, vector<1x128xf32>
    %12 = vector.broadcast %11 : vector<1x128xf32> to vector<2x128xf32>
    %13 = arith.addf %10, %12 : vector<2x128xf32>
    %c0_8 = arith.constant 0 : index
    %c0_9 = arith.constant 0 : index
    %14 = vector.load %arg3[%c0_8, %c0_9] : memref<2x128xf32, #tpu.memory_space<vmem>>, vector<2x128xf32>
    tpu.vector_store %arg3[%c0_8, %c0_9], %13 {strides = array<i32>} : memref<2x128xf32, #tpu.memory_space<vmem>>, vector<2x128xf32>,
    return
  }
}

module attributes {stable_mosaic.version = 11 : i64} {
  func.func @_block1_kernel(%arg0: i32, %arg1: memref<1x16x16x128xf32, #tpu.memory_space<vmem>>, %arg2: memref<9x128x128xbf16, #tpu.memory_space<vmem>>, %arg3: memref<1x128xf32, #tpu.memory_space<vmem>>, %arg4: memref<1x128xf32, #tpu.memory_space<vmem>>, %arg5: memref<1x128xf32, #tpu.memory_space<vmem>>, %arg6: memref<128x128xf32, #tpu.memory_space<vmem>>, %arg7: memref<1x16x16x128xf32, #tpu.memory_space<vmem>>, %arg8: memref<18x18x128xf32, #tpu.memory_space<vmem>>) attributes {dimension_semantics = [#tpu.dimension_semantics<parallel>], iteration_bounds = array<i64: 2>, scalar_prefetch = 0 : i64, scratch_operands = 1 : i64, tpu.core_type = #tpu.core_type<tc>, window_params = [{transform_indices = @transform_0, window_bounds = array<i64: 1, 16, 16, 128>}, {pipeline_mode = #tpu.pipeline_mode<synchronous>, transform_indices = @transform_1, window_bounds = array<i64: 9, 128, 128>}, {pipeline_mode = #tpu.pipeline_mode<synchronous>, transform_indices = @transform_2, window_bounds = array<i64: 1, 128>}, {pipeline_mode = #tpu.pipeline_mode<synchronous>, transform_indices = @transform_3, window_bounds = array<i64: 1, 128>}, {pipeline_mode = #tpu.pipeline_mode<synchronous>, transform_indices = @transform_4, window_bounds = array<i64: 1, 128>}, {pipeline_mode = #tpu.pipeline_mode<synchronous>, transform_indices = @transform_5, window_bounds = array<i64: 128, 128>}, {transform_indices = @transform_6, window_bounds = array<i64: 1, 16, 16, 128>}]} {
    %c0 = arith.constant 0 : index
    %c0_0 = arith.constant 0 : index
    %c0_1 = arith.constant 0 : index
    %c0_2 = arith.constant 0 : index
    %0 = vector.load %arg1[%c0, %c0_0, %c0_1, %c0_2] : memref<1x16x16x128xf32, #tpu.memory_space<vmem>>, vector<1x16x16x128xf32>
    %1 = vector.shape_cast %0 : vector<1x16x16x128xf32> to vector<16x16x128xf32>
    %cst = arith.constant 0.000000e+00 : f32
    %2 = vector.broadcast %cst : f32 to vector<18x18x128xf32>
    %c0_3 = arith.constant 0 : index
    %c0_4 = arith.constant 0 : index
    %c0_5 = arith.constant 0 : index
    %3 = vector.load %arg8[%c0_3, %c0_4, %c0_5] : memref<18x18x128xf32, #tpu.memory_space<vmem>>, vector<18x18x128xf32>
    tpu.vector_store %arg8[%c0_3, %c0_4, %c0_5], %2 {strides = array<i32>} : memref<18x18x128xf32, #tpu.memory_space<vmem>>, vector<18x18x128xf32>,
    %c1 = arith.constant 1 : index
    %c1_6 = arith.constant 1 : index
    %c0_7 = arith.constant 0 : index
    %4 = vector.load %arg8[%c1, %c1_6, %c0_7] : memref<18x18x128xf32, #tpu.memory_space<vmem>>, vector<16x16x128xf32>
    tpu.vector_store %arg8[%c1, %c1_6, %c0_7], %1 {strides = array<i32>} : memref<18x18x128xf32, #tpu.memory_space<vmem>>, vector<16x16x128xf32>,
    %cst_8 = arith.constant 0.000000e+00 : f32
    %5 = vector.broadcast %cst_8 : f32 to vector<256x128xf32>
    %c0_9 = arith.constant 0 : index
    %c0_10 = arith.constant 0 : index
    %c0_11 = arith.constant 0 : index
    %6 = vector.load %arg8[%c0_9, %c0_10, %c0_11] : memref<18x18x128xf32, #tpu.memory_space<vmem>>, vector<18x16x128xf32>
    %7 = arith.truncf %6 : vector<18x16x128xf32> to vector<18x16x128xbf16>
    %8 = vector.extract_strided_slice %7 {offsets = [0, 0, 0], sizes = [16, 16, 128], strides = [1, 1, 1]} : vector<18x16x128xbf16> to vector<16x16x128xbf16>
    %9 = vector.shape_cast %8 : vector<16x16x128xbf16> to vector<256x128xbf16>
    %c0_12 = arith.constant 0 : index
    %c0_13 = arith.constant 0 : index
    %c0_14 = arith.constant 0 : index
    %10 = vector.load %arg2[%c0_12, %c0_13, %c0_14] : memref<9x128x128xbf16, #tpu.memory_space<vmem>>, vector<1x128x128xbf16>
    %11 = vector.shape_cast %10 : vector<1x128x128xbf16> to vector<128x128xbf16>
    %cst_15 = arith.constant dense<0.000000e+00> : vector<256x128xf32>
    %12 = tpu.matmul %9, %11, %cst_15 {dimension_numbers = #tpu.dot_dimension_numbers<[1], [0], [0], [1], [0, 0, 1, 1], [], []>} : vector<256x128xbf16>, vector<128x128xbf16>, vector<256x128xf32> -> vector<256x128xf32>
    %13 = arith.addf %5, %12 : vector<256x128xf32>
    %14 = vector.extract_strided_slice %7 {offsets = [1, 0, 0], sizes = [16, 16, 128], strides = [1, 1, 1]} : vector<18x16x128xbf16> to vector<16x16x128xbf16>
    %15 = vector.shape_cast %14 : vector<16x16x128xbf16> to vector<256x128xbf16>
    %c3 = arith.constant 3 : index
    %c0_16 = arith.constant 0 : index
    %c0_17 = arith.constant 0 : index
    %16 = vector.load %arg2[%c3, %c0_16, %c0_17] : memref<9x128x128xbf16, #tpu.memory_space<vmem>>, vector<1x128x128xbf16>
    %17 = vector.shape_cast %16 : vector<1x128x128xbf16> to vector<128x128xbf16>
    %cst_18 = arith.constant dense<0.000000e+00> : vector<256x128xf32>
    %18 = tpu.matmul %15, %17, %cst_18 {dimension_numbers = #tpu.dot_dimension_numbers<[1], [0], [0], [1], [0, 0, 1, 1], [], []>} : vector<256x128xbf16>, vector<128x128xbf16>, vector<256x128xf32> -> vector<256x128xf32>
    %19 = arith.addf %13, %18 : vector<256x128xf32>
    %20 = vector.extract_strided_slice %7 {offsets = [2, 0, 0], sizes = [16, 16, 128], strides = [1, 1, 1]} : vector<18x16x128xbf16> to vector<16x16x128xbf16>
    %21 = vector.shape_cast %20 : vector<16x16x128xbf16> to vector<256x128xbf16>
    %c6 = arith.constant 6 : index
    %c0_19 = arith.constant 0 : index
    %c0_20 = arith.constant 0 : index
    %22 = vector.load %arg2[%c6, %c0_19, %c0_20] : memref<9x128x128xbf16, #tpu.memory_space<vmem>>, vector<1x128x128xbf16>
    %23 = vector.shape_cast %22 : vector<1x128x128xbf16> to vector<128x128xbf16>
    %cst_21 = arith.constant dense<0.000000e+00> : vector<256x128xf32>
    %24 = tpu.matmul %21, %23, %cst_21 {dimension_numbers = #tpu.dot_dimension_numbers<[1], [0], [0], [1], [0, 0, 1, 1], [], []>} : vector<256x128xbf16>, vector<128x128xbf16>, vector<256x128xf32> -> vector<256x128xf32>
    %25 = arith.addf %19, %24 : vector<256x128xf32>
    %c0_22 = arith.constant 0 : index
    %c1_23 = arith.constant 1 : index
    %c0_24 = arith.constant 0 : index
    %26 = vector.load %arg8[%c0_22, %c1_23, %c0_24] : memref<18x18x128xf32, #tpu.memory_space<vmem>>, vector<18x16x128xf32>
    %27 = arith.truncf %26 : vector<18x16x128xf32> to vector<18x16x128xbf16>
    %28 = vector.extract_strided_slice %27 {offsets = [0, 0, 0], sizes = [16, 16, 128], strides = [1, 1, 1]} : vector<18x16x128xbf16> to vector<16x16x128xbf16>
    %29 = vector.shape_cast %28 : vector<16x16x128xbf16> to vector<256x128xbf16>
    %c1_25 = arith.constant 1 : index
    %c0_26 = arith.constant 0 : index
    %c0_27 = arith.constant 0 : index
    %30 = vector.load %arg2[%c1_25, %c0_26, %c0_27] : memref<9x128x128xbf16, #tpu.memory_space<vmem>>, vector<1x128x128xbf16>
    %31 = vector.shape_cast %30 : vector<1x128x128xbf16> to vector<128x128xbf16>
    %cst_28 = arith.constant dense<0.000000e+00> : vector<256x128xf32>
    %32 = tpu.matmul %29, %31, %cst_28 {dimension_numbers = #tpu.dot_dimension_numbers<[1], [0], [0], [1], [0, 0, 1, 1], [], []>} : vector<256x128xbf16>, vector<128x128xbf16>, vector<256x128xf32> -> vector<256x128xf32>
    %33 = arith.addf %25, %32 : vector<256x128xf32>
    %34 = vector.extract_strided_slice %27 {offsets = [1, 0, 0], sizes = [16, 16, 128], strides = [1, 1, 1]} : vector<18x16x128xbf16> to vector<16x16x128xbf16>
    %35 = vector.shape_cast %34 : vector<16x16x128xbf16> to vector<256x128xbf16>
    %c4 = arith.constant 4 : index
    %c0_29 = arith.constant 0 : index
    %c0_30 = arith.constant 0 : index
    %36 = vector.load %arg2[%c4, %c0_29, %c0_30] : memref<9x128x128xbf16, #tpu.memory_space<vmem>>, vector<1x128x128xbf16>
    %37 = vector.shape_cast %36 : vector<1x128x128xbf16> to vector<128x128xbf16>
    %cst_31 = arith.constant dense<0.000000e+00> : vector<256x128xf32>
    %38 = tpu.matmul %35, %37, %cst_31 {dimension_numbers = #tpu.dot_dimension_numbers<[1], [0], [0], [1], [0, 0, 1, 1], [], []>} : vector<256x128xbf16>, vector<128x128xbf16>, vector<256x128xf32> -> vector<256x128xf32>
    %39 = arith.addf %33, %38 : vector<256x128xf32>
    %40 = vector.extract_strided_slice %27 {offsets = [2, 0, 0], sizes = [16, 16, 128], strides = [1, 1, 1]} : vector<18x16x128xbf16> to vector<16x16x128xbf16>
    %41 = vector.shape_cast %40 : vector<16x16x128xbf16> to vector<256x128xbf16>
    %c7 = arith.constant 7 : index
    %c0_32 = arith.constant 0 : index
    %c0_33 = arith.constant 0 : index
    %42 = vector.load %arg2[%c7, %c0_32, %c0_33] : memref<9x128x128xbf16, #tpu.memory_space<vmem>>, vector<1x128x128xbf16>
    %43 = vector.shape_cast %42 : vector<1x128x128xbf16> to vector<128x128xbf16>
    %cst_34 = arith.constant dense<0.000000e+00> : vector<256x128xf32>
    %44 = tpu.matmul %41, %43, %cst_34 {dimension_numbers = #tpu.dot_dimension_numbers<[1], [0], [0], [1], [0, 0, 1, 1], [], []>} : vector<256x128xbf16>, vector<128x128xbf16>, vector<256x128xf32> -> vector<256x128xf32>
    %45 = arith.addf %39, %44 : vector<256x128xf32>
    %c0_35 = arith.constant 0 : index
    %c2 = arith.constant 2 : index
    %c0_36 = arith.constant 0 : index
    %46 = vector.load %arg8[%c0_35, %c2, %c0_36] : memref<18x18x128xf32, #tpu.memory_space<vmem>>, vector<18x16x128xf32>
    %47 = arith.truncf %46 : vector<18x16x128xf32> to vector<18x16x128xbf16>
    %48 = vector.extract_strided_slice %47 {offsets = [0, 0, 0], sizes = [16, 16, 128], strides = [1, 1, 1]} : vector<18x16x128xbf16> to vector<16x16x128xbf16>
    %49 = vector.shape_cast %48 : vector<16x16x128xbf16> to vector<256x128xbf16>
    %c2_37 = arith.constant 2 : index
    %c0_38 = arith.constant 0 : index
    %c0_39 = arith.constant 0 : index
    %50 = vector.load %arg2[%c2_37, %c0_38, %c0_39] : memref<9x128x128xbf16, #tpu.memory_space<vmem>>, vector<1x128x128xbf16>
    %51 = vector.shape_cast %50 : vector<1x128x128xbf16> to vector<128x128xbf16>
    %cst_40 = arith.constant dense<0.000000e+00> : vector<256x128xf32>
    %52 = tpu.matmul %49, %51, %cst_40 {dimension_numbers = #tpu.dot_dimension_numbers<[1], [0], [0], [1], [0, 0, 1, 1], [], []>} : vector<256x128xbf16>, vector<128x128xbf16>, vector<256x128xf32> -> vector<256x128xf32>
    %53 = arith.addf %45, %52 : vector<256x128xf32>
    %54 = vector.extract_strided_slice %47 {offsets = [1, 0, 0], sizes = [16, 16, 128], strides = [1, 1, 1]} : vector<18x16x128xbf16> to vector<16x16x128xbf16>
    %55 = vector.shape_cast %54 : vector<16x16x128xbf16> to vector<256x128xbf16>
    %c5 = arith.constant 5 : index
    %c0_41 = arith.constant 0 : index
    %c0_42 = arith.constant 0 : index
    %56 = vector.load %arg2[%c5, %c0_41, %c0_42] : memref<9x128x128xbf16, #tpu.memory_space<vmem>>, vector<1x128x128xbf16>
    %57 = vector.shape_cast %56 : vector<1x128x128xbf16> to vector<128x128xbf16>
    %cst_43 = arith.constant dense<0.000000e+00> : vector<256x128xf32>
    %58 = tpu.matmul %55, %57, %cst_43 {dimension_numbers = #tpu.dot_dimension_numbers<[1], [0], [0], [1], [0, 0, 1, 1], [], []>} : vector<256x128xbf16>, vector<128x128xbf16>, vector<256x128xf32> -> vector<256x128xf32>
    %59 = arith.addf %53, %58 : vector<256x128xf32>
    %60 = vector.extract_strided_slice %47 {offsets = [2, 0, 0], sizes = [16, 16, 128], strides = [1, 1, 1]} : vector<18x16x128xbf16> to vector<16x16x128xbf16>
    %61 = vector.shape_cast %60 : vector<16x16x128xbf16> to vector<256x128xbf16>
    %c8 = arith.constant 8 : index
    %c0_44 = arith.constant 0 : index
    %c0_45 = arith.constant 0 : index
    %62 = vector.load %arg2[%c8, %c0_44, %c0_45] : memref<9x128x128xbf16, #tpu.memory_space<vmem>>, vector<1x128x128xbf16>
    %63 = vector.shape_cast %62 : vector<1x128x128xbf16> to vector<128x128xbf16>
    %cst_46 = arith.constant dense<0.000000e+00> : vector<256x128xf32>
    %64 = tpu.matmul %61, %63, %cst_46 {dimension_numbers = #tpu.dot_dimension_numbers<[1], [0], [0], [1], [0, 0, 1, 1], [], []>} : vector<256x128xbf16>, vector<128x128xbf16>, vector<256x128xf32> -> vector<256x128xf32>
    %65 = arith.addf %59, %64 : vector<256x128xf32>
    %c0_47 = arith.constant 0 : index
    %c0_48 = arith.constant 0 : index
    %66 = vector.load %arg3[%c0_47, %c0_48] : memref<1x128xf32, #tpu.memory_space<vmem>>, vector<1x128xf32>
    %67 = vector.broadcast %66 : vector<1x128xf32> to vector<256x128xf32>
    %68 = arith.addf %65, %67 : vector<256x128xf32>
    %cst_49 = arith.constant dense<0.000000e+00> : vector<128xf32>
    %69 = vector.multi_reduction <add>, %68, %cst_49 [0] : vector<256x128xf32> to vector<128xf32>
    %70 = vector.shape_cast %69 : vector<128xf32> to vector<1x128xf32>
    %cst_50 = arith.constant 2.560000e+02 : f32
    %71 = vector.broadcast %cst_50 : f32 to vector<1x128xf32>
    %72 = arith.divf %70, %71 : vector<1x128xf32>
    %73 = arith.mulf %68, %68 : vector<256x128xf32>
    %cst_51 = arith.constant dense<0.000000e+00> : vector<128xf32>
    %74 = vector.multi_reduction <add>, %73, %cst_51 [0] : vector<256x128xf32> to vector<128xf32>
    %75 = vector.shape_cast %74 : vector<128xf32> to vector<1x128xf32>
    %cst_52 = arith.constant 2.560000e+02 : f32
    %76 = vector.broadcast %cst_52 : f32 to vector<1x128xf32>
    %77 = arith.divf %75, %76 : vector<1x128xf32>
    %c0_53 = arith.constant 0 : index
    %c0_54 = arith.constant 0 : index
    %78 = vector.load %arg6[%c0_53, %c0_54] : memref<128x128xf32, #tpu.memory_space<vmem>>, vector<128x128xf32>
    %cst_55 = arith.constant dense<0.000000e+00> : vector<1x128xf32>
    %79 = tpu.matmul %72, %78, %cst_55 {dimension_numbers = #tpu.dot_dimension_numbers<[1], [0], [0], [1], [0, 0, 1, 1], [], []>} : vector<1x128xf32>, vector<128x128xf32>, vector<1x128xf32> -> vector<1x128xf32>
    %c0_56 = arith.constant 0 : index
    %c0_57 = arith.constant 0 : index
    %80 = vector.load %arg6[%c0_56, %c0_57] : memref<128x128xf32, #tpu.memory_space<vmem>>, vector<128x128xf32>
    %cst_58 = arith.constant dense<0.000000e+00> : vector<1x128xf32>
    %81 = tpu.matmul %77, %80, %cst_58 {dimension_numbers = #tpu.dot_dimension_numbers<[1], [0], [0], [1], [0, 0, 1, 1], [], []>} : vector<1x128xf32>, vector<128x128xf32>, vector<1x128xf32> -> vector<1x128xf32>
    %82 = arith.mulf %79, %79 : vector<1x128xf32>
    %83 = arith.subf %81, %82 : vector<1x128xf32>
    %84 = vector.broadcast %79 : vector<1x128xf32> to vector<256x128xf32>
    %85 = arith.subf %68, %84 : vector<256x128xf32>
    %cst_59 = arith.constant 9.99999974E-6 : f32
    %86 = vector.broadcast %cst_59 : f32 to vector<1x128xf32>
    %87 = arith.addf %83, %86 : vector<1x128xf32>
    %88 = math.rsqrt %87 : vector<1x128xf32>
    %89 = vector.broadcast %88 : vector<1x128xf32> to vector<256x128xf32>
    %90 = arith.mulf %85, %89 : vector<256x128xf32>
    %c0_60 = arith.constant 0 : index
    %c0_61 = arith.constant 0 : index
    %91 = vector.load %arg4[%c0_60, %c0_61] : memref<1x128xf32, #tpu.memory_space<vmem>>, vector<1x128xf32>
    %92 = vector.broadcast %91 : vector<1x128xf32> to vector<256x128xf32>
    %93 = arith.mulf %90, %92 : vector<256x128xf32>
    %c0_62 = arith.constant 0 : index
    %c0_63 = arith.constant 0 : index
    %94 = vector.load %arg5[%c0_62, %c0_63] : memref<1x128xf32, #tpu.memory_space<vmem>>, vector<1x128xf32>
    %95 = vector.broadcast %94 : vector<1x128xf32> to vector<256x128xf32>
    %96 = arith.addf %93, %95 : vector<256x128xf32>
    %cst_64 = arith.constant 0.000000e+00 : f32
    %97 = vector.broadcast %cst_64 : f32 to vector<256x128xf32>
    %98 = arith.subf %97, %96 : vector<256x128xf32>
    %99 = math.exp %98 : vector<256x128xf32>
    %cst_65 = arith.constant 1.000000e+00 : f32
    %100 = vector.broadcast %cst_65 : f32 to vector<256x128xf32>
    %101 = arith.addf %100, %99 : vector<256x128xf32>
    %cst_66 = arith.constant 1.000000e+00 : f32
    %102 = vector.broadcast %cst_66 : f32 to vector<256x128xf32>
    %103 = arith.divf %102, %101 : vector<256x128xf32>
    %104 = arith.mulf %96, %103 : vector<256x128xf32>
    %105 = vector.shape_cast %104 : vector<256x128xf32> to vector<16x16x128xf32>
    %c0_67 = arith.constant 0 : index
    %c0_68 = arith.constant 0 : index
    %c0_69 = arith.constant 0 : index
    %c0_70 = arith.constant 0 : index
    %106 = vector.load %arg7[%c0_67, %c0_68, %c0_69, %c0_70] : memref<1x16x16x128xf32, #tpu.memory_space<vmem>>, vector<1x16x16x128xf32>
    %107 = vector.shape_cast %106 : vector<1x16x16x128xf32> to vector<16x16x128xf32>
    %108 = vector.shape_cast %105 : vector<16x16x128xf32> to vector<1x16x16x128xf32>
    tpu.vector_store %arg7[%c0_67, %c0_68, %c0_69, %c0_70], %108 {strides = array<i32>} : memref<1x16x16x128xf32, #tpu.memory_space<vmem>>, vector<1x16x16x128xf32>,
    return
  }
  func.func @transform_0(%arg0: i32) -> (i32, i32, i32, i32) {
    %c0_i32 = arith.constant 0 : i32
    %c0_i32_0 = arith.constant 0 : i32
    %c0_i32_1 = arith.constant 0 : i32
    %c0_i32_2 = arith.constant 0 : i32
    return %arg0, %c0_i32, %c0_i32_0, %c0_i32_1 : i32, i32, i32, i32
  }
  func.func @transform_1(%arg0: i32) -> (i32, i32, i32) {
    %c0_i32 = arith.constant 0 : i32
    %c0_i32_0 = arith.constant 0 : i32
    %c0_i32_1 = arith.constant 0 : i32
    %c0_i32_2 = arith.constant 0 : i32
    return %c0_i32, %c0_i32_0, %c0_i32_1 : i32, i32, i32
  }
  func.func @transform_2(%arg0: i32) -> (i32, i32) {
    %c0_i32 = arith.constant 0 : i32
    %c0_i32_0 = arith.constant 0 : i32
    %c0_i32_1 = arith.constant 0 : i32
    return %c0_i32, %c0_i32_0 : i32, i32
  }
  func.func @transform_3(%arg0: i32) -> (i32, i32) {
    %c0_i32 = arith.constant 0 : i32
    %c0_i32_0 = arith.constant 0 : i32
    %c0_i32_1 = arith.constant 0 : i32
    return %c0_i32, %c0_i32_0 : i32, i32
  }
  func.func @transform_4(%arg0: i32) -> (i32, i32) {
    %c0_i32 = arith.constant 0 : i32
    %c0_i32_0 = arith.constant 0 : i32
    %c0_i32_1 = arith.constant 0 : i32
    return %c0_i32, %c0_i32_0 : i32, i32
  }
  func.func @transform_5(%arg0: i32) -> (i32, i32) {
    %c0_i32 = arith.constant 0 : i32
    %c0_i32_0 = arith.constant 0 : i32
    %c0_i32_1 = arith.constant 0 : i32
    return %c0_i32, %c0_i32_0 : i32, i32
  }
  func.func @transform_6(%arg0: i32) -> (i32, i32, i32, i32) {
    %c0_i32 = arith.constant 0 : i32
    %c0_i32_0 = arith.constant 0 : i32
    %c0_i32_1 = arith.constant 0 : i32
    %c0_i32_2 = arith.constant 0 : i32
    return %arg0, %c0_i32, %c0_i32_0, %c0_i32_1 : i32, i32, i32, i32
  }
}

module attributes {stable_mosaic.version = 11 : i64} {
  func.func @_block2_kernel(%arg0: i32, %arg1: memref<1x16x16x128xf32, #tpu.memory_space<vmem>>, %arg2: memref<1x1x128xf32, #tpu.memory_space<vmem>>, %arg3: memref<1x16x16x128xf32, #tpu.memory_space<vmem>>, %arg4: memref<9x128x128xbf16, #tpu.memory_space<vmem>>, %arg5: memref<1x128xf32, #tpu.memory_space<vmem>>, %arg6: memref<1x128xf32, #tpu.memory_space<vmem>>, %arg7: memref<1x128xf32, #tpu.memory_space<vmem>>, %arg8: memref<128x128xf32, #tpu.memory_space<vmem>>, %arg9: memref<128x128xbf16, #tpu.memory_space<vmem>>, %arg10: memref<1x128xf32, #tpu.memory_space<vmem>>, %arg11: memref<1x16x16x128xf32, #tpu.memory_space<vmem>>, %arg12: memref<18x18x128xf32, #tpu.memory_space<vmem>>) attributes {dimension_semantics = [#tpu.dimension_semantics<parallel>], iteration_bounds = array<i64: 2>, scalar_prefetch = 0 : i64, scratch_operands = 1 : i64, tpu.core_type = #tpu.core_type<tc>, window_params = [{transform_indices = @transform_0, window_bounds = array<i64: 1, 16, 16, 128>}, {transform_indices = @transform_1, window_bounds = array<i64: 1, 1, 128>}, {transform_indices = @transform_2, window_bounds = array<i64: 1, 16, 16, 128>}, {pipeline_mode = #tpu.pipeline_mode<synchronous>, transform_indices = @transform_3, window_bounds = array<i64: 9, 128, 128>}, {pipeline_mode = #tpu.pipeline_mode<synchronous>, transform_indices = @transform_4, window_bounds = array<i64: 1, 128>}, {pipeline_mode = #tpu.pipeline_mode<synchronous>, transform_indices = @transform_5, window_bounds = array<i64: 1, 128>}, {pipeline_mode = #tpu.pipeline_mode<synchronous>, transform_indices = @transform_6, window_bounds = array<i64: 1, 128>}, {pipeline_mode = #tpu.pipeline_mode<synchronous>, transform_indices = @transform_7, window_bounds = array<i64: 128, 128>}, {pipeline_mode = #tpu.pipeline_mode<synchronous>, transform_indices = @transform_8, window_bounds = array<i64: 128, 128>}, {pipeline_mode = #tpu.pipeline_mode<synchronous>, transform_indices = @transform_9, window_bounds = array<i64: 1, 128>}, {transform_indices = @transform_10, window_bounds = array<i64: 1, 16, 16, 128>}]} {
    %c0 = arith.constant 0 : index
    %c0_0 = arith.constant 0 : index
    %c0_1 = arith.constant 0 : index
    %c0_2 = arith.constant 0 : index
    %0 = vector.load %arg1[%c0, %c0_0, %c0_1, %c0_2] : memref<1x16x16x128xf32, #tpu.memory_space<vmem>>, vector<1x16x16x128xf32>
    %1 = vector.shape_cast %0 : vector<1x16x16x128xf32> to vector<16x16x128xf32>
    %c0_3 = arith.constant 0 : index
    %c0_4 = arith.constant 0 : index
    %c0_5 = arith.constant 0 : index
    %2 = vector.load %arg2[%c0_3, %c0_4, %c0_5] : memref<1x1x128xf32, #tpu.memory_space<vmem>>, vector<1x1x128xf32>
    %3 = vector.shape_cast %2 : vector<1x1x128xf32> to vector<1x128xf32>
    %4 = vector.shape_cast %3 : vector<1x128xf32> to vector<1x1x128xf32>
    %5 = vector.broadcast %4 : vector<1x1x128xf32> to vector<16x16x128xf32>
    %6 = arith.addf %1, %5 : vector<16x16x128xf32>
    %cst = arith.constant 0.000000e+00 : f32
    %7 = vector.broadcast %cst : f32 to vector<18x18x128xf32>
    %c0_6 = arith.constant 0 : index
    %c0_7 = arith.constant 0 : index
    %c0_8 = arith.constant 0 : index
    %8 = vector.load %arg12[%c0_6, %c0_7, %c0_8] : memref<18x18x128xf32, #tpu.memory_space<vmem>>, vector<18x18x128xf32>
    tpu.vector_store %arg12[%c0_6, %c0_7, %c0_8], %7 {strides = array<i32>} : memref<18x18x128xf32, #tpu.memory_space<vmem>>, vector<18x18x128xf32>,
    %c1 = arith.constant 1 : index
    %c1_9 = arith.constant 1 : index
    %c0_10 = arith.constant 0 : index
    %9 = vector.load %arg12[%c1, %c1_9, %c0_10] : memref<18x18x128xf32, #tpu.memory_space<vmem>>, vector<16x16x128xf32>
    tpu.vector_store %arg12[%c1, %c1_9, %c0_10], %6 {strides = array<i32>} : memref<18x18x128xf32, #tpu.memory_space<vmem>>, vector<16x16x128xf32>,
    %cst_11 = arith.constant 0.000000e+00 : f32
    %10 = vector.broadcast %cst_11 : f32 to vector<256x128xf32>
    %c0_12 = arith.constant 0 : index
    %c0_13 = arith.constant 0 : index
    %c0_14 = arith.constant 0 : index
    %11 = vector.load %arg12[%c0_12, %c0_13, %c0_14] : memref<18x18x128xf32, #tpu.memory_space<vmem>>, vector<18x16x128xf32>
    %12 = arith.truncf %11 : vector<18x16x128xf32> to vector<18x16x128xbf16>
    %13 = vector.extract_strided_slice %12 {offsets = [0, 0, 0], sizes = [16, 16, 128], strides = [1, 1, 1]} : vector<18x16x128xbf16> to vector<16x16x128xbf16>
    %14 = vector.shape_cast %13 : vector<16x16x128xbf16> to vector<256x128xbf16>
    %c0_15 = arith.constant 0 : index
    %c0_16 = arith.constant 0 : index
    %c0_17 = arith.constant 0 : index
    %15 = vector.load %arg4[%c0_15, %c0_16, %c0_17] : memref<9x128x128xbf16, #tpu.memory_space<vmem>>, vector<1x128x128xbf16>
    %16 = vector.shape_cast %15 : vector<1x128x128xbf16> to vector<128x128xbf16>
    %cst_18 = arith.constant dense<0.000000e+00> : vector<256x128xf32>
    %17 = tpu.matmul %14, %16, %cst_18 {dimension_numbers = #tpu.dot_dimension_numbers<[1], [0], [0], [1], [0, 0, 1, 1], [], []>} : vector<256x128xbf16>, vector<128x128xbf16>, vector<256x128xf32> -> vector<256x128xf32>
    %18 = arith.addf %10, %17 : vector<256x128xf32>
    %19 = vector.extract_strided_slice %12 {offsets = [1, 0, 0], sizes = [16, 16, 128], strides = [1, 1, 1]} : vector<18x16x128xbf16> to vector<16x16x128xbf16>
    %20 = vector.shape_cast %19 : vector<16x16x128xbf16> to vector<256x128xbf16>
    %c3 = arith.constant 3 : index
    %c0_19 = arith.constant 0 : index
    %c0_20 = arith.constant 0 : index
    %21 = vector.load %arg4[%c3, %c0_19, %c0_20] : memref<9x128x128xbf16, #tpu.memory_space<vmem>>, vector<1x128x128xbf16>
    %22 = vector.shape_cast %21 : vector<1x128x128xbf16> to vector<128x128xbf16>
    %cst_21 = arith.constant dense<0.000000e+00> : vector<256x128xf32>
    %23 = tpu.matmul %20, %22, %cst_21 {dimension_numbers = #tpu.dot_dimension_numbers<[1], [0], [0], [1], [0, 0, 1, 1], [], []>} : vector<256x128xbf16>, vector<128x128xbf16>, vector<256x128xf32> -> vector<256x128xf32>
    %24 = arith.addf %18, %23 : vector<256x128xf32>
    %25 = vector.extract_strided_slice %12 {offsets = [2, 0, 0], sizes = [16, 16, 128], strides = [1, 1, 1]} : vector<18x16x128xbf16> to vector<16x16x128xbf16>
    %26 = vector.shape_cast %25 : vector<16x16x128xbf16> to vector<256x128xbf16>
    %c6 = arith.constant 6 : index
    %c0_22 = arith.constant 0 : index
    %c0_23 = arith.constant 0 : index
    %27 = vector.load %arg4[%c6, %c0_22, %c0_23] : memref<9x128x128xbf16, #tpu.memory_space<vmem>>, vector<1x128x128xbf16>
    %28 = vector.shape_cast %27 : vector<1x128x128xbf16> to vector<128x128xbf16>
    %cst_24 = arith.constant dense<0.000000e+00> : vector<256x128xf32>
    %29 = tpu.matmul %26, %28, %cst_24 {dimension_numbers = #tpu.dot_dimension_numbers<[1], [0], [0], [1], [0, 0, 1, 1], [], []>} : vector<256x128xbf16>, vector<128x128xbf16>, vector<256x128xf32> -> vector<256x128xf32>
    %30 = arith.addf %24, %29 : vector<256x128xf32>
    %c0_25 = arith.constant 0 : index
    %c1_26 = arith.constant 1 : index
    %c0_27 = arith.constant 0 : index
    %31 = vector.load %arg12[%c0_25, %c1_26, %c0_27] : memref<18x18x128xf32, #tpu.memory_space<vmem>>, vector<18x16x128xf32>
    %32 = arith.truncf %31 : vector<18x16x128xf32> to vector<18x16x128xbf16>
    %33 = vector.extract_strided_slice %32 {offsets = [0, 0, 0], sizes = [16, 16, 128], strides = [1, 1, 1]} : vector<18x16x128xbf16> to vector<16x16x128xbf16>
    %34 = vector.shape_cast %33 : vector<16x16x128xbf16> to vector<256x128xbf16>
    %c1_28 = arith.constant 1 : index
    %c0_29 = arith.constant 0 : index
    %c0_30 = arith.constant 0 : index
    %35 = vector.load %arg4[%c1_28, %c0_29, %c0_30] : memref<9x128x128xbf16, #tpu.memory_space<vmem>>, vector<1x128x128xbf16>
    %36 = vector.shape_cast %35 : vector<1x128x128xbf16> to vector<128x128xbf16>
    %cst_31 = arith.constant dense<0.000000e+00> : vector<256x128xf32>
    %37 = tpu.matmul %34, %36, %cst_31 {dimension_numbers = #tpu.dot_dimension_numbers<[1], [0], [0], [1], [0, 0, 1, 1], [], []>} : vector<256x128xbf16>, vector<128x128xbf16>, vector<256x128xf32> -> vector<256x128xf32>
    %38 = arith.addf %30, %37 : vector<256x128xf32>
    %39 = vector.extract_strided_slice %32 {offsets = [1, 0, 0], sizes = [16, 16, 128], strides = [1, 1, 1]} : vector<18x16x128xbf16> to vector<16x16x128xbf16>
    %40 = vector.shape_cast %39 : vector<16x16x128xbf16> to vector<256x128xbf16>
    %c4 = arith.constant 4 : index
    %c0_32 = arith.constant 0 : index
    %c0_33 = arith.constant 0 : index
    %41 = vector.load %arg4[%c4, %c0_32, %c0_33] : memref<9x128x128xbf16, #tpu.memory_space<vmem>>, vector<1x128x128xbf16>
    %42 = vector.shape_cast %41 : vector<1x128x128xbf16> to vector<128x128xbf16>
    %cst_34 = arith.constant dense<0.000000e+00> : vector<256x128xf32>
    %43 = tpu.matmul %40, %42, %cst_34 {dimension_numbers = #tpu.dot_dimension_numbers<[1], [0], [0], [1], [0, 0, 1, 1], [], []>} : vector<256x128xbf16>, vector<128x128xbf16>, vector<256x128xf32> -> vector<256x128xf32>
    %44 = arith.addf %38, %43 : vector<256x128xf32>
    %45 = vector.extract_strided_slice %32 {offsets = [2, 0, 0], sizes = [16, 16, 128], strides = [1, 1, 1]} : vector<18x16x128xbf16> to vector<16x16x128xbf16>
    %46 = vector.shape_cast %45 : vector<16x16x128xbf16> to vector<256x128xbf16>
    %c7 = arith.constant 7 : index
    %c0_35 = arith.constant 0 : index
    %c0_36 = arith.constant 0 : index
    %47 = vector.load %arg4[%c7, %c0_35, %c0_36] : memref<9x128x128xbf16, #tpu.memory_space<vmem>>, vector<1x128x128xbf16>
    %48 = vector.shape_cast %47 : vector<1x128x128xbf16> to vector<128x128xbf16>
    %cst_37 = arith.constant dense<0.000000e+00> : vector<256x128xf32>
    %49 = tpu.matmul %46, %48, %cst_37 {dimension_numbers = #tpu.dot_dimension_numbers<[1], [0], [0], [1], [0, 0, 1, 1], [], []>} : vector<256x128xbf16>, vector<128x128xbf16>, vector<256x128xf32> -> vector<256x128xf32>
    %50 = arith.addf %44, %49 : vector<256x128xf32>
    %c0_38 = arith.constant 0 : index
    %c2 = arith.constant 2 : index
    %c0_39 = arith.constant 0 : index
    %51 = vector.load %arg12[%c0_38, %c2, %c0_39] : memref<18x18x128xf32, #tpu.memory_space<vmem>>, vector<18x16x128xf32>
    %52 = arith.truncf %51 : vector<18x16x128xf32> to vector<18x16x128xbf16>
    %53 = vector.extract_strided_slice %52 {offsets = [0, 0, 0], sizes = [16, 16, 128], strides = [1, 1, 1]} : vector<18x16x128xbf16> to vector<16x16x128xbf16>
    %54 = vector.shape_cast %53 : vector<16x16x128xbf16> to vector<256x128xbf16>
    %c2_40 = arith.constant 2 : index
    %c0_41 = arith.constant 0 : index
    %c0_42 = arith.constant 0 : index
    %55 = vector.load %arg4[%c2_40, %c0_41, %c0_42] : memref<9x128x128xbf16, #tpu.memory_space<vmem>>, vector<1x128x128xbf16>
    %56 = vector.shape_cast %55 : vector<1x128x128xbf16> to vector<128x128xbf16>
    %cst_43 = arith.constant dense<0.000000e+00> : vector<256x128xf32>
    %57 = tpu.matmul %54, %56, %cst_43 {dimension_numbers = #tpu.dot_dimension_numbers<[1], [0], [0], [1], [0, 0, 1, 1], [], []>} : vector<256x128xbf16>, vector<128x128xbf16>, vector<256x128xf32> -> vector<256x128xf32>
    %58 = arith.addf %50, %57 : vector<256x128xf32>
    %59 = vector.extract_strided_slice %52 {offsets = [1, 0, 0], sizes = [16, 16, 128], strides = [1, 1, 1]} : vector<18x16x128xbf16> to vector<16x16x128xbf16>
    %60 = vector.shape_cast %59 : vector<16x16x128xbf16> to vector<256x128xbf16>
    %c5 = arith.constant 5 : index
    %c0_44 = arith.constant 0 : index
    %c0_45 = arith.constant 0 : index
    %61 = vector.load %arg4[%c5, %c0_44, %c0_45] : memref<9x128x128xbf16, #tpu.memory_space<vmem>>, vector<1x128x128xbf16>
    %62 = vector.shape_cast %61 : vector<1x128x128xbf16> to vector<128x128xbf16>
    %cst_46 = arith.constant dense<0.000000e+00> : vector<256x128xf32>
    %63 = tpu.matmul %60, %62, %cst_46 {dimension_numbers = #tpu.dot_dimension_numbers<[1], [0], [0], [1], [0, 0, 1, 1], [], []>} : vector<256x128xbf16>, vector<128x128xbf16>, vector<256x128xf32> -> vector<256x128xf32>
    %64 = arith.addf %58, %63 : vector<256x128xf32>
    %65 = vector.extract_strided_slice %52 {offsets = [2, 0, 0], sizes = [16, 16, 128], strides = [1, 1, 1]} : vector<18x16x128xbf16> to vector<16x16x128xbf16>
    %66 = vector.shape_cast %65 : vector<16x16x128xbf16> to vector<256x128xbf16>
    %c8 = arith.constant 8 : index
    %c0_47 = arith.constant 0 : index
    %c0_48 = arith.constant 0 : index
    %67 = vector.load %arg4[%c8, %c0_47, %c0_48] : memref<9x128x128xbf16, #tpu.memory_space<vmem>>, vector<1x128x128xbf16>
    %68 = vector.shape_cast %67 : vector<1x128x128xbf16> to vector<128x128xbf16>
    %cst_49 = arith.constant dense<0.000000e+00> : vector<256x128xf32>
    %69 = tpu.matmul %66, %68, %cst_49 {dimension_numbers = #tpu.dot_dimension_numbers<[1], [0], [0], [1], [0, 0, 1, 1], [], []>} : vector<256x128xbf16>, vector<128x128xbf16>, vector<256x128xf32> -> vector<256x128xf32>
    %70 = arith.addf %64, %69 : vector<256x128xf32>
    %c0_50 = arith.constant 0 : index
    %c0_51 = arith.constant 0 : index
    %71 = vector.load %arg5[%c0_50, %c0_51] : memref<1x128xf32, #tpu.memory_space<vmem>>, vector<1x128xf32>
    %72 = vector.broadcast %71 : vector<1x128xf32> to vector<256x128xf32>
    %73 = arith.addf %70, %72 : vector<256x128xf32>
    %cst_52 = arith.constant dense<0.000000e+00> : vector<128xf32>
    %74 = vector.multi_reduction <add>, %73, %cst_52 [0] : vector<256x128xf32> to vector<128xf32>
    %75 = vector.shape_cast %74 : vector<128xf32> to vector<1x128xf32>
    %cst_53 = arith.constant 2.560000e+02 : f32
    %76 = vector.broadcast %cst_53 : f32 to vector<1x128xf32>
    %77 = arith.divf %75, %76 : vector<1x128xf32>
    %78 = arith.mulf %73, %73 : vector<256x128xf32>
    %cst_54 = arith.constant dense<0.000000e+00> : vector<128xf32>
    %79 = vector.multi_reduction <add>, %78, %cst_54 [0] : vector<256x128xf32> to vector<128xf32>
    %80 = vector.shape_cast %79 : vector<128xf32> to vector<1x128xf32>
    %cst_55 = arith.constant 2.560000e+02 : f32
    %81 = vector.broadcast %cst_55 : f32 to vector<1x128xf32>
    %82 = arith.divf %80, %81 : vector<1x128xf32>
    %c0_56 = arith.constant 0 : index
    %c0_57 = arith.constant 0 : index
    %83 = vector.load %arg8[%c0_56, %c0_57] : memref<128x128xf32, #tpu.memory_space<vmem>>, vector<128x128xf32>
    %cst_58 = arith.constant dense<0.000000e+00> : vector<1x128xf32>
    %84 = tpu.matmul %77, %83, %cst_58 {dimension_numbers = #tpu.dot_dimension_numbers<[1], [0], [0], [1], [0, 0, 1, 1], [], []>} : vector<1x128xf32>, vector<128x128xf32>, vector<1x128xf32> -> vector<1x128xf32>
    %c0_59 = arith.constant 0 : index
    %c0_60 = arith.constant 0 : index
    %85 = vector.load %arg8[%c0_59, %c0_60] : memref<128x128xf32, #tpu.memory_space<vmem>>, vector<128x128xf32>
    %cst_61 = arith.constant dense<0.000000e+00> : vector<1x128xf32>
    %86 = tpu.matmul %82, %85, %cst_61 {dimension_numbers = #tpu.dot_dimension_numbers<[1], [0], [0], [1], [0, 0, 1, 1], [], []>} : vector<1x128xf32>, vector<128x128xf32>, vector<1x128xf32> -> vector<1x128xf32>
    %87 = arith.mulf %84, %84 : vector<1x128xf32>
    %88 = arith.subf %86, %87 : vector<1x128xf32>
    %89 = vector.broadcast %84 : vector<1x128xf32> to vector<256x128xf32>
    %90 = arith.subf %73, %89 : vector<256x128xf32>
    %cst_62 = arith.constant 9.99999974E-6 : f32
    %91 = vector.broadcast %cst_62 : f32 to vector<1x128xf32>
    %92 = arith.addf %88, %91 : vector<1x128xf32>
    %93 = math.rsqrt %92 : vector<1x128xf32>
    %94 = vector.broadcast %93 : vector<1x128xf32> to vector<256x128xf32>
    %95 = arith.mulf %90, %94 : vector<256x128xf32>
    %c0_63 = arith.constant 0 : index
    %c0_64 = arith.constant 0 : index
    %96 = vector.load %arg6[%c0_63, %c0_64] : memref<1x128xf32, #tpu.memory_space<vmem>>, vector<1x128xf32>
    %97 = vector.broadcast %96 : vector<1x128xf32> to vector<256x128xf32>
    %98 = arith.mulf %95, %97 : vector<256x128xf32>
    %c0_65 = arith.constant 0 : index
    %c0_66 = arith.constant 0 : index
    %99 = vector.load %arg7[%c0_65, %c0_66] : memref<1x128xf32, #tpu.memory_space<vmem>>, vector<1x128xf32>
    %100 = vector.broadcast %99 : vector<1x128xf32> to vector<256x128xf32>
    %101 = arith.addf %98, %100 : vector<256x128xf32>
    %cst_67 = arith.constant 0.000000e+00 : f32
    %102 = vector.broadcast %cst_67 : f32 to vector<256x128xf32>
    %103 = arith.subf %102, %101 : vector<256x128xf32>
    %104 = math.exp %103 : vector<256x128xf32>
    %cst_68 = arith.constant 1.000000e+00 : f32
    %105 = vector.broadcast %cst_68 : f32 to vector<256x128xf32>
    %106 = arith.addf %105, %104 : vector<256x128xf32>
    %cst_69 = arith.constant 1.000000e+00 : f32
    %107 = vector.broadcast %cst_69 : f32 to vector<256x128xf32>
    %108 = arith.divf %107, %106 : vector<256x128xf32>
    %109 = arith.mulf %101, %108 : vector<256x128xf32>
    %c0_70 = arith.constant 0 : index
    %c0_71 = arith.constant 0 : index
    %c0_72 = arith.constant 0 : index
    %c0_73 = arith.constant 0 : index
    %110 = vector.load %arg3[%c0_70, %c0_71, %c0_72, %c0_73] : memref<1x16x16x128xf32, #tpu.memory_space<vmem>>, vector<1x16x16x128xf32>
    %111 = vector.shape_cast %110 : vector<1x16x16x128xf32> to vector<16x16x128xf32>
    %112 = vector.shape_cast %111 : vector<16x16x128xf32> to vector<256x128xf32>
    %113 = arith.truncf %112 : vector<256x128xf32> to vector<256x128xbf16>
    %c0_74 = arith.constant 0 : index
    %c0_75 = arith.constant 0 : index
    %114 = vector.load %arg9[%c0_74, %c0_75] : memref<128x128xbf16, #tpu.memory_space<vmem>>, vector<128x128xbf16>
    %cst_76 = arith.constant dense<0.000000e+00> : vector<256x128xf32>
    %115 = tpu.matmul %113, %114, %cst_76 {dimension_numbers = #tpu.dot_dimension_numbers<[1], [0], [0], [1], [0, 0, 1, 1], [], []>} : vector<256x128xbf16>, vector<128x128xbf16>, vector<256x128xf32> -> vector<256x128xf32>
    %c0_77 = arith.constant 0 : index
    %c0_78 = arith.constant 0 : index
    %116 = vector.load %arg10[%c0_77, %c0_78] : memref<1x128xf32, #tpu.memory_space<vmem>>, vector<1x128xf32>
    %117 = vector.broadcast %116 : vector<1x128xf32> to vector<256x128xf32>
    %118 = arith.addf %115, %117 : vector<256x128xf32>
    %119 = arith.addf %109, %118 : vector<256x128xf32>
    %120 = vector.shape_cast %119 : vector<256x128xf32> to vector<16x16x128xf32>
    %c0_79 = arith.constant 0 : index
    %c0_80 = arith.constant 0 : index
    %c0_81 = arith.constant 0 : index
    %c0_82 = arith.constant 0 : index
    %121 = vector.load %arg11[%c0_79, %c0_80, %c0_81, %c0_82] : memref<1x16x16x128xf32, #tpu.memory_space<vmem>>, vector<1x16x16x128xf32>
    %122 = vector.shape_cast %121 : vector<1x16x16x128xf32> to vector<16x16x128xf32>
    %123 = vector.shape_cast %120 : vector<16x16x128xf32> to vector<1x16x16x128xf32>
    tpu.vector_store %arg11[%c0_79, %c0_80, %c0_81, %c0_82], %123 {strides = array<i32>} : memref<1x16x16x128xf32, #tpu.memory_space<vmem>>, vector<1x16x16x128xf32>,
    return
  }
  func.func @transform_0(%arg0: i32) -> (i32, i32, i32, i32) {
    %c0_i32 = arith.constant 0 : i32
    %c0_i32_0 = arith.constant 0 : i32
    %c0_i32_1 = arith.constant 0 : i32
    %c0_i32_2 = arith.constant 0 : i32
    return %arg0, %c0_i32, %c0_i32_0, %c0_i32_1 : i32, i32, i32, i32
  }
  func.func @transform_1(%arg0: i32) -> (i32, i32, i32) {
    %c0_i32 = arith.constant 0 : i32
    %c0_i32_0 = arith.constant 0 : i32
    %c0_i32_1 = arith.constant 0 : i32
    return %arg0, %c0_i32, %c0_i32_0 : i32, i32, i32
  }
  func.func @transform_2(%arg0: i32) -> (i32, i32, i32, i32) {
    %c0_i32 = arith.constant 0 : i32
    %c0_i32_0 = arith.constant 0 : i32
    %c0_i32_1 = arith.constant 0 : i32
    %c0_i32_2 = arith.constant 0 : i32
    return %arg0, %c0_i32, %c0_i32_0, %c0_i32_1 : i32, i32, i32, i32
  }
  func.func @transform_3(%arg0: i32) -> (i32, i32, i32) {
    %c0_i32 = arith.constant 0 : i32
    %c0_i32_0 = arith.constant 0 : i32
    %c0_i32_1 = arith.constant 0 : i32
    %c0_i32_2 = arith.constant 0 : i32
    return %c0_i32, %c0_i32_0, %c0_i32_1 : i32, i32, i32
  }
  func.func @transform_4(%arg0: i32) -> (i32, i32) {
    %c0_i32 = arith.constant 0 : i32
    %c0_i32_0 = arith.constant 0 : i32
    %c0_i32_1 = arith.constant 0 : i32
    return %c0_i32, %c0_i32_0 : i32, i32
  }
  func.func @transform_5(%arg0: i32) -> (i32, i32) {
    %c0_i32 = arith.constant 0 : i32
    %c0_i32_0 = arith.constant 0 : i32
    %c0_i32_1 = arith.constant 0 : i32
    return %c0_i32, %c0_i32_0 : i32, i32
  }
  func.func @transform_6(%arg0: i32) -> (i32, i32) {
    %c0_i32 = arith.constant 0 : i32
    %c0_i32_0 = arith.constant 0 : i32
    %c0_i32_1 = arith.constant 0 : i32
    return %c0_i32, %c0_i32_0 : i32, i32
  }
  func.func @transform_7(%arg0: i32) -> (i32, i32) {
    %c0_i32 = arith.constant 0 : i32
    %c0_i32_0 = arith.constant 0 : i32
    %c0_i32_1 = arith.constant 0 : i32
    return %c0_i32, %c0_i32_0 : i32, i32
  }
  func.func @transform_8(%arg0: i32) -> (i32, i32) {
    %c0_i32 = arith.constant 0 : i32
    %c0_i32_0 = arith.constant 0 : i32
    %c0_i32_1 = arith.constant 0 : i32
    return %c0_i32, %c0_i32_0 : i32, i32
  }
  func.func @transform_9(%arg0: i32) -> (i32, i32) {
    %c0_i32 = arith.constant 0 : i32
    %c0_i32_0 = arith.constant 0 : i32
    %c0_i32_1 = arith.constant 0 : i32
    return %c0_i32, %c0_i32_0 : i32, i32
  }
  func.func @transform_10(%arg0: i32) -> (i32, i32, i32, i32) {
    %c0_i32 = arith.constant 0 : i32
    %c0_i32_0 = arith.constant 0 : i32
    %c0_i32_1 = arith.constant 0 : i32
    %c0_i32_2 = arith.constant 0 : i32
    return %arg0, %c0_i32, %c0_i32_0, %c0_i32_1 : i32, i32, i32, i32
  }
}

</mosaic_0001>

<bundles_post_ra>
// kernel: resnet_block_forward.6
= control target key start
LH: loop header
LB: loop body
LE: loop exit
PB: predicated region body
PF: predicated region fallthrough
CT: control target
= control target key end

     0   :  { %v132_v0 = vmov 0.0|0.0   ;;  %vm133_vm0 = vmmov 0   ;;  %v134_v3 = vmov 0.0   ;;  %vm31_vm1 = vcmask 130048   ;;  %s170_s1 = inlined_call_operand.vmem [shape: f32[16,128], index: 1, kind: input, shape index: {}]   ;;  %s171_s0 = inlined_call_operand.vmem [shape: f32[2,16], index: 0, kind: input, shape index: {}]   ;;  %s172_s2 = inlined_call_operand.vmem [shape: f32[1,128], index: 2, kind: input, shape index: {}]   ;;  %s173_s3 = inlined_call_operand.vmem [shape: f32[2,128], index: 3, kind: output, shape index: {}]  }
   0x1   :  { %122 = vmatprep.subr.bf16.mxu0 %v132_v0  ;;  %v22_v1 = vld [vmem:[%s170_s1] sm:$0xff]  ;;  %v23_v2 = vld [vmem:[%s170_s1 + $0x8] sm:$0xff]  ;;  %119 = vmatprep.mubr.msk.f32.mxu0 %vm133_vm0, %v134_v3 }
   0x2   :  { %v14_v4 = vld [vmem:[%s171_s0] sm:$0x3]  ;;  %v123_v5 = vpack.c.bf16 %v23_v2, %v22_v1 }
   0x3   :  { %v15_v6 = vsub.f32 0.0, %v14_v4  ;;  %v110_v12 = vld [vmem:[%s172_s2] ss:$0 sm:$0xff] }
   0x4   :  { %124 = vmatpush3.bf16.msra.mxu0 %v123_v5 }
   0x5   :  { %v16_v7 = vmul.f32 1.442695, %v15_v6 }
   0x7   :  { %128 = vpow2.f32 %v16_v7 }
  0x11   :  { %v129_v8 = vpop.eup %128 }
  0x12   :  { %v18_v9 = vadd.f32 1.0, %v129_v8 }
  0x14   :  { %130 = vrcp.f32 %v18_v9 }
  0x1e   :  { %v131_v10 = vpop.eup %130 }
  0x1f   :  { %v21_v11 = vmul.f32 %v131_v10, %v14_v4 }
  0x21   :  { %120 = vmatmul.mubr.msk.f32.vlgmr.msra.gmra.mrb[0].mxu0 %vm31_vm1, %v21_v11 }
  0xf4   :  { %v101_v13 = vpop.f32.mrb[0].mxu0 }
  0xf5   :  { %v102_v14 = vadd.f32 %v110_v12, %v101_v13  ;;  %v121_v15 = vpop.f32.mrb[1].mxu0 }
  0xf7   :  { %105 = vst [vmem:[%s173_s3] sm:$0x3] %v102_v14 }

// kernel: resnet_block_forward.5
= control target key start
LH: loop header
LB: loop body
LE: loop exit
PB: predicated region body
PF: predicated region fallthrough
CT: control target
= control target key end

     0   :  { %8 = vsyncpa [#allocation3], 0  ;;  %s185_s12 = smov [#allocation2]   ;;  %s232_s0 = inlined_call_operand.vmem [shape: f32[2,32], index: 0, kind: input, shape index: {}]   ;;  %s233_s1 = inlined_call_operand.hbm [shape: f32[32,128], index: 1, kind: input, shape index: {}]   ;;  %s234_s2 = inlined_call_operand.vmem [shape: f32[1,128], index: 2, kind: input, shape index: {}]   ;;  %s235_s3 = inlined_call_operand.vmem [shape: f32[2,128], index: 3, kind: output, shape index: {}]  }
   0x1   :  { %s16_s13 = sshll.u32 %s185_s12, 4  ;;  %s161_s16 = scalar_lea.hbm %s233_s1, 512  ;;  %s17_s13 = int_to_ptr.vmem [resolvable:$true] %s16_s13 }
   0x2   :  { %p162_p0 = scmp.ne.s32.totalorder %s233_s1, %s161_s16  ;;  %p165_p1 = scmp.lt.u32.totalorder %s161_s16, %s233_s1 }
   0x4   :  { %p167_p2 = pnand %p165_p1, %p162_p0 }
   0x6   :  { %170 = shalt.err (!%p167_p2)
}
   0x7   :  { %s171_s21 = scalar_lea.vmem %s17_s13, 512  ;;  %p176_p4 = scmp.lt.s32.totalorder %s17_s13, %s17_s13 }
   0x8   :  { %p172_p3 = scmp.ne.s32.totalorder %s17_s13, %s171_s21  ;;  %p177_p5 = scmp.lt.s32.totalorder %s171_s21, %s171_s21 }
   0xa   :  { %p178_p6 = por %p177_p5, %p176_p4 }
   0xc   :  { %p179_p7 = pnand %p178_p6, %p172_p3 }
   0xe   :  { %182 = shalt.err (!%p179_p7)
}
   0xf   :  { %s186_s22 = smov 128   ;;  %s187_s23 = smov 8  }
  0x10   :  { %22 = dma.hbm_to_vmem [thread:$0]  %s233_s1, 512, %s17_s13, [#allocation3], %s186_s22, %s186_s22, %s187_s23  }
  0x11   :  { %183 = dma.done.wait [#allocation3], 512  }
  0x12   :  { %184 = vsyncadd [#allocation3], 4294966784  ;;  %v188_v0 = vmov 0.0|0.0   ;;  %vm189_vm0 = vmmov 0   ;;  %v190_v1 = vmov 0.0   ;;  %v36_v2 = vld [vmem:[#allocation2] sm:$0xff] }
  0x13   :  { %145 = vmatprep.subr.bf16.mxu0 %v188_v0  ;;  %142 = vmatprep.mubr.msk.f32.mxu0 %vm189_vm0, %v190_v1  ;;  %v37_v3 = vld [vmem:[#allocation2 + $0x8] sm:$0xff]  ;;  %v38_v4 = vld [vmem:[#allocation2 + $0x10] sm:$0xff]  ;;  %v39_v6 = vld [vmem:[#allocation2 + $0x18] sm:$0xff]  ;;  %vm47_vm1 = vcmask 261120  }
  0x14   :  { %v146_v5 = vpack.c.bf16 %v37_v3, %v36_v2  ;;  %v28_v7 = vld [vmem:[%s232_s0] sm:$0x3]  ;;  %v149_v9 = vpack.c.bf16 %v39_v6, %v38_v4 }
  0x15   :  { %v29_v8 = vsub.f32 0.0, %v28_v7  ;;  %v127_v15 = vld [vmem:[%s234_s2] ss:$0 sm:$0xff] }
  0x16   :  { %147 = vmatpush3.bf16.msra.mxu0 %v146_v5 }
  0x17   :  { %148 = vmatprep.subr.bf16.mxu0 %v188_v0  ;;  %v30_v10 = vmul.f32 1.442695, %v29_v8 }
  0x19   :  { %157 = vpow2.f32 %v30_v10 }
  0x1a   :  { %150 = vmatpush3.bf16.msra.mxu0 %v149_v9 }
  0x23   :  { %v158_v11 = vpop.eup %157 }
  0x24   :  { %v32_v12 = vadd.f32 1.0, %v158_v11 }
  0x26   :  { %159 = vrcp.f32 %v32_v12 }
  0x30   :  { %v160_v13 = vpop.eup %159 }
  0x31   :  { %v35_v14 = vmul.f32 %v160_v13, %v28_v7 }
  0x33   :  { %143 = vmatmul.mubr.msk.f32.vlgmr.msra.gmra.mrb[0].mxu0 %vm47_vm1, %v35_v14 }
 0x106   :  { %v117_v16 = vpop.f32.mrb[0].mxu0 }
 0x107   :  { %v118_v17 = vadd.f32 %v127_v15, %v117_v16  ;;  %v144_v18 = vpop.f32.mrb[1].mxu0 }
 0x109   :  { %121 = vst [vmem:[%s235_s3] sm:$0x3] %v118_v17 }
 0x10a   :  { %126 = vsyncpa [#allocation3], 1 }

// kernel: resnet_block_forward.4
= control target key start
LH: loop header
LB: loop body
LE: loop exit
PB: predicated region body
PF: predicated region fallthrough
CT: control target
= control target key end

     0   :  { %s5092_s21 = smov 0   ;;  %s6468_s0 = inlined_call_operand.vmem [shape: f32[2,16,16,128], index: 0, kind: input, shape index: {}]   ;;  %s6469_s1 = inlined_call_operand.vmem [shape: bf16[9,128,128], index: 1, kind: input, shape index: {}]   ;;  %s6470_s2 = inlined_call_operand.vmem [shape: f32[1,128], index: 2, kind: input, shape index: {}]   ;;  %s6471_s3 = inlined_call_operand.vmem [shape: f32[1,128], index: 3, kind: input, shape index: {}]   ;;  %s6472_s4 = inlined_call_operand.vmem [shape: f32[1,128], index: 4, kind: input, shape index: {}]   ;;  %s6473_s5 = inlined_call_operand.vmem [shape: f32[128,128], index: 5, kind: input, shape index: {}]   ;;  %s6474_s6 = inlined_call_operand.vmem [shape: f32[2,16,16,128], index: 6, kind: output, shape index: {}]  }
   0x1 LB: > { %s3560_s22 = sadd.s32 4294967295, %s5052_s21   ;;  %p3564_p0 = scmp.ge.s32.totalorder %s5052_s21, 1  ;;  %s5052_s21 = sphi %s5092_s21, %s16_s21  }
   0x2   : > { %p212_p1 = scmp.lt.s32.totalorder %s5052_s21, 3 }
   0x4   : > { %p213_p2 = pnand %p3564_p0, %p212_p1 }
   0x6   : > { %216 = sbr.rel (%p213_p2) target bundleno = 958 (0x3be), region = 44 }
   0xd   : > { %v4843_v0 = vld [vmem:[%s6469_s1 + $0xc0] sm:$0xff]   ;;  %v5109_v2 = vld [vmem:[%s6469_s1 + $0xc8] sm:$0xff]   ;;  %p5113_p3 = scmp.lt.s32.totalorder %s3560_s22, 1  ;;  %v5054_v3 = vmov 0.0   ;;  %v4847_v5 = vld [vmem:[%s6469_s1 + $0xd0] sm:$0xff]   ;;  %vm5056_vm0 = vmmov 0  }
   0xe   : > { %v4844_v1 = vld [vmem:[%s6469_s1 + $0x100] sm:$0xff]   ;;  %4026 = vmatprep.subr.bf16.mxu1 %v4843_v0  ;;  %288 = vst [vmem:[#allocation2 + $0x18] sm:$0xff] %v5054_v3  ;;  %289 = vst [vmem:[#allocation2 + $0x20] sm:$0xff] %v5054_v3  ;;  %v4846_v4 = vld [vmem:[%s6469_s1 + $0x108] sm:$0xff]  }
   0xf   : > { %290 = vst [vmem:[#allocation2 + $0x28] sm:$0x3] %v5054_v3  ;;  %285 = vst [vmem:[#allocation2] sm:$0xff] %v5054_v3  ;;  %4218 = vmatprep.subr.bf16.mxu0 %v4844_v1  ;;  %4027 = vmatpush3.bf16.msra.mxu1 %v4843_v0  ;;  %v4848_v6 = vld [vmem:[%s6469_s1 + $0x110] sm:$0xff]   ;;  %s6486_s22 = smov (!%p5113_p3, %s3560_s22), 1  ;;  %v4849_v7 = vld [vmem:[%s6469_s1 + $0xd8] sm:$0xff]  }
  0x10   : > { %286 = vst [vmem:[#allocation2 + $0x8] sm:$0xff] %v5054_v3  ;;  %287 = vst [vmem:[#allocation2 + $0x10] sm:$0x3] %v5054_v3  ;;  %4219 = vmatpush3.bf16.msra.mxu0 %v4844_v1  ;;  %4028 = vmatprep.subr.bf16.mxu1 %v5109_v2  ;;  %v4850_v8 = vld [vmem:[%s6469_s1 + $0x118] sm:$0xff]   ;;  %s3774_s16 = sshll.u32 %s6486_s22, 8  ;;  %v4851_v9 = vld [vmem:[%s6469_s1 + $0xe0] sm:$0xff]  }
  0x11   : > { %291 = vst [vmem:[#allocation2 + $0x30] sm:$0xff] %v5054_v3  ;;  %292 = vst [vmem:[#allocation2 + $0x38] sm:$0xff] %v5054_v3  ;;  %4220 = vmatprep.subr.bf16.mxu0 %v4846_v4  ;;  %v4852_v10 = vld [vmem:[%s6469_s1 + $0x120] sm:$0xff]   ;;  %s5152_s25 = scalar_lea.vmem %s6468_s0, %s3774_s16  ;;  %v4853_v11 = vld [vmem:[%s6469_s1 + $0xe8] sm:$0xff]   ;;  %s6387_s20 = scalar_lea.vmem %s6474_s6, %s3774_s16 }
  0x12   : > { %293 = vst [vmem:[#allocation2 + $0x40] sm:$0x3] %v5054_v3  ;;  %294 = vst [vmem:[#allocation2 + $0x48] sm:$0xff] %v5054_v3  ;;  %v4854_v12 = vld [vmem:[%s6469_s1 + $0x128] sm:$0xff]   ;;  %v253_v13 = vld [vmem:[%s5152_s25] sm:$0xff] }
  0x13   : > { %295 = vst [vmem:[#allocation2 + $0x50] sm:$0xff] %v5054_v3  ;;  %296 = vst [vmem:[#allocation2 + $0x58] sm:$0x3] %v5054_v3  ;;  %4029 = vmatpush3.bf16.msra.mxu1 %v5109_v2  ;;  %v254_v14 = vld [vmem:[%s5152_s25 + $0x8] sm:$0xff]  ;;  %v5163_v15 = vld [vmem:[%s5152_s25 + $0x10] sm:$0xff] }
  0x14   : > { %297 = vst [vmem:[#allocation2 + $0x60] sm:$0xff] %v5054_v3  ;;  %298 = vst [vmem:[#allocation2 + $0x68] sm:$0xff] %v5054_v3  ;;  %4221 = vmatpush3.bf16.msra.mxu0 %v4846_v4  ;;  %4030 = vmatprep.subr.bf16.mxu1 %v4847_v5  ;;  %v5165_v16 = vpack.c.bf16 %v254_v14, %v253_v13  ;;  %v256_v17 = vld [vmem:[%s5152_s25 + $0x18] sm:$0xff]  ;;  %v4855_v18 = vld [vmem:[%s6469_s1 + $0xf0] sm:$0xff]  }
  0x15   : > { %299 = vst [vmem:[#allocation2 + $0x70] sm:$0x3] %v5054_v3  ;;  %300 = vst [vmem:[#allocation2 + $0x78] sm:$0xff] %v5054_v3  ;;  %4222 = vmatprep.subr.bf16.mxu0 %v4848_v6  ;;  %v5173_v19 = vld [vmem:[%s5152_s25 + $0x20] sm:$0xff]  ;;  %v258_v20 = vld [vmem:[%s5152_s25 + $0x28] sm:$0xff]  ;;  %v5250_v47 = vpack.c.bf16 %v256_v17, %v5163_v15 }
  0x16   : > { %301 = vst [vmem:[#allocation2 + $0x80] sm:$0xff] %v5054_v3  ;;  %302 = vst [vmem:[#allocation2 + $0x88] sm:$0x3] %v5054_v3  ;;  %4234 = vmatprep.mubr.bf16.mxu0 %v5165_v16  ;;  %v5179_v21 = vld [vmem:[%s5152_s25 + $0x30] sm:$0xff]  ;;  %v5182_v22 = vld [vmem:[%s5152_s25 + $0x38] sm:$0xff]  ;;  %v5260_v50 = vpack.c.bf16 %v258_v20, %v5173_v19 }
  0x17   : > { %303 = vst [vmem:[#allocation2 + $0x90] sm:$0xff] %v5054_v3  ;;  %304 = vst [vmem:[#allocation2 + $0x98] sm:$0xff] %v5054_v3  ;;  %4031 = vmatpush3.bf16.msra.mxu1 %v4847_v5  ;;  %v4856_v23 = vld [vmem:[%s6469_s1 + $0x130] sm:$0xff]   ;;  %v5190_v24 = vld [vmem:[%s5152_s25 + $0x40] sm:$0xff]  ;;  %v5298_v0 = vpack.c.bf16 %v5182_v22, %v5179_v21 }
  0x18   : > { %305 = vst [vmem:[#allocation2 + $0xa0] sm:$0x3] %v5054_v3  ;;  %306 = vst [vmem:[#allocation2 + $0xa8] sm:$0xff] %v5054_v3  ;;  %4223 = vmatpush3.bf16.msra.mxu0 %v4848_v6  ;;  %4032 = vmatprep.subr.bf16.mxu1 %v4849_v7  ;;  %v5193_v25 = vld [vmem:[%s5152_s25 + $0x48] sm:$0xff]  ;;  %v5197_v26 = vld [vmem:[%s5152_s25 + $0x50] sm:$0xff] }
  0x19   : > { %307 = vst [vmem:[#allocation2 + $0xb0] sm:$0xff] %v5054_v3  ;;  %308 = vst [vmem:[#allocation2 + $0xb8] sm:$0x3] %v5054_v3  ;;  %4224 = vmatprep.subr.bf16.mxu0 %v4850_v8  ;;  %v5200_v27 = vld [vmem:[%s5152_s25 + $0x58] sm:$0xff]  ;;  %v5206_v28 = vld [vmem:[%s5152_s25 + $0x60] sm:$0xff]  ;;  %v5304_v2 = vpack.c.bf16 %v5193_v25, %v5190_v24 }
  0x1a   : > { %309 = vst [vmem:[#allocation2 + $0xc0] sm:$0xff] %v5054_v3  ;;  %310 = vst [vmem:[#allocation2 + $0xc8] sm:$0xff] %v5054_v3  ;;  %v5209_v29 = vld [vmem:[%s5152_s25 + $0x68] sm:$0xff]  ;;  %v5212_v30 = vld [vmem:[%s5152_s25 + $0x70] sm:$0xff] }
  0x1b   : > { %311 = vst [vmem:[#allocation2 + $0xd0] sm:$0x3] %v5054_v3  ;;  %312 = vst [vmem:[#allocation2 + $0xd8] sm:$0xff] %v5054_v3  ;;  %4033 = vmatpush3.bf16.msra.mxu1 %v4849_v7  ;;  %v4857_v31 = vld [vmem:[%s6469_s1 + $0xf8] sm:$0xff]   ;;  %v5231_v41 = vld [vmem:[%s5152_s25 + $0x80] sm:$0xff] }
  0x1c   : > { %313 = vst [vmem:[#allocation2 + $0xe0] sm:$0xff] %v5054_v3  ;;  %314 = vst [vmem:[#allocation2 + $0xe8] sm:$0x3] %v5054_v3  ;;  %4225 = vmatpush3.bf16.msra.mxu0 %v4850_v8  ;;  %4034 = vmatprep.subr.bf16.mxu1 %v4851_v9  ;;  %v4858_v34 = vld [vmem:[%s6469_s1 + $0x138] sm:$0xff]   ;;  %v5234_v42 = vld [vmem:[%s5152_s25 + $0x88] sm:$0xff] }
  0x1d   : > { %315 = vst [vmem:[#allocation2 + $0xf0] sm:$0xff] %v5054_v3  ;;  %316 = vst [vmem:[#allocation2 + $0xf8] sm:$0xff] %v5054_v3  ;;  %4226 = vmatprep.subr.bf16.mxu0 %v4852_v10  ;;  %v5226_v36 = vld [vmem:[%s5152_s25 + $0x78] sm:$0xff]  ;;  %v4859_v43 = vld [vmem:[%s6469_s1 + $0x1c0] sm:$0xff]  }
  0x1e   : > { %317 = vst [vmem:[#allocation2 + $0x100] sm:$0x3] %v5054_v3  ;;  %318 = vst [vmem:[#allocation2 + $0x108] sm:$0xff] %v5054_v3  ;;  %v5244_v45 = vld [vmem:[%s5152_s25 + $0x90] sm:$0xff]  ;;  %v5247_v46 = vld [vmem:[%s5152_s25 + $0x98] sm:$0xff] }
  0x1f   : > { %319 = vst [vmem:[#allocation2 + $0x110] sm:$0xff] %v5054_v3  ;;  %320 = vst [vmem:[#allocation2 + $0x118] sm:$0x3] %v5054_v3  ;;  %4035 = vmatpush3.bf16.msra.mxu1 %v4851_v9  ;;  %v4860_v49 = vld [vmem:[%s6469_s1 + $0x1c8] sm:$0xff]   ;;  %v4863_v51 = vld [vmem:[%s6469_s1] sm:$0xff]  }
  0x20   : > { %321 = vst [vmem:[#allocation2 + $0x120] sm:$0xff] %v5054_v3  ;;  %322 = vst [vmem:[#allocation2 + $0x128] sm:$0xff] %v5054_v3  ;;  %4227 = vmatpush3.bf16.msra.mxu0 %v4852_v10  ;;  %4036 = vmatprep.subr.bf16.mxu1 %v4853_v11  ;;  %v4865_v54 = vld [vmem:[%s6469_s1 + $0x8] sm:$0xff]   ;;  %v5272_v55 = vld [vmem:[%s5152_s25 + $0xa0] sm:$0xff] }
  0x21   : > { %323 = vst [vmem:[#allocation2 + $0x130] sm:$0x3] %v5054_v3  ;;  %324 = vst [vmem:[#allocation2 + $0x138] sm:$0xff] %v5054_v3  ;;  %4228 = vmatprep.subr.bf16.mxu0 %v4854_v12  ;;  %v5275_v56 = vld [vmem:[%s5152_s25 + $0xa8] sm:$0xff]  ;;  %v5278_v57 = vld [vmem:[%s5152_s25 + $0xb0] sm:$0xff] }
  0x22   : > { %325 = vst [vmem:[#allocation2 + $0x140] sm:$0xff] %v5054_v3  ;;  %326 = vst [vmem:[#allocation2 + $0x148] sm:$0x3] %v5054_v3  ;;  %v5284_v60 = vld [vmem:[%s5152_s25 + $0xb8] sm:$0xff]  ;;  %v4861_v61 = vld [vmem:[%s6469_s1 + $0x1d0] sm:$0xff]  }
  0x23   : > { %327 = vst [vmem:[#allocation2 + $0x150] sm:$0xff] %v5054_v3  ;;  %328 = vst [vmem:[#allocation2 + $0x158] sm:$0xff] %v5054_v3  ;;  %4037 = vmatpush3.bf16.msra.mxu1 %v4853_v11  ;;  %v4866_v63 = vld [vmem:[%s6469_s1 + $0x10] sm:$0xff]   ;;  %v5310_v4 = vld [vmem:[%s5152_s25 + $0xc0] sm:$0xff] }
  0x24   : > { %329 = vst [vmem:[#allocation2 + $0x160] sm:$0x3] %v5054_v3  ;;  %330 = vst [vmem:[#allocation2 + $0x168] sm:$0xff] %v5054_v3  ;;  %4229 = vmatpush3.bf16.msra.mxu0 %v4854_v12  ;;  %4038 = vmatprep.subr.bf16.mxu1 %v4855_v18  ;;  %v5313_v5 = vld [vmem:[%s5152_s25 + $0xc8] sm:$0xff]  ;;  %v5317_v6 = vld [vmem:[%s5152_s25 + $0xd0] sm:$0xff] }
  0x25   : > { %331 = vst [vmem:[#allocation2 + $0x170] sm:$0xff] %v5054_v3  ;;  %332 = vst [vmem:[#allocation2 + $0x178] sm:$0x3] %v5054_v3  ;;  %4230 = vmatprep.subr.bf16.mxu0 %v4856_v23  ;;  %v5320_v7 = vld [vmem:[%s5152_s25 + $0xd8] sm:$0xff] }
  0x26   : > { %333 = vst [vmem:[#allocation2 + $0x180] sm:$0xff] %v5054_v3  ;;  %334 = vst [vmem:[#allocation2 + $0x188] sm:$0xff] %v5054_v3  ;;  %v4868_v8 = vld [vmem:[%s6469_s1 + $0x18] sm:$0xff]  }
  0x27   : > { %335 = vst [vmem:[#allocation2 + $0x190] sm:$0x3] %v5054_v3  ;;  %336 = vst [vmem:[#allocation2 + $0x198] sm:$0xff] %v5054_v3  ;;  %4039 = vmatpush3.bf16.msra.mxu1 %v4855_v18  ;;  %v5344_v18 = vld [vmem:[%s5152_s25 + $0xe8] sm:$0xff] }
  0x28   : > { %337 = vst [vmem:[#allocation2 + $0x1a0] sm:$0xff] %v5054_v3  ;;  %338 = vst [vmem:[#allocation2 + $0x1a8] sm:$0x3] %v5054_v3  ;;  %4231 = vmatpush3.bf16.msra.mxu0 %v4856_v23  ;;  %4040 = vmatprep.subr.bf16.mxu1 %v4857_v31  ;;  %v4862_v3 = vld [vmem:[%s6469_s1 + $0x1d8] sm:$0xff]   ;;  %v5362_v23 = vpack.c.bf16 %v5209_v29, %v5206_v28 }
  0x29   : > { %340 = vst [vmem:[#allocation2 + $0x19] sm:$0xff] %v253_v13  ;;  %341 = vst [vmem:[#allocation2 + $0x21] sm:$0xff] %v254_v14  ;;  %4232 = vmatprep.subr.bf16.mxu0 %v4858_v34  ;;  %v4864_v13 = vld [vmem:[%s6469_s1 + $0x1e0] sm:$0xff]  }
  0x2a   : > { %342 = vst [vmem:[#allocation2 + $0x31] sm:$0xff] %v5163_v15  ;;  %343 = vst [vmem:[#allocation2 + $0x39] sm:$0xff] %v256_v17  ;;  %v4869_v15 = vld [vmem:[%s6469_s1 + $0x20] sm:$0xff]  }
  0x2b   : > { %344 = vst [vmem:[#allocation2 + $0x49] sm:$0xff] %v5173_v19  ;;  %345 = vst [vmem:[#allocation2 + $0x51] sm:$0xff] %v258_v20  ;;  %4041 = vmatpush3.bf16.msra.mxu1 %v4857_v31  ;;  %v5341_v17 = vld [vmem:[%s5152_s25 + $0xe0] sm:$0xff]  ;;  %v5348_v19 = vpack.c.bf16 %v5200_v27, %v5197_v26  ;;  %v4870_v31 = vld [vmem:[%s6469_s1 + $0x1f0] sm:$0xff]  }
  0x2c   : > { %346 = vst [vmem:[#allocation2 + $0x61] sm:$0xff] %v5179_v21  ;;  %347 = vst [vmem:[#allocation2 + $0x69] sm:$0xff] %v5182_v22  ;;  %4233 = vmatpush3.bf16.msra.mxu0 %v4858_v34  ;;  %4074 = vmatprep.subr.bf16.mxu1 %v4863_v51  ;;  %v5355_v21 = vld [vmem:[%s5152_s25 + $0xf0] sm:$0xff]  ;;  %v5358_v22 = vld [vmem:[%s5152_s25 + $0xf8] sm:$0xff]  ;;  %v5386_v34 = vpack.c.bf16 %v5226_v36, %v5212_v30 }
  0x2d   : > { %348 = vst [vmem:[#allocation2 + $0x79] sm:$0xff] %v5190_v24  ;;  %349 = vst [vmem:[#allocation2 + $0x81] sm:$0xff] %v5193_v25  ;;  %4266 = vmatprep.subr.bf16.mxu0 %v4859_v43 }
  0x2e   : > { %350 = vst [vmem:[#allocation2 + $0x91] sm:$0xff] %v5197_v26  ;;  %351 = vst [vmem:[#allocation2 + $0x99] sm:$0xff] %v5200_v27  ;;  %v4867_v26 = vld [vmem:[%s6469_s1 + $0x1e8] sm:$0xff]  }
  0x2f   : > { %352 = vst [vmem:[#allocation2 + $0xa9] sm:$0xff] %v5206_v28  ;;  %353 = vst [vmem:[#allocation2 + $0xb1] sm:$0xff] %v5209_v29  ;;  %4235 = vmatmul.mubr.bf16.vlgmr.msra.gmra.mrb[0].mxu0 %v5250_v47  ;;  %v4871_v27 = vld [vmem:[%s6469_s1 + $0x28] sm:$0xff]  }
  0x30   : > { %v374_v32 = vld [vmem:[#allocation2 + $0x18] sm:$0xff]  ;;  %v375_v33 = vld [vmem:[#allocation2 + $0x20] sm:$0xff]  ;;  %354 = vst [vmem:[#allocation2 + $0xc1] sm:$0xff] %v5212_v30  ;;  %355 = vst [vmem:[#allocation2 + $0xc9] sm:$0xff] %v5226_v36  ;;  %4267 = vmatpush3.bf16.msra.mxu0 %v4859_v43  ;;  %4238 = vmatprep.mubr.bf16.mxu0 %v5260_v50 }
  0x31   : > { %v5223_v35 = vpack.c.bf16 %v375_v33, %v374_v32  ;;  %v376_v37 = vld [vmem:[#allocation2 + $0x30] sm:$0xff]  ;;  %v377_v38 = vld [vmem:[#allocation2 + $0x38] sm:$0xff]  ;;  %356 = vst [vmem:[#allocation2 + $0xd9] sm:$0xff] %v5231_v41  ;;  %357 = vst [vmem:[#allocation2 + $0xe1] sm:$0xff] %v5234_v42  ;;  %4268 = vmatprep.subr.bf16.mxu0 %v4860_v49 }
  0x32   : > { %v378_v39 = vld [vmem:[#allocation2 + $0x48] sm:$0xff]  ;;  %v379_v40 = vld [vmem:[#allocation2 + $0x50] sm:$0xff]  ;;  %v5241_v44 = vpack.c.bf16 %v377_v38, %v376_v37  ;;  %358 = vst [vmem:[#allocation2 + $0xf1] sm:$0xff] %v5244_v45  ;;  %359 = vst [vmem:[#allocation2 + $0xf9] sm:$0xff] %v5247_v46  ;;  %v5392_v38 = vpack.c.bf16 %v5234_v42, %v5231_v41 }
  0x33   : > { %4042 = vmatprep.mubr.bf16.mxu1 %v5223_v35  ;;  %v5252_v48 = vpack.c.bf16 %v379_v40, %v378_v39  ;;  %v380_v52 = vld [vmem:[#allocation2 + $0x60] sm:$0xff]  ;;  %v381_v53 = vld [vmem:[#allocation2 + $0x68] sm:$0xff]  ;;  %360 = vst [vmem:[#allocation2 + $0x109] sm:$0xff] %v5272_v55  ;;  %361 = vst [vmem:[#allocation2 + $0x111] sm:$0xff] %v5275_v56 }
  0x34   : > { %4043 = vmatmul.mubr.bf16.vlgmr.msra.gmra.mrb[0].mxu1 %v5241_v44  ;;  %v382_v58 = vld [vmem:[#allocation2 + $0x78] sm:$0xff]  ;;  %v383_v59 = vld [vmem:[#allocation2 + $0x80] sm:$0xff]  ;;  %362 = vst [vmem:[#allocation2 + $0x121] sm:$0xff] %v5278_v57  ;;  %363 = vst [vmem:[#allocation2 + $0x129] sm:$0xff] %v5284_v60  ;;  %v5291_v62 = vpack.c.bf16 %v381_v53, %v380_v52  ;;  %4269 = vmatpush3.bf16.msra.mxu0 %v4860_v49  ;;  %v5414_v52 = vpack.c.bf16 %v5247_v46, %v5244_v45 }
  0x35   : > { %4046 = vmatprep.mubr.bf16.mxu1 %v5252_v48  ;;  %4075 = vmatpush3.bf16.msra.mxu1 %v4863_v51  ;;  %v5300_v1 = vpack.c.bf16 %v383_v59, %v382_v58  ;;  %364 = vst [vmem:[#allocation2 + $0x139] sm:$0xff] %v5310_v4  ;;  %365 = vst [vmem:[#allocation2 + $0x141] sm:$0xff] %v5313_v5  ;;  %v384_v9 = vld [vmem:[#allocation2 + $0x90] sm:$0xff]  ;;  %v385_v10 = vld [vmem:[#allocation2 + $0x98] sm:$0xff] }
  0x36   : > { %4076 = vmatprep.subr.bf16.mxu1 %v4865_v54  ;;  %4270 = vmatprep.subr.bf16.mxu0 %v4861_v61  ;;  %366 = vst [vmem:[#allocation2 + $0x151] sm:$0xff] %v5317_v6  ;;  %367 = vst [vmem:[#allocation2 + $0x159] sm:$0xff] %v5320_v7  ;;  %v386_v11 = vld [vmem:[#allocation2 + $0xa8] sm:$0xff]  ;;  %v387_v12 = vld [vmem:[#allocation2 + $0xb0] sm:$0xff]  ;;  %v5335_v14 = vpack.c.bf16 %v385_v10, %v384_v9 }
  0x37   : > { %4239 = vmatmul.mubr.bf16.gmra.mrb[4].mxu0 %v5298_v0  ;;  %v5350_v20 = vpack.c.bf16 %v387_v12, %v386_v11  ;;  %368 = vst [vmem:[#allocation2 + $0x169] sm:$0xff] %v5341_v17  ;;  %369 = vst [vmem:[#allocation2 + $0x171] sm:$0xff] %v5344_v18  ;;  %v388_v24 = vld [vmem:[#allocation2 + $0xc0] sm:$0xff]  ;;  %v389_v25 = vld [vmem:[#allocation2 + $0xc8] sm:$0xff] }
  0x38   : > { %4242 = vmatprep.mubr.bf16.mxu0 %v5304_v2  ;;  %4271 = vmatpush3.bf16.msra.mxu0 %v4861_v61  ;;  %370 = vst [vmem:[#allocation2 + $0x181] sm:$0xff] %v5355_v21  ;;  %371 = vst [vmem:[#allocation2 + $0x189] sm:$0xff] %v5358_v22  ;;  %v390_v28 = vld [vmem:[#allocation2 + $0xd8] sm:$0xff]  ;;  %v391_v29 = vld [vmem:[#allocation2 + $0xe0] sm:$0xff]  ;;  %v5379_v32 = vpack.c.bf16 %v389_v25, %v388_v24 }
  0x39   : > { %4077 = vmatpush3.bf16.msra.mxu1 %v4865_v54  ;;  %4272 = vmatprep.subr.bf16.mxu0 %v4862_v3  ;;  %v4872_v33 = vld [vmem:[%s6469_s1 + $0x30] sm:$0xff]   ;;  %v5388_v37 = vpack.c.bf16 %v391_v29, %v390_v28  ;;  %v393_v40 = vld [vmem:[#allocation2 + $0xf8] sm:$0xff]  ;;  %v4875_v42 = vld [vmem:[%s6469_s1 + $0x80] sm:$0xff]   ;;  %v5420_v54 = vpack.c.bf16 %v5275_v56, %v5272_v55  ;;  %v5430_v55 = vpack.c.bf16 %v5284_v60, %v5278_v57 }
  0x3a   : > { %4078 = vmatprep.subr.bf16.mxu1 %v4866_v63  ;;  %v392_v39 = vld [vmem:[#allocation2 + $0xf0] sm:$0xff]  ;;  %v4873_v43 = vld [vmem:[%s6469_s1 + $0x1f8] sm:$0xff]   ;;  %v394_v36 = vld [vmem:[#allocation2 + $0x108] sm:$0xff]  ;;  %v5446_v60 = vpack.c.bf16 %v5320_v7, %v5317_v6  ;;  %v5462_v6 = vpack.c.bf16 %v5358_v22, %v5355_v21  ;;  %v5055_v7 = vmov 0.0|0.0  }
  0x3b   : > { %v4874_v30 = vld [vmem:[%s6469_s1 + $0x38] sm:$0xff]   ;;  %v395_v41 = vld [vmem:[#allocation2 + $0x110] sm:$0xff]  ;;  %v5407_v49 = vpack.c.bf16 %v393_v40, %v392_v39  ;;  %v4879_v51 = vld [vmem:[%s6469_s1 + $0x180] sm:$0xff]  }
  0x3c   : > { %4047 = vmatmul.mubr.bf16.gmra.mrb[4].mxu1 %v5291_v62  ;;  %4273 = vmatpush3.bf16.msra.mxu0 %v4862_v3  ;;  %v5416_v53 = vpack.c.bf16 %v395_v41, %v394_v36  ;;  %v396_v58 = vld [vmem:[#allocation2 + $0x120] sm:$0xff]  ;;  %v397_v59 = vld [vmem:[#allocation2 + $0x128] sm:$0xff]  ;;  %v398_v45 = vld [vmem:[#allocation2 + $0x138] sm:$0xff] }
  0x3d   : > { %4050 = vmatprep.mubr.bf16.mxu1 %v5300_v1  ;;  %4079 = vmatpush3.bf16.msra.mxu1 %v4866_v63  ;;  %v399_v46 = vld [vmem:[#allocation2 + $0x140] sm:$0xff]  ;;  %v5426_v61 = vpack.c.bf16 %v397_v59, %v396_v58  ;;  %v5436_v63 = vpack.c.bf16 %v5313_v5, %v5310_v4  ;;  %v400_v3 = vld [vmem:[#allocation2 + $0x150] sm:$0xff]  ;;  %v5452_v5 = vpack.c.bf16 %v5344_v18, %v5341_v17  ;;  %v4881_v17 = vld [vmem:[%s6469_s1 + $0x188] sm:$0xff]  }
  0x3e   : > { %4080 = vmatprep.subr.bf16.mxu1 %v4868_v8  ;;  %4274 = vmatprep.subr.bf16.mxu0 %v4864_v13  ;;  %v5432_v56 = vpack.c.bf16 %v399_v46, %v398_v45  ;;  %v402_v9 = vld [vmem:[#allocation2 + $0x168] sm:$0xff]  ;;  %v403_v10 = vld [vmem:[#allocation2 + $0x170] sm:$0xff]  ;;  %v4884_v22 = vld [vmem:[%s6469_s1 + $0x198] sm:$0xff]  }
  0x3f   : > { %4243 = vmatmul.mubr.bf16.gmra.mrb[8].mxu0 %v5348_v19  ;;  %v5448_v4 = vpack.c.bf16 %v403_v10, %v402_v9  ;;  %v404_v11 = vld [vmem:[#allocation2 + $0x180] sm:$0xff]  ;;  %v405_v12 = vld [vmem:[#allocation2 + $0x188] sm:$0xff]  ;;  %v4877_v18 = vld [vmem:[%s6469_s1 + $0x90] sm:$0xff]  }
  0x40   : > { %4246 = vmatprep.mubr.bf16.mxu0 %v5362_v23  ;;  %4275 = vmatpush3.bf16.msra.mxu0 %v4864_v13  ;;  %v5458_v13 = vpack.c.bf16 %v405_v12, %v404_v11  ;;  %v4882_v21 = vld [vmem:[%s6469_s1 + $0x190] sm:$0xff]   ;;  %v4880_v24 = vld [vmem:[%s6469_s1 + $0xa0] sm:$0xff]   ;;  %v4892_v9 = vld [vmem:[%s6469_s1 + $0x148] sm:$0xff]  }
  0x41   : > { %4081 = vmatpush3.bf16.msra.mxu1 %v4868_v8  ;;  %4276 = vmatprep.subr.bf16.mxu0 %v4867_v26  ;;  %v401_v8 = vld [vmem:[#allocation2 + $0x158] sm:$0xff]  ;;  %v4885_v25 = vld [vmem:[%s6469_s1 + $0x1a0] sm:$0xff]   ;;  %v4886_v28 = vld [vmem:[%s6469_s1 + $0xb0] sm:$0xff]  }
  0x42   : > { %4082 = vmatprep.subr.bf16.mxu1 %v4869_v15  ;;  %v5442_v57 = vpack.c.bf16 %v401_v8, %v400_v3  ;;  %v4888_v29 = vld [vmem:[%s6469_s1 + $0x1b0] sm:$0xff]   ;;  %v4891_v39 = vld [vmem:[%s6469_s1 + $0x140] sm:$0xff]   ;;  %v4897_v10 = vld [vmem:[%s6469_s1 + $0x48] sm:$0xff]  }
  0x43   : > { %v4895_v40 = vld [vmem:[%s6469_s1 + $0x40] sm:$0xff]   ;;  %v1964_v41 = vld [vmem:[#allocation2 + $0xa] sm:$0xff]  ;;  %v1967_v45 = vld [vmem:[#allocation2 + $0x32] sm:$0xff] }
  0x44   : > { %4051 = vmatmul.mubr.bf16.gmra.mrb[8].mxu1 %v5335_v14  ;;  %4277 = vmatpush3.bf16.msra.mxu0 %v4867_v26  ;;  %v4883_v26 = vld [vmem:[%s6469_s1 + $0xa8] sm:$0xff]   ;;  %v1965_v58 = vld [vmem:[#allocation2 + $0x1a] sm:$0xff]  ;;  %v1970_v11 = vld [vmem:[#allocation2 + $0x52] sm:$0xff] }
  0x45   : > { %4054 = vmatprep.mubr.bf16.mxu1 %v5350_v20  ;;  %4083 = vmatpush3.bf16.msra.mxu1 %v4869_v15  ;;  %v4876_v15 = vld [vmem:[%s6469_s1 + $0x88] sm:$0xff]   ;;  %v1968_v46 = vld [vmem:[#allocation2 + $0x3a] sm:$0xff] }
  0x46   : > { %4084 = vmatprep.subr.bf16.mxu1 %v4871_v27  ;;  %4278 = vmatprep.subr.bf16.mxu0 %v4870_v31  ;;  %v1963_v36 = vld [vmem:[#allocation2 + $0x2] sm:$0xff]  ;;  %v5548_v8 = vpack.c.bf16 %v1968_v46, %v1967_v45 }
  0x47   : > { %4247 = vmatmul.mubr.bf16.gmra.mrb[12].mxu0 %v5386_v34  ;;  %v1966_v59 = vld [vmem:[#allocation2 + $0x22] sm:$0xff] }
  0x48   : > { %4250 = vmatprep.mubr.bf16.mxu0 %v5392_v38  ;;  %4279 = vmatpush3.bf16.msra.mxu0 %v4870_v31  ;;  %v4889_v31 = vld [vmem:[%s6469_s1 + $0xb8] sm:$0xff]   ;;  %v5546_v3 = vpack.c.bf16 %v1966_v59, %v1965_v58  ;;  %v1971_v12 = vld [vmem:[#allocation2 + $0x62] sm:$0xff] }
  0x49   : > { %4085 = vmatpush3.bf16.msra.mxu1 %v4871_v27  ;;  %4280 = vmatprep.subr.bf16.mxu0 %v4873_v43  ;;  %v4887_v27 = vld [vmem:[%s6469_s1 + $0x1a8] sm:$0xff]   ;;  %v1983_v58 = vld [vmem:[#allocation2 + $0xf2] sm:$0xff]  ;;  %v1984_v59 = vld [vmem:[#allocation2 + $0xfa] sm:$0xff] }
  0x4a   : > { %4086 = vmatprep.subr.bf16.mxu1 %v4872_v33  ;;  %v5625_v46 = vpack.c.bf16 %v1984_v59, %v1983_v58 }
  0x4c   : > { %4055 = vmatmul.mubr.bf16.gmra.mrb[12].mxu1 %v5379_v32  ;;  %4281 = vmatpush3.bf16.msra.mxu0 %v4873_v43  ;;  %v1169_v43 = vld [vmem:[#allocation2 + $0x199] sm:$0xff] }
  0x4d   : > { %4058 = vmatprep.mubr.bf16.mxu1 %v5388_v37  ;;  %4087 = vmatpush3.bf16.msra.mxu1 %v4872_v33  ;;  %v4890_v33 = vld [vmem:[%s6469_s1 + $0x1b8] sm:$0xff]  }
  0x4e   : > { %4088 = vmatprep.subr.bf16.mxu1 %v4874_v30  ;;  %4314 = vmatprep.subr.bf16.mxu0 %v4875_v42 }
  0x4f   : > { %4251 = vmatmul.mubr.bf16.gmra.mrb[16].mxu0 %v5414_v52 }
  0x50   : > { %4254 = vmatprep.mubr.bf16.mxu0 %v5420_v54 }
  0x51   : > { %4089 = vmatpush3.bf16.msra.mxu1 %v4874_v30  ;;  %v1170_v30 = vld [vmem:[#allocation2 + $0x1a1] sm:$0xff] }
  0x52   : > { %4122 = vmatprep.subr.bf16.mxu1 %v4879_v51 }
  0x54   : > { %4059 = vmatmul.mubr.bf16.gmra.mrb[16].mxu1 %v5407_v49 }
  0x55   : > { %4062 = vmatprep.mubr.bf16.mxu1 %v5416_v53 }
  0x57   : > { %4255 = vmatmul.mubr.bf16.gmra.mrb[20].mxu0 %v5430_v55 }
  0x58   : > { %4258 = vmatprep.mubr.bf16.mxu0 %v5436_v63 }
  0x5c   : > { %4063 = vmatmul.mubr.bf16.gmra.mrb[20].mxu1 %v5426_v61 }
  0x5d   : > { %4066 = vmatprep.mubr.bf16.mxu1 %v5432_v56 }
  0x5f   : > { %4259 = vmatmul.mubr.bf16.gmra.mrb[24].mxu0 %v5446_v60 }
  0x60   : > { %4262 = vmatprep.mubr.bf16.mxu0 %v5452_v5 }
  0x64   : > { %4067 = vmatmul.mubr.bf16.gmra.mrb[24].mxu1 %v5442_v57 }
  0x65   : > { %4070 = vmatprep.mubr.bf16.mxu1 %v5448_v4 }
  0x67   : > { %4263 = vmatmul.mubr.bf16.gmra.mrb[28].mxu0 %v5462_v6 }
  0x68   : > { %4282 = vmatprep.mubr.bf16.mxu0 %v5250_v47 }
  0x6c   : > { %4071 = vmatmul.mubr.bf16.gmra.mrb[28].mxu1 %v5458_v13 }
  0x6d   : > { %4090 = vmatprep.mubr.bf16.mxu1 %v5055_v7 }
  0x6f   : > { %4283 = vmatmul.mubr.bf16.vlgmr.msra.gmra.mrb[0].mxu0 %v5260_v50 }
  0x70   : > { %4315 = vmatpush3.bf16.msra.mxu0 %v4875_v42  ;;  %4286 = vmatprep.mubr.bf16.mxu0 %v5298_v0  ;;  %v1188_v42 = vpack.c.bf16 %v1170_v30, %v1169_v43  ;;  %v4904_v43 = vld [vmem:[%s6469_s1 + $0x70] sm:$0xff]  }
  0x71   : > { %4316 = vmatprep.subr.bf16.mxu0 %v4876_v15 }
  0x74   : > { %4091 = vmatmul.mubr.bf16.vlgmr.msra.gmra.mrb[0].mxu1 %v5223_v35  ;;  %4317 = vmatpush3.bf16.msra.mxu0 %v4876_v15  ;;  %v4878_v35 = vld [vmem:[%s6469_s1 + $0x98] sm:$0xff]   ;;  %v4898_v15 = vld [vmem:[%s6469_s1 + $0x50] sm:$0xff]  }
  0x75   : > { %4094 = vmatprep.mubr.bf16.mxu1 %v5241_v44  ;;  %4123 = vmatpush3.bf16.msra.mxu1 %v4879_v51  ;;  %v1999_v51 = vpack.c.bf16 %v1964_v41, %v1963_v36  ;;  %v4905_v36 = vld [vmem:[%s6469_s1 + $0x178] sm:$0xff]  }
  0x76   : > { %4124 = vmatprep.subr.bf16.mxu1 %v4881_v17  ;;  %4318 = vmatprep.subr.bf16.mxu0 %v4877_v18  ;;  %v4906_v41 = vld [vmem:[%s6469_s1 + $0x78] sm:$0xff]  }
  0x77   : > { %4287 = vmatmul.mubr.bf16.gmra.mrb[4].mxu0 %v5304_v2 }
  0x78   : > { %4290 = vmatprep.mubr.bf16.mxu0 %v5348_v19  ;;  %4319 = vmatpush3.bf16.msra.mxu0 %v4877_v18  ;;  %v4894_v18 = vld [vmem:[%s6469_s1 + $0x158] sm:$0xff]  }
  0x79   : > { %4125 = vmatpush3.bf16.msra.mxu1 %v4881_v17  ;;  %4320 = vmatprep.subr.bf16.mxu0 %v4878_v35 }
  0x7a   : > { %4126 = vmatprep.subr.bf16.mxu1 %v4882_v21 }
  0x7c   : > { %4095 = vmatmul.mubr.bf16.gmra.mrb[4].mxu1 %v5252_v48  ;;  %4321 = vmatpush3.bf16.msra.mxu0 %v4878_v35  ;;  %v1973_v35 = vld [vmem:[#allocation2 + $0x7a] sm:$0xff] }
  0x7d   : > { %4098 = vmatprep.mubr.bf16.mxu1 %v5291_v62  ;;  %4127 = vmatpush3.bf16.msra.mxu1 %v4882_v21  ;;  %v4900_v21 = vld [vmem:[%s6469_s1 + $0x58] sm:$0xff]  }
  0x7e   : > { %4128 = vmatprep.subr.bf16.mxu1 %v4884_v22  ;;  %4322 = vmatprep.subr.bf16.mxu0 %v4880_v24 }
  0x7f   : > { %4291 = vmatmul.mubr.bf16.gmra.mrb[8].mxu0 %v5362_v23 }
  0x80   : > { %4294 = vmatprep.mubr.bf16.mxu0 %v5386_v34  ;;  %4323 = vmatpush3.bf16.msra.mxu0 %v4880_v24  ;;  %v1975_v24 = vld [vmem:[#allocation2 + $0x92] sm:$0xff] }
  0x81   : > { %4129 = vmatpush3.bf16.msra.mxu1 %v4884_v22  ;;  %4324 = vmatprep.subr.bf16.mxu0 %v4883_v26  ;;  %v1974_v22 = vld [vmem:[#allocation2 + $0x82] sm:$0xff] }
  0x82   : > { %4130 = vmatprep.subr.bf16.mxu1 %v4885_v25 }
  0x84   : > { %4099 = vmatmul.mubr.bf16.gmra.mrb[8].mxu1 %v5300_v1  ;;  %4325 = vmatpush3.bf16.msra.mxu0 %v4883_v26  ;;  %v4901_v26 = vld [vmem:[%s6469_s1 + $0x60] sm:$0xff]  }
  0x85   : > { %4102 = vmatprep.mubr.bf16.mxu1 %v5335_v14  ;;  %4131 = vmatpush3.bf16.msra.mxu1 %v4885_v25  ;;  %v1976_v25 = vld [vmem:[#allocation2 + $0x9a] sm:$0xff] }
  0x86   : > { %4132 = vmatprep.subr.bf16.mxu1 %v4887_v27  ;;  %4326 = vmatprep.subr.bf16.mxu0 %v4886_v28 }
  0x87   : > { %4295 = vmatmul.mubr.bf16.gmra.mrb[12].mxu0 %v5392_v38 }
  0x88   : > { %4298 = vmatprep.mubr.bf16.mxu0 %v5414_v52  ;;  %4327 = vmatpush3.bf16.msra.mxu0 %v4886_v28  ;;  %v4899_v28 = vld [vmem:[%s6469_s1 + $0x168] sm:$0xff]  }
  0x89   : > { %4133 = vmatpush3.bf16.msra.mxu1 %v4887_v27  ;;  %4328 = vmatprep.subr.bf16.mxu0 %v4889_v31  ;;  %v5586_v27 = vpack.c.bf16 %v1974_v22, %v1973_v35  ;;  %v1136_v35 = vld [vmem:[#allocation2 + $0x9] sm:$0xff] }
  0x8a   : > { %4134 = vmatprep.subr.bf16.mxu1 %v4888_v29 }
  0x8c   : > { %4103 = vmatmul.mubr.bf16.gmra.mrb[12].mxu1 %v5350_v20  ;;  %4329 = vmatpush3.bf16.msra.mxu0 %v4889_v31  ;;  %v1977_v31 = vld [vmem:[#allocation2 + $0xaa] sm:$0xff] }
  0x8d   : > { %4106 = vmatprep.mubr.bf16.mxu1 %v5379_v32  ;;  %4135 = vmatpush3.bf16.msra.mxu1 %v4888_v29  ;;  %v4903_v29 = vld [vmem:[%s6469_s1 + $0x68] sm:$0xff]  }
  0x8e   : > { %4136 = vmatprep.subr.bf16.mxu1 %v4890_v33  ;;  %4362 = vmatprep.subr.bf16.mxu0 %v4891_v39 }
  0x8f   : > { %4299 = vmatmul.mubr.bf16.gmra.mrb[16].mxu0 %v5420_v54 }
  0x90   : > { %4302 = vmatprep.mubr.bf16.mxu0 %v5430_v55 }
  0x91   : > { %4137 = vmatpush3.bf16.msra.mxu1 %v4890_v33  ;;  %v1978_v33 = vld [vmem:[#allocation2 + $0xb2] sm:$0xff] }
  0x92   : > { %4170 = vmatprep.subr.bf16.mxu1 %v4895_v40  ;;  %v5606_v30 = vpack.c.bf16 %v1978_v33, %v1977_v31 }
  0x94   : > { %4107 = vmatmul.mubr.bf16.gmra.mrb[16].mxu1 %v5388_v37 }
  0x95   : > { %4110 = vmatprep.mubr.bf16.mxu1 %v5407_v49 }
  0x97   : > { %4303 = vmatmul.mubr.bf16.gmra.mrb[20].mxu0 %v5436_v63 }
  0x98   : > { %4306 = vmatprep.mubr.bf16.mxu0 %v5446_v60 }
  0x9c   : > { %4111 = vmatmul.mubr.bf16.gmra.mrb[20].mxu1 %v5416_v53 }
  0x9d   : > { %4114 = vmatprep.mubr.bf16.mxu1 %v5426_v61 }
  0x9f   : > { %4307 = vmatmul.mubr.bf16.gmra.mrb[24].mxu0 %v5452_v5 }
  0xa0   : > { %4310 = vmatprep.mubr.bf16.mxu0 %v5462_v6  ;;  %v1972_v6 = vld [vmem:[#allocation2 + $0x6a] sm:$0xff] }
  0xa4   : > { %4115 = vmatmul.mubr.bf16.gmra.mrb[24].mxu1 %v5432_v56 }
  0xa5   : > { %4118 = vmatprep.mubr.bf16.mxu1 %v5442_v57 }
  0xa7   : > { %4311 = vmatmul.mubr.bf16.gmra.mrb[28].mxu0 %v1188_v42  ;;  %v1981_v42 = vld [vmem:[#allocation2 + $0xda] sm:$0xff] }
  0xa8   : > { %4330 = vmatprep.mubr.bf16.mxu0 %v1999_v51  ;;  %v1982_v51 = vld [vmem:[#allocation2 + $0xe2] sm:$0xff] }
  0xa9   : > { %v5623_v45 = vpack.c.bf16 %v1982_v51, %v1981_v42  ;;  %v2951_v42 = vld [vmem:[%s6473_s5 + $0x60] sm:$0xff]  ;;  %v2952_v51 = vld [vmem:[%s6473_s5 + $0x68] sm:$0xff] }
  0xaa   : > { %v5789_v59 = vpack.c.bf16 %v2952_v51, %v2951_v42 }
  0xac   : > { %4119 = vmatmul.mubr.bf16.gmra.mrb[28].mxu1 %v5448_v4 }
  0xad   : > { %4138 = vmatprep.mubr.bf16.mxu1 %v5241_v44  ;;  %v1969_v44 = vld [vmem:[#allocation2 + $0x4a] sm:$0xff] }
  0xae   : > { %v5566_v17 = vpack.c.bf16 %v1970_v11, %v1969_v44  ;;  %v1988_v44 = vld [vmem:[#allocation2 + $0x12a] sm:$0xff] }
  0xaf   : > { %4331 = vmatmul.mubr.bf16.vlgmr.msra.gmra.mrb[0].mxu0 %v5546_v3 }
  0xb0   : > { %4363 = vmatpush3.bf16.msra.mxu0 %v4891_v39  ;;  %4334 = vmatprep.mubr.bf16.mxu0 %v5548_v8  ;;  %v1979_v39 = vld [vmem:[#allocation2 + $0xc2] sm:$0xff] }
  0xb1   : > { %4364 = vmatprep.subr.bf16.mxu0 %v4892_v9 }
  0xb4   : > { %4139 = vmatmul.mubr.bf16.vlgmr.msra.gmra.mrb[0].mxu1 %v5252_v48  ;;  %v4893_v48 = vld [vmem:[%s6469_s1 + $0x150] sm:$0xff]   ;;  %4365 = vmatpush3.bf16.msra.mxu0 %v4892_v9 }
  0xb5   : > { %4142 = vmatprep.mubr.bf16.mxu1 %v5291_v62  ;;  %4171 = vmatpush3.bf16.msra.mxu1 %v4895_v40  ;;  %v5568_v62 = vpack.c.bf16 %v1972_v6, %v1971_v12  ;;  %v1980_v40 = vld [vmem:[#allocation2 + $0xca] sm:$0xff]  ;;  %v1986_v9 = vld [vmem:[#allocation2 + $0x112] sm:$0xff] }
  0xb6   : > { %4172 = vmatprep.subr.bf16.mxu1 %v4897_v10  ;;  %4366 = vmatprep.subr.bf16.mxu0 %v4893_v48  ;;  %v1991_v6 = vld [vmem:[#allocation2 + $0x152] sm:$0xff] }
  0xb7   : > { %4335 = vmatmul.mubr.bf16.gmra.mrb[4].mxu0 %v5566_v17 }
  0xb8   : > { %4338 = vmatprep.mubr.bf16.mxu0 %v5568_v62  ;;  %4367 = vmatpush3.bf16.msra.mxu0 %v4893_v48  ;;  %v1992_v48 = vld [vmem:[#allocation2 + $0x15a] sm:$0xff] }
  0xb9   : > { %4173 = vmatpush3.bf16.msra.mxu1 %v4897_v10  ;;  %4368 = vmatprep.subr.bf16.mxu0 %v4894_v18  ;;  %v1987_v10 = vld [vmem:[#allocation2 + $0x122] sm:$0xff] }
  0xba   : > { %4174 = vmatprep.subr.bf16.mxu1 %v4898_v15  ;;  %v5633_v12 = vpack.c.bf16 %v1988_v44, %v1987_v10 }
  0xbc   : > { %4143 = vmatmul.mubr.bf16.gmra.mrb[4].mxu1 %v5300_v1  ;;  %v4896_v1 = vld [vmem:[%s6469_s1 + $0x160] sm:$0xff]   ;;  %4369 = vmatpush3.bf16.msra.mxu0 %v4894_v18  ;;  %v5641_v18 = vpack.c.bf16 %v1992_v48, %v1991_v6 }
  0xbd   : > { %4146 = vmatprep.mubr.bf16.mxu1 %v5335_v14  ;;  %4175 = vmatpush3.bf16.msra.mxu1 %v4898_v15  ;;  %v5588_v14 = vpack.c.bf16 %v1976_v25, %v1975_v24 }
  0xbe   : > { %4176 = vmatprep.subr.bf16.mxu1 %v4900_v21  ;;  %4370 = vmatprep.subr.bf16.mxu0 %v4896_v1 }
  0xbf   : > { %4339 = vmatmul.mubr.bf16.gmra.mrb[8].mxu0 %v5586_v27 }
  0xc0   : > { %4342 = vmatprep.mubr.bf16.mxu0 %v5588_v14  ;;  %4371 = vmatpush3.bf16.msra.mxu0 %v4896_v1  ;;  %v2945_v1 = vld [vmem:[%s6473_s5 + $0x30] sm:$0xff] }
  0xc1   : > { %4177 = vmatpush3.bf16.msra.mxu1 %v4900_v21  ;;  %4372 = vmatprep.subr.bf16.mxu0 %v4899_v28  ;;  %v1135_v21 = vld [vmem:[#allocation2 + $0x1] sm:$0xff] }
  0xc2   : > { %4178 = vmatprep.subr.bf16.mxu1 %v4901_v26  ;;  %v1171_v24 = vpack.c.bf16 %v1136_v35, %v1135_v21 }
  0xc4   : > { %4147 = vmatmul.mubr.bf16.gmra.mrb[8].mxu1 %v5350_v20  ;;  %v4902_v20 = vld [vmem:[%s6469_s1 + $0x170] sm:$0xff]   ;;  %4373 = vmatpush3.bf16.msra.mxu0 %v4899_v28  ;;  %v2948_v28 = vld [vmem:[%s6473_s5 + $0x48] sm:$0xff] }
  0xc5   : > { %4150 = vmatprep.mubr.bf16.mxu1 %v5379_v32  ;;  %4179 = vmatpush3.bf16.msra.mxu1 %v4901_v26  ;;  %v5608_v32 = vpack.c.bf16 %v1980_v40, %v1979_v39  ;;  %v2946_v26 = vld [vmem:[%s6473_s5 + $0x38] sm:$0xff] }
  0xc6   : > { %4180 = vmatprep.subr.bf16.mxu1 %v4903_v29  ;;  %4374 = vmatprep.subr.bf16.mxu0 %v4902_v20 }
  0xc7   : > { %4343 = vmatmul.mubr.bf16.gmra.mrb[12].mxu0 %v5606_v30 }
  0xc8   : > { %4346 = vmatprep.mubr.bf16.mxu0 %v5608_v32  ;;  %4375 = vmatpush3.bf16.msra.mxu0 %v4902_v20  ;;  %v2949_v20 = vld [vmem:[%s6473_s5 + $0x50] sm:$0xff] }
  0xc9   : > { %4181 = vmatpush3.bf16.msra.mxu1 %v4903_v29  ;;  %4376 = vmatprep.subr.bf16.mxu0 %v4905_v36 }
  0xca   : > { %4182 = vmatprep.subr.bf16.mxu1 %v4904_v43 }
  0xcc   : > { %4151 = vmatmul.mubr.bf16.gmra.mrb[12].mxu1 %v5388_v37  ;;  %v4907_v37 = vld [vmem:[%s6469_s1 + $0x200] sm:$0xff]   ;;  %4377 = vmatpush3.bf16.msra.mxu0 %v4905_v36 }
  0xcd   : > { %4154 = vmatprep.mubr.bf16.mxu1 %v5407_v49  ;;  %4183 = vmatpush3.bf16.msra.mxu1 %v4904_v43  ;;  %v1985_v49 = vld [vmem:[#allocation2 + $0x10a] sm:$0xff]  ;;  %v2950_v43 = vld [vmem:[%s6473_s5 + $0x58] sm:$0xff] }
  0xce   : > { %4184 = vmatprep.subr.bf16.mxu1 %v4906_v41  ;;  %4410 = vmatprep.subr.bf16.mxu0 %v4907_v37  ;;  %v5631_v11 = vpack.c.bf16 %v1986_v9, %v1985_v49 }
  0xcf   : > { %4347 = vmatmul.mubr.bf16.gmra.mrb[16].mxu0 %v5623_v45 }
  0xd0   : > { %4350 = vmatprep.mubr.bf16.mxu0 %v5625_v46 }
  0xd1   : > { %4185 = vmatpush3.bf16.msra.mxu1 %v4906_v41 }
  0xd2   : > { %4528 = vmatprep.subr.bf16.mxu1 %v5055_v7 }
  0xd4   : > { %4155 = vmatmul.mubr.bf16.gmra.mrb[16].mxu1 %v5416_v53  ;;  %v1989_v53 = vld [vmem:[#allocation2 + $0x13a] sm:$0xff] }
  0xd5   : > { %4158 = vmatprep.mubr.bf16.mxu1 %v5426_v61  ;;  %v1990_v61 = vld [vmem:[#allocation2 + $0x142] sm:$0xff] }
  0xd6   : > { %v5639_v15 = vpack.c.bf16 %v1990_v61, %v1989_v53 }
  0xd7   : > { %4351 = vmatmul.mubr.bf16.gmra.mrb[20].mxu0 %v5631_v11 }
  0xd8   : > { %4354 = vmatprep.mubr.bf16.mxu0 %v5633_v12 }
  0xdc   : > { %4159 = vmatmul.mubr.bf16.gmra.mrb[20].mxu1 %v5432_v56  ;;  %v1993_v56 = vld [vmem:[#allocation2 + $0x16a] sm:$0xff] }
  0xdd   : > { %4162 = vmatprep.mubr.bf16.mxu1 %v5442_v57  ;;  %v1994_v57 = vld [vmem:[#allocation2 + $0x172] sm:$0xff] }
  0xde   : > { %v5647_v22 = vpack.c.bf16 %v1994_v57, %v1993_v56 }
  0xdf   : > { %4355 = vmatmul.mubr.bf16.gmra.mrb[24].mxu0 %v5639_v15 }
  0xe0   : > { %4358 = vmatprep.mubr.bf16.mxu0 %v5641_v18 }
  0xe4   : > { %4163 = vmatmul.mubr.bf16.gmra.mrb[24].mxu1 %v5448_v4  ;;  %v4908_v4 = vld [vmem:[%s6469_s1 + $0x208] sm:$0xff]  }
  0xe5   : > { %4166 = vmatprep.mubr.bf16.mxu1 %v5458_v13  ;;  %v4909_v13 = vld [vmem:[%s6469_s1 + $0x210] sm:$0xff]  }
  0xe7   : > { %4359 = vmatmul.mubr.bf16.gmra.mrb[28].mxu0 %v5647_v22 }
  0xe8   : > { %4378 = vmatprep.mubr.bf16.mxu0 %v5546_v3  ;;  %v4910_v3 = vld [vmem:[%s6469_s1 + $0x218] sm:$0xff]  }
  0xec   : > { %4167 = vmatmul.mubr.bf16.gmra.mrb[28].mxu1 %v5055_v7 }
  0xed   : > { %4186 = vmatprep.mubr.bf16.mxu1 %v1171_v24 }
  0xef   : > { %4379 = vmatmul.mubr.bf16.vlgmr.msra.gmra.mrb[0].mxu0 %v5548_v8 }
  0xf0   : > { %4411 = vmatpush3.bf16.msra.mxu0 %v4907_v37  ;;  %4382 = vmatprep.mubr.bf16.mxu0 %v5566_v17  ;;  %v2953_v37 = vld [vmem:[%s6473_s5 + $0x70] sm:$0xff] }
  0xf1   : > { %4412 = vmatprep.subr.bf16.mxu0 %v4908_v4 }
  0xf4   : > { %4187 = vmatmul.mubr.bf16.vlgmr.msra.gmra.mrb[0].mxu1 %v5165_v16  ;;  %4413 = vmatpush3.bf16.msra.mxu0 %v4908_v4  ;;  %v4911_v16 = vld [vmem:[%s6469_s1 + $0x220] sm:$0xff]  }
  0xf5   : > { %4190 = vmatprep.mubr.bf16.mxu1 %v5250_v47  ;;  %4414 = vmatprep.subr.bf16.mxu0 %v4909_v13  ;;  %v4912_v47 = vld [vmem:[%s6469_s1 + $0x228] sm:$0xff]  }
  0xf7   : > { %4383 = vmatmul.mubr.bf16.gmra.mrb[4].mxu0 %v5568_v62 }
  0xf8   : > { %4386 = vmatprep.mubr.bf16.mxu0 %v5586_v27  ;;  %4415 = vmatpush3.bf16.msra.mxu0 %v4909_v13 }
  0xf9   : > { %4416 = vmatprep.subr.bf16.mxu0 %v4910_v3 }
  0xfc   : > { %4191 = vmatmul.mubr.bf16.gmra.mrb[4].mxu1 %v5260_v50  ;;  %4417 = vmatpush3.bf16.msra.mxu0 %v4910_v3  ;;  %v4913_v50 = vld [vmem:[%s6469_s1 + $0x230] sm:$0xff]  }
  0xfd   : > { %4194 = vmatprep.mubr.bf16.mxu1 %v5298_v0  ;;  %4418 = vmatprep.subr.bf16.mxu0 %v4911_v16  ;;  %v4914_v0 = vld [vmem:[%s6469_s1 + $0x238] sm:$0xff]  }
  0xff   : > { %4387 = vmatmul.mubr.bf16.gmra.mrb[8].mxu0 %v5588_v14 }
 0x100   : > { %4390 = vmatprep.mubr.bf16.mxu0 %v5606_v30  ;;  %4419 = vmatpush3.bf16.msra.mxu0 %v4911_v16 }
 0x101   : > { %4420 = vmatprep.subr.bf16.mxu0 %v4912_v47 }
 0x104   : > { %4195 = vmatmul.mubr.bf16.gmra.mrb[8].mxu1 %v5304_v2  ;;  %4421 = vmatpush3.bf16.msra.mxu0 %v4912_v47  ;;  %v1995_v2 = vld [vmem:[#allocation2 + $0x182] sm:$0xff] }
 0x105   : > { %4198 = vmatprep.mubr.bf16.mxu1 %v5348_v19  ;;  %4422 = vmatprep.subr.bf16.mxu0 %v4913_v50  ;;  %v1996_v19 = vld [vmem:[#allocation2 + $0x18a] sm:$0xff] }
 0x107   : > { %4391 = vmatmul.mubr.bf16.gmra.mrb[12].mxu0 %v5608_v32 }
 0x108   : > { %4394 = vmatprep.mubr.bf16.mxu0 %v5623_v45  ;;  %4423 = vmatpush3.bf16.msra.mxu0 %v4913_v50 }
 0x109   : > { %4424 = vmatprep.subr.bf16.mxu0 %v4914_v0 }
 0x10c   : > { %4199 = vmatmul.mubr.bf16.gmra.mrb[12].mxu1 %v5362_v23  ;;  %4425 = vmatpush3.bf16.msra.mxu0 %v4914_v0  ;;  %v2015_v23 = vpack.c.bf16 %v1996_v19, %v1995_v2 }
 0x10d   : > { %4202 = vmatprep.mubr.bf16.mxu1 %v5386_v34  ;;  %v1997_v34 = vld [vmem:[#allocation2 + $0x19a] sm:$0xff] }
 0x10f   : > { %4395 = vmatmul.mubr.bf16.gmra.mrb[16].mxu0 %v5625_v46 }
 0x110   : > { %4398 = vmatprep.mubr.bf16.mxu0 %v5631_v11 }
 0x114   : > { %4203 = vmatmul.mubr.bf16.gmra.mrb[16].mxu1 %v5392_v38  ;;  %v1998_v38 = vld [vmem:[#allocation2 + $0x1a2] sm:$0xff] }
 0x115   : > { %4206 = vmatprep.mubr.bf16.mxu1 %v5414_v52  ;;  %v2016_v52 = vpack.c.bf16 %v1998_v38, %v1997_v34 }
 0x117   : > { %4399 = vmatmul.mubr.bf16.gmra.mrb[20].mxu0 %v5633_v12 }
 0x118   : > { %4402 = vmatprep.mubr.bf16.mxu0 %v5639_v15 }
 0x11c   : > { %4207 = vmatmul.mubr.bf16.gmra.mrb[20].mxu1 %v5420_v54  ;;  %v2939_v54 = vld [vmem:[%s6473_s5] sm:$0xff] }
 0x11d   : > { %4210 = vmatprep.mubr.bf16.mxu1 %v5430_v55  ;;  %v2940_v55 = vld [vmem:[%s6473_s5 + $0x8] sm:$0xff] }
 0x11f   : > { %4403 = vmatmul.mubr.bf16.gmra.mrb[24].mxu0 %v5641_v18 }
 0x120   : > { %4406 = vmatprep.mubr.bf16.mxu0 %v5647_v22 }
 0x124   : > { %4211 = vmatmul.mubr.bf16.gmra.mrb[24].mxu1 %v5436_v63  ;;  %v5723_v63 = vpack.c.bf16 %v2940_v55, %v2939_v54 }
 0x125   : > { %4214 = vmatprep.mubr.bf16.mxu1 %v5446_v60  ;;  %v2941_v60 = vld [vmem:[%s6473_s5 + $0x10] sm:$0xff] }
 0x126   : > { %4530 = vmatpush3.bf16.msra.mxu1 %v5723_v63 }
 0x127   : > { %4407 = vmatmul.mubr.bf16.gmra.mrb[28].mxu0 %v2015_v23  ;;  %4531 = vmatprep.subr.bf16.mxu1 %v5055_v7 }
 0x128   : > { %4426 = vmatprep.mubr.bf16.mxu0 %v5548_v8 }
 0x12c   : > { %4215 = vmatmul.mubr.bf16.gmra.mrb[28].mxu1 %v5452_v5  ;;  %v2942_v5 = vld [vmem:[%s6473_s5 + $0x18] sm:$0xff] }
 0x12d   : > { %v5733_v8 = vpack.c.bf16 %v2942_v5, %v2941_v60 }
 0x12f   : > { %4427 = vmatmul.mubr.bf16.vlgmr.msra.gmra.mrb[0].mxu0 %v5566_v17  ;;  %4533 = vmatpush3.bf16.msra.mxu1 %v5733_v8  ;;  %v2943_v17 = vld [vmem:[%s6473_s5 + $0x20] sm:$0xff] }
 0x130   : > { %4430 = vmatprep.mubr.bf16.mxu0 %v5568_v62  ;;  %4534 = vmatprep.subr.bf16.mxu1 %v5055_v7  ;;  %v2944_v62 = vld [vmem:[%s6473_s5 + $0x28] sm:$0xff] }
 0x131   : > { %v5743_v25 = vpack.c.bf16 %v2944_v62, %v2943_v17 }
 0x133   : > { %4536 = vmatpush3.bf16.msra.mxu1 %v5743_v25 }
 0x134   : > { %4537 = vmatprep.subr.bf16.mxu1 %v5055_v7 }
 0x137   : > { %4431 = vmatmul.mubr.bf16.gmra.mrb[4].mxu0 %v5586_v27  ;;  %v5753_v27 = vpack.c.bf16 %v2946_v26, %v2945_v1 }
 0x138   : > { %4434 = vmatprep.mubr.bf16.mxu0 %v5588_v14  ;;  %v2947_v14 = vld [vmem:[%s6473_s5 + $0x40] sm:$0xff] }
 0x139   : > { %4539 = vmatpush3.bf16.msra.mxu1 %v5753_v27  ;;  %v5763_v29 = vpack.c.bf16 %v2948_v28, %v2947_v14 }
 0x13a   : > { %4540 = vmatprep.subr.bf16.mxu1 %v5055_v7 }
 0x13d   : > { %4542 = vmatpush3.bf16.msra.mxu1 %v5763_v29 }
 0x13e   : > { %4543 = vmatprep.subr.bf16.mxu1 %v5055_v7 }
 0x13f   : > { %4435 = vmatmul.mubr.bf16.gmra.mrb[8].mxu0 %v5606_v30  ;;  %v5773_v30 = vpack.c.bf16 %v2950_v43, %v2949_v20 }
 0x140   : > { %4438 = vmatprep.mubr.bf16.mxu0 %v5608_v32 }
 0x141   : > { %4545 = vmatpush3.bf16.msra.mxu1 %v5773_v30 }
 0x142   : > { %4546 = vmatprep.subr.bf16.mxu1 %v5055_v7 }
 0x145   : > { %4548 = vmatpush3.bf16.msra.mxu1 %v5789_v59 }
 0x146   : > { %4549 = vmatprep.subr.bf16.mxu1 %v5055_v7 }
 0x147   : > { %4439 = vmatmul.mubr.bf16.gmra.mrb[12].mxu0 %v5623_v45  ;;  %v2954_v45 = vld [vmem:[%s6473_s5 + $0x78] sm:$0xff] }
 0x148   : > { %4442 = vmatprep.mubr.bf16.mxu0 %v5625_v46  ;;  %v5797_v46 = vld [vmem:[#allocation2] sm:$0xff]  ;;  %v5802_v49 = vpack.c.bf16 %v2954_v45, %v2953_v37 }
 0x149   : > { %4490 = vmatprep.mubr.msk.f32.mxu1 %vm5056_vm0, %v5797_v46 }
 0x14a   : > { %4551 = vmatpush3.bf16.msra.mxu1 %v5802_v49 }
 0x14b   : > { %4552 = vmatprep.subr.bf16.mxu1 %v5055_v7 }
 0x14f   : > { %4443 = vmatmul.mubr.bf16.gmra.mrb[16].mxu0 %v5631_v11 }
 0x150   : > { %4446 = vmatprep.mubr.bf16.mxu0 %v5633_v12 }
 0x157   : > { %4447 = vmatmul.mubr.bf16.gmra.mrb[20].mxu0 %v5639_v15 }
 0x158   : > { %4450 = vmatprep.mubr.bf16.mxu0 %v5641_v18 }
 0x15f   : > { %4451 = vmatmul.mubr.bf16.gmra.mrb[24].mxu0 %v5647_v22 }
 0x160   : > { %4454 = vmatprep.mubr.bf16.mxu0 %v2015_v23  ;;  %v5858_v23 = vld [vmem:[%s6470_s2] ss:$0 sm:$0xff] }
 0x167   : > { %4455 = vmatmul.mubr.bf16.gmra.mrb[28].mxu0 %v2016_v52 }
 0x1c7   : > { %v4188_v31 = vpop.f32.mrb[0].mxu1 }
 0x1c8   : > { %v1288_v33 = vpop.f32.mrb[1].mxu1 }
 0x1c9   : > { %v4189_v39 = vpop.f32.mrb[2].mxu1 }
 0x1ca   : > { %v1291_v40 = vpop.f32.mrb[3].mxu1 }
 0x1cf   : > { %v4192_v32 = vpop.f32.mrb[4].mxu1 }
 0x1d0   : > { %v5775_v36 = vpop.f32.mrb[5].mxu1 }
 0x1d1   : > { %v5778_v41 = vpop.f32.mrb[6].mxu1 }
 0x1d2   : > { %v5787_v58 = vpop.f32.mrb[7].mxu1 }
 0x1d7   : > { %v5805_v9 = vpop.f32.mrb[8].mxu1 }
 0x1d8   : > { %v5807_v10 = vpop.f32.mrb[9].mxu1 }
 0x1d9   : > { %v5810_v44 = vpop.f32.mrb[10].mxu1 }
 0x1da   : > { %v5813_v11 = vpop.f32.mrb[11].mxu1 }
 0x1df   : > { %v5815_v12 = vpop.f32.mrb[12].mxu1 }
 0x1e0   : > { %v5817_v53 = vpop.f32.mrb[13].mxu1 }
 0x1e1   : > { %v5819_v61 = vpop.f32.mrb[14].mxu1 }
 0x1e2   : > { %v5821_v6 = vpop.f32.mrb[15].mxu1 }
 0x1e7   : > { %v5823_v48 = vpop.f32.mrb[16].mxu1 }
 0x1e8   : > { %v5825_v15 = vpop.f32.mrb[17].mxu1 }
 0x1e9   : > { %v5827_v18 = vpop.f32.mrb[18].mxu1 }
 0x1ea   : > { %v5829_v56 = vpop.f32.mrb[19].mxu1 }
 0x1ef   : > { %v5831_v57 = vpop.f32.mrb[20].mxu1 }
 0x1f0   : > { %v5833_v21 = vpop.f32.mrb[21].mxu1 }
 0x1f1   : > { %v5835_v35 = vpop.f32.mrb[22].mxu1 }
 0x1f2   : > { %v5837_v22 = vpop.f32.mrb[23].mxu1 }
 0x1f7   : > { %v5839_v24 = vpop.f32.mrb[24].mxu1 }
 0x1f8   : > { %v5841_v4 = vpop.f32.mrb[25].mxu1 }
 0x1f9   : > { %v5843_v13 = vpop.f32.mrb[26].mxu1 }
 0x1fa   : > { %v5845_v3 = vpop.f32.mrb[27].mxu1 }
 0x1ff   : > { %v5847_v16 = vpop.f32.mrb[28].mxu1 }
 0x200   : > { %v5849_v47 = vpop.f32.mrb[29].mxu1 }
 0x201   : > { %v5851_v50 = vpop.f32.mrb[30].mxu1 }
 0x202   : > { %v5853_v0 = vpop.f32.mrb[31].mxu1  ;;  %v4428_v2 = vpop.f32.mrb[0].mxu0 }
 0x203   : > { %v4576_v19 = vadd.f32 %v4428_v2, %v4188_v31  ;;  %v2632_v34 = vpop.f32.mrb[1].mxu0 }
 0x204   : > { %v4577_v38 = vadd.f32 %v2632_v34, %v1288_v33  ;;  %v4429_v52 = vpop.f32.mrb[2].mxu0 }
 0x205   : > { %v4578_v54 = vadd.f32 %v4429_v52, %v4189_v39  ;;  %v2635_v55 = vpop.f32.mrb[3].mxu0  ;;  %v5864_v17 = vadd.f32 %v4576_v19, %v5858_v23 }
 0x206   : > { %v5861_v60 = vadd.f32 %v4577_v38, %v5858_v23  ;;  %v4579_v5 = vadd.f32 %v2635_v55, %v1291_v40 }
 0x207   : > { %v5870_v1 = vadd.f32 %v4578_v54, %v5858_v23  ;;  %v2871_v40 = vmul.f32 %v5864_v17, %v5864_v17 }
 0x208   : > { %v5867_v62 = vadd.f32 %v4579_v5, %v5858_v23  ;;  %v2869_v26 = vmul.f32 %v5861_v60, %v5861_v60 }
 0x209   : > { %v2872_v37 = vmul.f32 %v5870_v1, %v5870_v1 }
 0x20a   : > { %v2830_v14 = vadd.f32 %v5867_v62, %v5861_v60  ;;  %v2870_v28 = vmul.f32 %v5867_v62, %v5867_v62  ;;  %v4432_v31 = vpop.f32.mrb[4].mxu0 }
 0x20b   : > { %v4580_v33 = vadd.f32 %v4432_v31, %v4192_v32  ;;  %v2648_v39 = vpop.f32.mrb[5].mxu0 }
 0x20c   : > { %v2831_v20 = vadd.f32 %v2830_v14, %v5864_v17  ;;  %v2901_v43 = vadd.f32 %v2870_v28, %v2869_v26  ;;  %v4581_v42 = vadd.f32 %v2648_v39, %v5775_v36  ;;  %v4433_v51 = vpop.f32.mrb[6].mxu0 }
 0x20d   : > { %v4582_v45 = vadd.f32 %v4433_v51, %v5778_v41  ;;  %v2651_v2 = vpop.f32.mrb[7].mxu0  ;;  %v5891_v52 = vadd.f32 %v4580_v33, %v5858_v23 }
 0x20e   : > { %v2902_v19 = vadd.f32 %v2901_v43, %v2871_v40  ;;  %v5886_v34 = vadd.f32 %v4581_v42, %v5858_v23  ;;  %v2832_v32 = vadd.f32 %v2831_v20, %v5870_v1  ;;  %v4583_v38 = vadd.f32 %v2651_v2, %v5787_v58 }
 0x20f   : > { %v5900_v5 = vadd.f32 %v4582_v45, %v5858_v23  ;;  %v2875_v39 = vmul.f32 %v5891_v52, %v5891_v52 }
 0x210   : > { %v2833_v36 = vadd.f32 %v2832_v32, %v5886_v34  ;;  %v2873_v54 = vmul.f32 %v5886_v34, %v5886_v34  ;;  %v2903_v55 = vadd.f32 %v2902_v19, %v2872_v37  ;;  %v5897_v41 = vadd.f32 %v4583_v38, %v5858_v23 }
 0x211   : > { %v2876_v51 = vmul.f32 %v5900_v5, %v5900_v5 }
 0x212   : > { %v2904_v26 = vadd.f32 %v2903_v55, %v2873_v54  ;;  %v2834_v14 = vadd.f32 %v2833_v36, %v5897_v41  ;;  %v2874_v58 = vmul.f32 %v5897_v41, %v5897_v41  ;;  %v4436_v28 = vpop.f32.mrb[8].mxu0 }
 0x213   : > { %v4584_v31 = vadd.f32 %v4436_v28, %v5805_v9  ;;  %v2664_v33 = vpop.f32.mrb[9].mxu0 }
 0x214   : > { %v2835_v40 = vadd.f32 %v2834_v14, %v5891_v52  ;;  %v2905_v20 = vadd.f32 %v2904_v26, %v2874_v58  ;;  %v4585_v43 = vadd.f32 %v2664_v33, %v5807_v10  ;;  %v4437_v42 = vpop.f32.mrb[10].mxu0 }
 0x215   : > { %v4586_v37 = vadd.f32 %v4437_v42, %v5810_v44  ;;  %v2667_v45 = vpop.f32.mrb[11].mxu0  ;;  %v5919_v38 = vadd.f32 %v4584_v31, %v5858_v23 }
 0x216   : > { %v2906_v2 = vadd.f32 %v2905_v20, %v2875_v39  ;;  %v5914_v19 = vadd.f32 %v4585_v43, %v5858_v23  ;;  %v2836_v9 = vadd.f32 %v2835_v40, %v5900_v5  ;;  %v4587_v32 = vadd.f32 %v2667_v45, %v5813_v11 }
 0x217   : > { %v5928_v55 = vadd.f32 %v4586_v37, %v5858_v23  ;;  %v2879_v33 = vmul.f32 %v5919_v38, %v5919_v38 }
 0x218   : > { %v2837_v10 = vadd.f32 %v2836_v9, %v5914_v19  ;;  %v2877_v36 = vmul.f32 %v5914_v19, %v5914_v19  ;;  %v2907_v54 = vadd.f32 %v2906_v2, %v2876_v51  ;;  %v5925_v44 = vadd.f32 %v4587_v32, %v5858_v23 }
 0x219   : > { %v2880_v42 = vmul.f32 %v5928_v55, %v5928_v55 }
 0x21a   : > { %v2908_v26 = vadd.f32 %v2907_v54, %v2877_v36  ;;  %v2838_v14 = vadd.f32 %v2837_v10, %v5925_v44  ;;  %v2878_v11 = vmul.f32 %v5925_v44, %v5925_v44  ;;  %v4440_v58 = vpop.f32.mrb[12].mxu0 }
 0x21b   : > { %v4588_v28 = vadd.f32 %v4440_v58, %v5815_v12  ;;  %v2680_v31 = vpop.f32.mrb[13].mxu0 }
 0x21c   : > { %v2839_v39 = vadd.f32 %v2838_v14, %v5919_v38  ;;  %v2909_v40 = vadd.f32 %v2908_v26, %v2878_v11  ;;  %v4589_v20 = vadd.f32 %v2680_v31, %v5817_v53  ;;  %v4441_v43 = vpop.f32.mrb[14].mxu0 }
 0x21d   : > { %v4590_v51 = vadd.f32 %v4441_v43, %v5819_v61  ;;  %v2683_v37 = vpop.f32.mrb[15].mxu0  ;;  %v5947_v32 = vadd.f32 %v4588_v28, %v5858_v23 }
 0x21e   : > { %v2910_v45 = vadd.f32 %v2909_v40, %v2879_v33  ;;  %v5942_v2 = vadd.f32 %v4589_v20, %v5858_v23  ;;  %v2840_v12 = vadd.f32 %v2839_v39, %v5928_v55  ;;  %v4591_v9 = vadd.f32 %v2683_v37, %v5821_v6 }
 0x21f   : > { %v5956_v54 = vadd.f32 %v4590_v51, %v5858_v23  ;;  %v2883_v31 = vmul.f32 %v5947_v32, %v5947_v32 }
 0x220   : > { %v2841_v53 = vadd.f32 %v2840_v12, %v5942_v2  ;;  %v2881_v10 = vmul.f32 %v5942_v2, %v5942_v2  ;;  %v2911_v36 = vadd.f32 %v2910_v45, %v2880_v42  ;;  %v5953_v61 = vadd.f32 %v4591_v9, %v5858_v23 }
 0x221   : > { %v2884_v43 = vmul.f32 %v5956_v54, %v5956_v54 }
 0x222   : > { %v2912_v26 = vadd.f32 %v2911_v36, %v2881_v10  ;;  %v2842_v14 = vadd.f32 %v2841_v53, %v5953_v61  ;;  %v2882_v6 = vmul.f32 %v5953_v61, %v5953_v61  ;;  %v4444_v11 = vpop.f32.mrb[16].mxu0 }
 0x223   : > { %v4592_v58 = vadd.f32 %v4444_v11, %v5823_v48  ;;  %v2696_v28 = vpop.f32.mrb[17].mxu0 }
 0x224   : > { %v2843_v33 = vadd.f32 %v2842_v14, %v5947_v32  ;;  %v2913_v39 = vadd.f32 %v2912_v26, %v2882_v6  ;;  %v4593_v40 = vadd.f32 %v2696_v28, %v5825_v15  ;;  %v4445_v20 = vpop.f32.mrb[18].mxu0 }
 0x225   : > { %v4594_v42 = vadd.f32 %v4445_v20, %v5827_v18  ;;  %v2699_v51 = vpop.f32.mrb[19].mxu0  ;;  %v5975_v9 = vadd.f32 %v4592_v58, %v5858_v23 }
 0x226   : > { %v2914_v37 = vadd.f32 %v2913_v39, %v2883_v31  ;;  %v5970_v45 = vadd.f32 %v4593_v40, %v5858_v23  ;;  %v2844_v48 = vadd.f32 %v2843_v33, %v5956_v54  ;;  %v4595_v12 = vadd.f32 %v2699_v51, %v5829_v56 }
 0x227   : > { %v5984_v36 = vadd.f32 %v4594_v42, %v5858_v23  ;;  %v2887_v28 = vmul.f32 %v5975_v9, %v5975_v9 }
 0x228   : > { %v2845_v15 = vadd.f32 %v2844_v48, %v5970_v45  ;;  %v2885_v53 = vmul.f32 %v5970_v45, %v5970_v45  ;;  %v2915_v10 = vadd.f32 %v2914_v37, %v2884_v43  ;;  %v5981_v18 = vadd.f32 %v4595_v12, %v5858_v23 }
 0x229   : > { %v2888_v20 = vmul.f32 %v5984_v36, %v5984_v36 }
 0x22a   : > { %v2916_v26 = vadd.f32 %v2915_v10, %v2885_v53  ;;  %v2846_v14 = vadd.f32 %v2845_v15, %v5981_v18  ;;  %v2886_v56 = vmul.f32 %v5981_v18, %v5981_v18  ;;  %v4448_v6 = vpop.f32.mrb[20].mxu0 }
 0x22b   : > { %v4596_v11 = vadd.f32 %v4448_v6, %v5831_v57  ;;  %v2712_v58 = vpop.f32.mrb[21].mxu0 }
 0x22c   : > { %v2847_v31 = vadd.f32 %v2846_v14, %v5975_v9  ;;  %v2917_v33 = vadd.f32 %v2916_v26, %v2886_v56  ;;  %v4597_v39 = vadd.f32 %v2712_v58, %v5833_v21  ;;  %v4449_v40 = vpop.f32.mrb[22].mxu0 }
 0x22d   : > { %v4598_v43 = vadd.f32 %v4449_v40, %v5835_v35  ;;  %v2715_v42 = vpop.f32.mrb[23].mxu0  ;;  %v6003_v12 = vadd.f32 %v4596_v11, %v5858_v23 }
 0x22e   : > { %v2918_v51 = vadd.f32 %v2917_v33, %v2887_v28  ;;  %v5998_v37 = vadd.f32 %v4597_v39, %v5858_v23  ;;  %v2848_v57 = vadd.f32 %v2847_v31, %v5984_v36  ;;  %v4599_v48 = vadd.f32 %v2715_v42, %v5837_v22 }
 0x22f   : > { %v6012_v10 = vadd.f32 %v4598_v43, %v5858_v23  ;;  %v2891_v58 = vmul.f32 %v6003_v12, %v6003_v12 }
 0x230   : > { %v2849_v21 = vadd.f32 %v2848_v57, %v5998_v37  ;;  %v2889_v15 = vmul.f32 %v5998_v37, %v5998_v37  ;;  %v2919_v53 = vadd.f32 %v2918_v51, %v2888_v20  ;;  %v6009_v35 = vadd.f32 %v4599_v48, %v5858_v23 }
 0x231   : > { %v2892_v40 = vmul.f32 %v6012_v10, %v6012_v10 }
 0x232   : > { %v2920_v26 = vadd.f32 %v2919_v53, %v2889_v15  ;;  %v2850_v14 = vadd.f32 %v2849_v21, %v6009_v35  ;;  %v2890_v22 = vmul.f32 %v6009_v35, %v6009_v35  ;;  %v4452_v56 = vpop.f32.mrb[24].mxu0 }
 0x233   : > { %v4600_v6 = vadd.f32 %v4452_v56, %v5839_v24  ;;  %v2728_v11 = vpop.f32.mrb[25].mxu0 }
 0x234   : > { %v2851_v28 = vadd.f32 %v2850_v14, %v6003_v12  ;;  %v2921_v31 = vadd.f32 %v2920_v26, %v2890_v22  ;;  %v4601_v33 = vadd.f32 %v2728_v11, %v5841_v4  ;;  %v4453_v39 = vpop.f32.mrb[26].mxu0 }
 0x235   : > { %v4602_v20 = vadd.f32 %v4453_v39, %v5843_v13  ;;  %v2731_v43 = vpop.f32.mrb[27].mxu0  ;;  %v6037_v13 = vadd.f32 %v4600_v6, %v5858_v23 }
 0x236   : > { %v2922_v42 = vadd.f32 %v2921_v31, %v2891_v58  ;;  %v6026_v51 = vadd.f32 %v4601_v33, %v5858_v23  ;;  %v2852_v24 = vadd.f32 %v2851_v28, %v6012_v10  ;;  %v4603_v57 = vadd.f32 %v2731_v43, %v5845_v3 }
 0x237   : > { %v6041_v14 = vadd.f32 %v4602_v20, %v5858_v23 }
 0x238   : > { %v2853_v48 = vadd.f32 %v2852_v24, %v6026_v51  ;;  %v2893_v4 = vmul.f32 %v6026_v51, %v6026_v51  ;;  %v2923_v21 = vadd.f32 %v2922_v42, %v2892_v40  ;;  %v6034_v15 = vadd.f32 %v4603_v57, %v5858_v23 }
 0x23a   : > { %v2854_v53 = vadd.f32 %v2853_v48, %v6034_v15  ;;  %v4456_v26 = vpop.f32.mrb[28].mxu0  ;;  %v2924_v56 = vadd.f32 %v2923_v21, %v2893_v4  ;;  %v2894_v58 = vmul.f32 %v6034_v15, %v6034_v15  ;;  %v2896_v4 = vmul.f32 %v6041_v14, %v6041_v14 }
 0x23b   : > { %v4604_v3 = vadd.f32 %v4456_v26, %v5847_v16  ;;  %v2744_v22 = vpop.f32.mrb[29].mxu0 }
 0x23c   : > { %v2855_v11 = vadd.f32 %v2854_v53, %v6037_v13  ;;  %v4605_v28 = vadd.f32 %v2744_v22, %v5849_v47  ;;  %v4457_v31 = vpop.f32.mrb[30].mxu0  ;;  %v2925_v20 = vadd.f32 %v2924_v56, %v2894_v58  ;;  %v2895_v47 = vmul.f32 %v6037_v13, %v6037_v13 }
 0x23d   : > { %v4606_v6 = vadd.f32 %v4457_v31, %v5851_v50  ;;  %v2747_v33 = vpop.f32.mrb[31].mxu0  ;;  %v6061_v24 = vadd.f32 %v4604_v3, %v5858_v23 }
 0x23e   : > { %v6050_v39 = vadd.f32 %v4605_v28, %v5858_v23  ;;  %v2856_v40 = vadd.f32 %v2855_v11, %v6041_v14  ;;  %v4607_v16 = vadd.f32 %v2747_v33, %v5853_v0  ;;  %v2926_v57 = vadd.f32 %v2925_v20, %v2895_v47 }
 0x23f   : > { %v6065_v48 = vadd.f32 %v4606_v6, %v5858_v23  ;;  %v2899_v6 = vmul.f32 %v6061_v24, %v6061_v24 }
 0x240   : > { %v2857_v43 = vadd.f32 %v2856_v40, %v6050_v39  ;;  %v6056_v42 = vadd.f32 %v4607_v16, %v5858_v23  ;;  %v2897_v53 = vmul.f32 %v6050_v39, %v6050_v39  ;;  %v2927_v26 = vadd.f32 %v2926_v57, %v2896_v4 }
 0x241   : > { %v2900_v20 = vmul.f32 %v6065_v48, %v6065_v48 }
 0x242   : > { %v2858_v50 = vadd.f32 %v2857_v43, %v6056_v42  ;;  %v2928_v56 = vadd.f32 %v2927_v26, %v2897_v53  ;;  %v2898_v58 = vmul.f32 %v6056_v42, %v6056_v42 }
 0x244   : > { %v2859_v0 = vadd.f32 %v2858_v50, %v6061_v24  ;;  %v2929_v28 = vadd.f32 %v2928_v56, %v2898_v58 }
 0x246   : > { %v2860_v21 = vadd.f32 %v2859_v0, %v6065_v48  ;;  %v2930_v40 = vadd.f32 %v2929_v28, %v2899_v6 }
 0x248   : > { %v2861_v22 = vrot.slane %v2860_v21, 4  ;;  %v2931_v43 = vadd.f32 %v2930_v40, %v2900_v20 }
 0x24a   : > { %v2862_v3 = vadd.f32 %v2861_v22, %v2860_v21  ;;  %v2932_v47 = vrot.slane %v2931_v43, 4 }
 0x24c   : > { %v2863_v11 = vrot.slane %v2862_v3, 2  ;;  %v2933_v50 = vadd.f32 %v2932_v47, %v2931_v43 }
 0x24e   : > { %v2864_v23 = vadd.f32 %v2863_v11, %v2862_v3 }
 0x250   : > { %v2865_v31 = vrot.slane %v2864_v23, 1 }
 0x252   : > { %v2866_v33 = vadd.f32 %v2865_v31, %v2864_v23 }
 0x254   : > { %v2868_v16 = vmul.f32 0.00390625, %v2866_v33 }
 0x256   : > { %4491 = vmatmul.mubr.f32.vlgmr.msra.gmra.mrb[32].mxu1 %v2868_v16 }
 0x257   : > { %4554 = vmatpush3.bf16.msra.mxu1 %v5723_v63  ;;  %4525 = vmatprep.mubr.msk.f32.mxu1 %vm5056_vm0, %v5797_v46  ;;  %v2934_v63 = vrot.slane %v2933_v50, 2 }
 0x258   : > { %4555 = vmatprep.subr.bf16.mxu1 %v5055_v7 }
 0x259   : > { %v2935_v46 = vadd.f32 %v2934_v63, %v2933_v50 }
 0x25b   : > { %4557 = vmatpush3.bf16.msra.mxu1 %v5733_v8  ;;  %v2936_v8 = vrot.slane %v2935_v46, 1 }
 0x25c   : > { %4558 = vmatprep.subr.bf16.mxu1 %v5055_v7 }
 0x25f   : > { %4560 = vmatpush3.bf16.msra.mxu1 %v5743_v25  ;;  %v2937_v25 = vadd.f32 %v2936_v8, %v2935_v46 }
 0x260   : > { %4561 = vmatprep.subr.bf16.mxu1 %v5055_v7 }
 0x263   : > { %4563 = vmatpush3.bf16.msra.mxu1 %v5753_v27  ;;  %v2938_v27 = vmul.f32 0.00390625, %v2937_v25 }
 0x264   : > { %4564 = vmatprep.subr.bf16.mxu1 %v5055_v7 }
 0x267   : > { %4566 = vmatpush3.bf16.msra.mxu1 %v5763_v29  ;;  %v3097_v29 = vlaneseq }
 0x268   : > { %4567 = vmatprep.subr.bf16.mxu1 %v5055_v7 }
 0x269   : > { %v3098_v4 = vshrl.u32 %v3097_v29, 7 }
 0x26b   : > { %4569 = vmatpush3.bf16.msra.mxu1 %v5773_v30  ;;  %v3099_v26 = vsub.s32 0, %v3098_v4 }
 0x26c   : > { %4570 = vmatprep.subr.bf16.mxu1 %v5055_v7 }
 0x26f   : > { %4572 = vmatpush3.bf16.msra.mxu1 %v5789_v59 }
 0x270   : > { %4573 = vmatprep.subr.bf16.mxu1 %v5055_v7 }
 0x273   : > { %4575 = vmatpush3.bf16.msra.mxu1 %v5802_v49 }
 0x276   : > { %4526 = vmatmul.mubr.f32.vlgmr.msra.gmra.mrb[34].mxu1 %v2938_v27 }
 0x329   : > { %v3021_v57 = vpop.f32.mrb[32].mxu1 }
 0x32a   : > { %v4492_v0 = vpop.f32.mrb[33].mxu1  ;;  %v3095_v21 = vmul.f32 %v3021_v57, %v3021_v57  ;;  %v6096_v56 = vrot.slane %v3021_v57, %v3099_v26 }
 0x32c   : > { %v3101_v7 = vsub.f32 %v5861_v60, %v6096_v56  ;;  %v3102_v59 = vsub.f32 %v5867_v62, %v6096_v56  ;;  %v3103_v49 = vsub.f32 %v5864_v17, %v6096_v56  ;;  %v3104_v11 = vsub.f32 %v5870_v1, %v6096_v56 }
 0x32d   : > { %v3105_v58 = vsub.f32 %v5886_v34, %v6096_v56  ;;  %v3106_v23 = vsub.f32 %v5897_v41, %v6096_v56  ;;  %v3107_v28 = vsub.f32 %v5891_v52, %v6096_v56  ;;  %v3108_v60 = vsub.f32 %v5900_v5, %v6096_v56 }
 0x32e   : > { %v3109_v62 = vsub.f32 %v5914_v19, %v6096_v56  ;;  %v3110_v17 = vsub.f32 %v5925_v44, %v6096_v56  ;;  %v3111_v1 = vsub.f32 %v5919_v38, %v6096_v56  ;;  %v3112_v34 = vsub.f32 %v5928_v55, %v6096_v56 }
 0x32f   : > { %v3113_v41 = vsub.f32 %v5942_v2, %v6096_v56  ;;  %v3114_v52 = vsub.f32 %v5953_v61, %v6096_v56  ;;  %v3115_v5 = vsub.f32 %v5947_v32, %v6096_v56  ;;  %v3116_v19 = vsub.f32 %v5956_v54, %v6096_v56 }
 0x330   : > { %v3117_v44 = vsub.f32 %v5970_v45, %v6096_v56  ;;  %v3118_v38 = vsub.f32 %v5981_v18, %v6096_v56  ;;  %v3119_v55 = vsub.f32 %v5975_v9, %v6096_v56  ;;  %v3120_v2 = vsub.f32 %v5984_v36, %v6096_v56 }
 0x331   : > { %v3121_v61 = vsub.f32 %v5998_v37, %v6096_v56  ;;  %v3122_v32 = vsub.f32 %v6009_v35, %v6096_v56  ;;  %v3123_v54 = vsub.f32 %v6003_v12, %v6096_v56  ;;  %v3124_v45 = vsub.f32 %v6012_v10, %v6096_v56 }
 0x332   : > { %v3125_v18 = vsub.f32 %v6026_v51, %v6096_v56  ;;  %v3126_v9 = vsub.f32 %v6034_v15, %v6096_v56  ;;  %v3127_v36 = vsub.f32 %v6037_v13, %v6096_v56  ;;  %v3128_v37 = vsub.f32 %v6041_v14, %v6096_v56 }
 0x333   : > { %v3129_v35 = vsub.f32 %v6050_v39, %v6096_v56  ;;  %v3130_v12 = vsub.f32 %v6056_v42, %v6096_v56  ;;  %v3131_v10 = vsub.f32 %v6061_v24, %v6096_v56  ;;  %v3132_v51 = vsub.f32 %v6065_v48, %v6096_v56 }
 0x349   : > { %v3091_v53 = vpop.f32.mrb[34].mxu1 }
 0x34a   : > { %v3096_v30 = vsub.f32 %v3091_v53, %v3095_v21  ;;  %v4527_v22 = vpop.f32.mrb[35].mxu1 }
 0x34c   : > { %v3133_v3 = vadd.f32 1e-05, %v3096_v30 }
 0x34e   : > { %4915 = vrsqrt.f32 %v3133_v3 }
 0x358   : > { %v4916_v31 = vpop.eup %4915 }
 0x359   : > { %v3138_v6 = vrot.slane %v4916_v31, %v3099_v26 }
 0x35b   : > { %v3139_v15 = vmul.f32 %v3138_v6, %v3101_v7  ;;  %v3140_v33 = vmul.f32 %v3138_v6, %v3102_v59  ;;  %v3141_v40 = vmul.f32 %v3138_v6, %v3103_v49  ;;  %v3142_v13 = vmul.f32 %v3138_v6, %v3104_v11  ;;  %v3770_v49 = vld [vmem:[%s6471_s3] ss:$0 sm:$0xff] }
 0x35c   : > { %v3143_v16 = vmul.f32 %v3138_v6, %v3105_v58  ;;  %v3144_v20 = vmul.f32 %v3138_v6, %v3106_v23  ;;  %v3145_v14 = vmul.f32 %v3138_v6, %v3107_v28  ;;  %v3146_v43 = vmul.f32 %v3138_v6, %v3108_v60 }
 0x35d   : > { %v3147_v47 = vmul.f32 %v3138_v6, %v3109_v62  ;;  %v3148_v50 = vmul.f32 %v3138_v6, %v3110_v17  ;;  %v3149_v39 = vmul.f32 %v3138_v6, %v3111_v1  ;;  %v3150_v63 = vmul.f32 %v3138_v6, %v3112_v34  ;;  %v6168_v34 = vld [vmem:[%s6472_s4] ss:$0 sm:$0xff] }
 0x35e   : > { %v3151_v46 = vmul.f32 %v3138_v6, %v3113_v41  ;;  %v3152_v42 = vmul.f32 %v3138_v6, %v3114_v52  ;;  %v3153_v8 = vmul.f32 %v3138_v6, %v3115_v5  ;;  %v3154_v25 = vmul.f32 %v3138_v6, %v3116_v19 }
 0x35f   : > { %v3155_v24 = vmul.f32 %v3138_v6, %v3117_v44  ;;  %v3156_v27 = vmul.f32 %v3138_v6, %v3118_v38  ;;  %v3157_v57 = vmul.f32 %v3138_v6, %v3119_v55  ;;  %v3158_v48 = vmul.f32 %v3138_v6, %v3120_v2 }
 0x360   : > { %v3159_v0 = vmul.f32 %v3138_v6, %v3121_v61  ;;  %v3160_v29 = vmul.f32 %v3138_v6, %v3122_v32  ;;  %v3161_v4 = vmul.f32 %v3138_v6, %v3123_v54  ;;  %v3162_v21 = vmul.f32 %v3138_v6, %v3124_v45 }
 0x361   : > { %v3163_v53 = vmul.f32 %v3138_v6, %v3125_v18  ;;  %v3164_v26 = vmul.f32 %v3138_v6, %v3126_v9  ;;  %v3165_v30 = vmul.f32 %v3138_v6, %v3127_v36  ;;  %v3166_v22 = vmul.f32 %v3138_v6, %v3128_v37 }
 0x362   : > { %v3167_v3 = vmul.f32 %v3138_v6, %v3129_v35  ;;  %v3168_v56 = vmul.f32 %v3138_v6, %v3130_v12  ;;  %v3169_v7 = vmul.f32 %v3138_v6, %v3131_v10  ;;  %v3170_v59 = vmul.f32 %v3138_v6, %v3132_v51 }
 0x363   : > { %v3178_v11 = vmul.f32 %v3770_v49, %v3139_v15  ;;  %v3179_v58 = vmul.f32 %v3770_v49, %v3140_v33  ;;  %v3180_v23 = vmul.f32 %v3770_v49, %v3141_v40  ;;  %v3181_v28 = vmul.f32 %v3770_v49, %v3142_v13 }
 0x364   : > { %v3182_v60 = vmul.f32 %v3770_v49, %v3143_v16  ;;  %v3183_v62 = vmul.f32 %v3770_v49, %v3144_v20  ;;  %v3184_v17 = vmul.f32 %v3770_v49, %v3145_v14  ;;  %v3185_v1 = vmul.f32 %v3770_v49, %v3146_v43 }
 0x365   : > { %v3186_v41 = vmul.f32 %v3770_v49, %v3147_v47  ;;  %v3187_v52 = vmul.f32 %v3770_v49, %v3148_v50  ;;  %v3188_v5 = vmul.f32 %v3770_v49, %v3149_v39  ;;  %v3189_v19 = vmul.f32 %v3770_v49, %v3150_v63 }
 0x366   : > { %v3190_v44 = vmul.f32 %v3770_v49, %v3151_v46  ;;  %v3191_v38 = vmul.f32 %v3770_v49, %v3152_v42  ;;  %v3192_v55 = vmul.f32 %v3770_v49, %v3153_v8  ;;  %v3193_v2 = vmul.f32 %v3770_v49, %v3154_v25 }
 0x367   : > { %v3194_v61 = vmul.f32 %v3770_v49, %v3155_v24  ;;  %v6171_v31 = vadd.f32 %v6168_v34, %v3178_v11  ;;  %v6174_v32 = vadd.f32 %v6168_v34, %v3179_v58  ;;  %v6177_v54 = vadd.f32 %v6168_v34, %v3180_v23 }
 0x368   : > { %v3195_v45 = vmul.f32 %v3770_v49, %v3156_v27  ;;  %v3196_v18 = vmul.f32 %v3770_v49, %v3157_v57  ;;  %v3197_v9 = vmul.f32 %v3770_v49, %v3158_v48  ;;  %v6180_v36 = vadd.f32 %v6168_v34, %v3181_v28 }
 0x369   : > { %v6182_v37 = vmul.f32 %v3770_v49, %v3159_v0  ;;  %v6184_v6 = vmul.f32 %v3770_v49, %v3160_v29  ;;  %v6186_v35 = vmul.f32 %v3770_v49, %v3161_v4  ;;  %v6189_v12 = vadd.f32 %v6168_v34, %v3182_v60 }
 0x36a   : > { %v6191_v10 = vmul.f32 %v3770_v49, %v3162_v21  ;;  %v6193_v51 = vmul.f32 %v3770_v49, %v3163_v53  ;;  %v6196_v15 = vadd.f32 %v6168_v34, %v3183_v62  ;;  %v6199_v33 = vadd.f32 %v6168_v34, %v3184_v17 }
 0x36b   : > { %v6201_v40 = vmul.f32 %v3770_v49, %v3164_v26  ;;  %v3249_v13 = vsub.f32 0.0, %v6171_v31  ;;  %v3250_v16 = vsub.f32 0.0, %v6174_v32  ;;  %v3251_v20 = vsub.f32 0.0, %v6177_v54 }
 0x36c   : > { %v6206_v14 = vmul.f32 %v3770_v49, %v3165_v30  ;;  %v6208_v43 = vmul.f32 %v3770_v49, %v3166_v22  ;;  %v6211_v47 = vadd.f32 %v6168_v34, %v3185_v1  ;;  %v3252_v50 = vsub.f32 0.0, %v6180_v36 }
 0x36d   : > { %v6214_v39 = vmul.f32 %v3770_v49, %v3167_v3  ;;  %v6216_v63 = vmul.f32 %v3770_v49, %v3168_v56  ;;  %v6219_v46 = vadd.f32 %v6168_v34, %v3186_v41  ;;  %v3253_v42 = vsub.f32 0.0, %v6189_v12 }
 0x36e   : > { %v6222_v8 = vmul.f32 %v3770_v49, %v3169_v7  ;;  %v6225_v25 = vadd.f32 %v6168_v34, %v3187_v52  ;;  %v3254_v24 = vsub.f32 0.0, %v6196_v15  ;;  %v3255_v27 = vsub.f32 0.0, %v6199_v33 }
 0x36f   : > { %v6230_v57 = vadd.f32 %v6168_v34, %v3188_v5  ;;  %v3281_v48 = vmul.f32 1.442695, %v3249_v13  ;;  %v3283_v0 = vmul.f32 1.442695, %v3250_v16  ;;  %v3285_v29 = vmul.f32 1.442695, %v3251_v20 }
 0x370   : > { %v6232_v4 = vmul.f32 %v3770_v49, %v3170_v59  ;;  %v6235_v21 = vadd.f32 %v6168_v34, %v3189_v19  ;;  %v3256_v53 = vsub.f32 0.0, %v6211_v47  ;;  %v3287_v26 = vmul.f32 1.442695, %v3252_v50 }
 0x371   : > { %v6239_v30 = vadd.f32 %v6168_v34, %v3190_v44  ;;  %v3257_v22 = vsub.f32 0.0, %v6219_v46  ;;  %4917 = vpow2.f32 %v3281_v48  ;;  %v3289_v3 = vmul.f32 1.442695, %v3253_v42 }
 0x372   : > { %v6243_v56 = vadd.f32 %v6168_v34, %v3191_v38  ;;  %v3258_v7 = vsub.f32 0.0, %v6225_v25  ;;  %4919 = vpow2.f32 %v3283_v0  ;;  %v3291_v59 = vmul.f32 1.442695, %v3254_v24 }
 0x373   : > { %v6247_v49 = vadd.f32 %v6168_v34, %v3192_v55  ;;  %v3259_v11 = vsub.f32 0.0, %v6230_v57  ;;  %4921 = vpow2.f32 %v3285_v29  ;;  %v3293_v58 = vmul.f32 1.442695, %v3255_v27 }
 0x374   : > { %v6251_v23 = vadd.f32 %v6168_v34, %v3193_v2  ;;  %v3260_v28 = vsub.f32 0.0, %v6235_v21  ;;  %4923 = vpow2.f32 %v3287_v26  ;;  %v3295_v60 = vmul.f32 1.442695, %v3256_v53 }
 0x375   : > { %v6255_v62 = vadd.f32 %v6168_v34, %v3194_v61  ;;  %v3261_v17 = vsub.f32 0.0, %v6239_v30  ;;  %4925 = vpow2.f32 %v3289_v3  ;;  %v3297_v1 = vmul.f32 1.442695, %v3257_v22 }
 0x376   : > { %v6259_v41 = vadd.f32 %v6168_v34, %v3195_v45  ;;  %v3262_v52 = vsub.f32 0.0, %v6243_v56  ;;  %4927 = vpow2.f32 %v3291_v59  ;;  %v3299_v5 = vmul.f32 1.442695, %v3258_v7 }
 0x377   : > { %v6263_v19 = vadd.f32 %v6168_v34, %v3196_v18  ;;  %v3263_v44 = vsub.f32 0.0, %v6247_v49  ;;  %4929 = vpow2.f32 %v3293_v58  ;;  %v3301_v38 = vmul.f32 1.442695, %v3259_v11 }
 0x378   : > { %v6267_v55 = vadd.f32 %v6168_v34, %v3197_v9  ;;  %v3264_v2 = vsub.f32 0.0, %v6251_v23  ;;  %4931 = vpow2.f32 %v3295_v60  ;;  %v3303_v61 = vmul.f32 1.442695, %v3260_v28 }
 0x379   : > { %v6272_v45 = vadd.f32 %v6168_v34, %v6182_v37  ;;  %v3265_v13 = vsub.f32 0.0, %v6255_v62  ;;  %4933 = vpow2.f32 %v3297_v1  ;;  %v3305_v18 = vmul.f32 1.442695, %v3261_v17 }
 0x37a   : > { %v6277_v16 = vadd.f32 %v6168_v34, %v6184_v6  ;;  %v3266_v20 = vsub.f32 0.0, %v6259_v41  ;;  %4935 = vpow2.f32 %v3299_v5  ;;  %v3307_v9 = vmul.f32 1.442695, %v3262_v52 }
 0x37b   : > { %v6280_v50 = vpop.eup %4917  ;;  %v6284_v42 = vadd.f32 %v6168_v34, %v6186_v35  ;;  %v3267_v37 = vsub.f32 0.0, %v6263_v19  ;;  %4937 = vpow2.f32 %v3301_v38  ;;  %v3309_v24 = vmul.f32 1.442695, %v3263_v44 }
 0x37c   : > { %v6287_v27 = vpop.eup %4919  ;;  %v6291_v6 = vadd.f32 %v6168_v34, %v6191_v10  ;;  %v3268_v48 = vsub.f32 0.0, %v6267_v55  ;;  %4939 = vpow2.f32 %v3303_v61  ;;  %v3311_v0 = vmul.f32 1.442695, %v3264_v2 }
 0x37d   : > { %v6294_v29 = vpop.eup %4921  ;;  %v6298_v35 = vadd.f32 %v6168_v34, %v6193_v51  ;;  %v3269_v53 = vsub.f32 0.0, %v6272_v45  ;;  %4941 = vpow2.f32 %v3305_v18  ;;  %v3313_v26 = vmul.f32 1.442695, %v3265_v13 }
 0x37e   : > { %v6301_v22 = vpop.eup %4923  ;;  %v6305_v10 = vadd.f32 %v6168_v34, %v6201_v40  ;;  %v3270_v3 = vsub.f32 0.0, %v6277_v16  ;;  %4943 = vpow2.f32 %v3307_v9  ;;  %v3315_v7 = vmul.f32 1.442695, %v3266_v20 }
 0x37f   : > { %v6308_v59 = vpop.eup %4925  ;;  %v6312_v51 = vadd.f32 %v6168_v34, %v6206_v14  ;;  %v3271_v11 = vsub.f32 0.0, %v6284_v42  ;;  %4945 = vpow2.f32 %v3309_v24  ;;  %v3317_v58 = vmul.f32 1.442695, %v3267_v37 }
 0x380   : > { %v6315_v28 = vpop.eup %4927  ;;  %v6319_v40 = vadd.f32 %v6168_v34, %v6208_v43  ;;  %v3272_v60 = vsub.f32 0.0, %v6291_v6  ;;  %4947 = vpow2.f32 %v3311_v0  ;;  %v3319_v17 = vmul.f32 1.442695, %v3268_v48 }
 0x381   : > { %v6322_v1 = vpop.eup %4929  ;;  %v6326_v14 = vadd.f32 %v6168_v34, %v6214_v39  ;;  %v3273_v52 = vsub.f32 0.0, %v6298_v35  ;;  %4949 = vpow2.f32 %v3313_v26  ;;  %v3321_v5 = vmul.f32 1.442695, %v3269_v53 }
 0x382   : > { %v6329_v44 = vpop.eup %4931  ;;  %v6333_v43 = vadd.f32 %v6168_v34, %v6216_v63  ;;  %v3274_v38 = vsub.f32 0.0, %v6305_v10  ;;  %4951 = vpow2.f32 %v3315_v7  ;;  %v3323_v2 = vmul.f32 1.442695, %v3270_v3 }
 0x383   : > { %6479 = vst [vmem:[#allocation3_spill] sm:$0xff] %v6326_v14  ;;  %v4934_v61 = vpop.eup %4933  ;;  %v6338_v13 = vadd.f32 %v6168_v34, %v6222_v8  ;;  %v3275_v39 = vsub.f32 0.0, %v6312_v51  ;;  %4953 = vpow2.f32 %v3317_v58  ;;  %v3325_v18 = vmul.f32 1.442695, %v3271_v11 }
 0x384   : > { %6480 = vst [vmem:[#allocation4_spill] sm:$0xff] %v6333_v43  ;;  %v4936_v20 = vpop.eup %4935  ;;  %v6343_v9 = vadd.f32 %v6168_v34, %v6232_v4  ;;  %v3276_v63 = vsub.f32 0.0, %v6319_v40  ;;  %4955 = vpow2.f32 %v3319_v17  ;;  %v3327_v37 = vmul.f32 1.442695, %v3272_v60 }
 0x385   : > { %6481 = vst [vmem:[#allocation5_spill] sm:$0xff] %v6338_v13  ;;  %v4938_v24 = vpop.eup %4937  ;;  %v3277_v48 = vsub.f32 0.0, %v6326_v14  ;;  %4957 = vpow2.f32 %v3321_v5  ;;  %v3329_v0 = vmul.f32 1.442695, %v3273_v52  ;;  %v3278_v53 = vsub.f32 0.0, %v6333_v43 }
 0x386   : > { %v4940_v8 = vpop.eup %4939  ;;  %4959 = vpow2.f32 %v3323_v2  ;;  %v3331_v26 = vmul.f32 1.442695, %v3274_v38  ;;  %v3279_v7 = vsub.f32 0.0, %v6338_v13  ;;  %v3333_v34 = vmul.f32 1.442695, %v3275_v39 }
 0x387   : > { %v4942_v3 = vpop.eup %4941  ;;  %4961 = vpow2.f32 %v3325_v18  ;;  %v3280_v11 = vsub.f32 0.0, %v6343_v9  ;;  %v3335_v58 = vmul.f32 1.442695, %v3276_v63  ;;  %v3337_v17 = vmul.f32 1.442695, %v3277_v48 }
 0x388   : > { %v4944_v4 = vpop.eup %4943  ;;  %4963 = vpow2.f32 %v3327_v37  ;;  %v3339_v52 = vmul.f32 1.442695, %v3278_v53  ;;  %v3341_v2 = vmul.f32 1.442695, %v3279_v7  ;;  %v3345_v39 = vadd.f32 1.0, %v6280_v50 }
 0x389   : > { %v4946_v60 = vpop.eup %4945  ;;  %4965 = vpow2.f32 %v3329_v0  ;;  %v3343_v43 = vmul.f32 1.442695, %v3280_v11  ;;  %v3346_v63 = vadd.f32 1.0, %v6287_v27  ;;  %v3347_v48 = vadd.f32 1.0, %v6294_v29 }
 0x38a   : > { %v4948_v5 = vpop.eup %4947  ;;  %4967 = vpow2.f32 %v3331_v26  ;;  %v3348_v53 = vadd.f32 1.0, %v6301_v22  ;;  %v3349_v7 = vadd.f32 1.0, %v6308_v59  ;;  %v3351_v11 = vadd.f32 1.0, %v6322_v1 }
 0x38b   : > { %v4950_v14 = vpop.eup %4949  ;;  %4969 = vpow2.f32 %v3333_v34  ;;  %v3350_v34 = vadd.f32 1.0, %v6315_v28 }
 0x38c   : > { %v4952_v38 = vpop.eup %4951  ;;  %4971 = vpow2.f32 %v3335_v58  ;;  %v3353_v58 = vadd.f32 1.0, %v4934_v61  ;;  %v3358_v61 = vadd.f32 1.0, %v4944_v4 }
 0x38d   : > { %v4954_v13 = vpop.eup %4953  ;;  %4973 = vpow2.f32 %v3337_v17  ;;  %v3354_v17 = vadd.f32 1.0, %v4936_v20  ;;  %v3359_v20 = vadd.f32 1.0, %v4946_v60 }
 0x38e   : > { %v4956_v18 = vpop.eup %4955  ;;  %4975 = vpow2.f32 %v3339_v52  ;;  %v3355_v52 = vadd.f32 1.0, %v4938_v24 }
 0x38f   : > { %v6352_v37 = vpop.eup %4957  ;;  %4977 = vpow2.f32 %v3341_v2  ;;  %v3356_v2 = vadd.f32 1.0, %v4940_v8  ;;  %v3360_v8 = vadd.f32 1.0, %v4948_v5 }
 0x390   : > { %v6355_v0 = vpop.eup %4959  ;;  %4979 = vpow2.f32 %v3343_v43  ;;  %v3352_v43 = vadd.f32 1.0, %v6329_v44  ;;  %v3357_v44 = vadd.f32 1.0, %v4942_v3 }
 0x391   : > { %v6358_v26 = vpop.eup %4961  ;;  %4981 = vrcp.f32 %v3345_v39 }
 0x392   : > { %v6361_v50 = vpop.eup %4963  ;;  %4983 = vrcp.f32 %v3346_v63 }
 0x393   : > { %v6364_v27 = vpop.eup %4965  ;;  %4985 = vrcp.f32 %v3347_v48 }
 0x394   : > { %v6367_v29 = vpop.eup %4967  ;;  %4987 = vrcp.f32 %v3348_v53 }
 0x395   : > { %v6370_v22 = vpop.eup %4969  ;;  %4989 = vrcp.f32 %v3349_v7  ;;  %v3361_v7 = vadd.f32 1.0, %v4950_v14  ;;  %v3364_v14 = vadd.f32 1.0, %v4956_v18 }
 0x396   : > { %v6372_v59 = vpop.eup %4971  ;;  %4991 = vrcp.f32 %v3350_v34 }
 0x397   : > { %v6374_v28 = vpop.eup %4973  ;;  %4993 = vrcp.f32 %v3351_v11  ;;  %v3362_v11 = vadd.f32 1.0, %v4952_v38  ;;  %v3365_v38 = vadd.f32 1.0, %v6352_v37 }
 0x398   : > { %v6376_v1 = vpop.eup %4975  ;;  %4995 = vrcp.f32 %v3352_v43 }
 0x399   : > { %v6378_v39 = vpop.eup %4977  ;;  %4997 = vrcp.f32 %v3353_v58  ;;  %v3363_v58 = vadd.f32 1.0, %v4954_v13 }
 0x39a   : > { %v6380_v63 = vpop.eup %4979  ;;  %4999 = vrcp.f32 %v3354_v17 }
 0x39b   : > { %v4982_v48 = vpop.eup %4981  ;;  %5001 = vrcp.f32 %v3355_v52 }
 0x39c   : > { %v4984_v24 = vpop.eup %4983  ;;  %5003 = vrcp.f32 %v3356_v2  ;;  %v3441_v3 = vmul.f32 %v4982_v48, %v6171_v31 }
 0x39d   : > { %v4986_v53 = vpop.eup %4985  ;;  %5005 = vrcp.f32 %v3357_v44  ;;  %v3442_v4 = vmul.f32 %v4984_v24, %v6174_v32 }
 0x39e   : > { %v4988_v34 = vpop.eup %4987  ;;  %5007 = vrcp.f32 %v3358_v61  ;;  %v3443_v43 = vmul.f32 %v4986_v53, %v6177_v54  ;;  %3473 = vst [vmem:[%s6387_s20] sm:$0xff] %v3441_v3 }
 0x39f   : > { %v4990_v60 = vpop.eup %4989  ;;  %5009 = vrcp.f32 %v3359_v20  ;;  %v3444_v5 = vmul.f32 %v4988_v34, %v6180_v36  ;;  %3474 = vst [vmem:[%s6387_s20 + $0x8] sm:$0xff] %v3442_v4  ;;  %v3366_v36 = vadd.f32 1.0, %v6355_v0 }
 0x3a0   : > { %v4992_v31 = vpop.eup %4991  ;;  %5011 = vrcp.f32 %v3360_v8  ;;  %v3445_v17 = vmul.f32 %v4990_v60, %v6189_v12  ;;  %3475 = vst [vmem:[%s6387_s20 + $0x10] sm:$0xff] %v3443_v43  ;;  %v3367_v12 = vadd.f32 1.0, %v6358_v26 }
 0x3a1   : > { %v4994_v32 = vpop.eup %4993  ;;  %5013 = vrcp.f32 %v3361_v7  ;;  %v3446_v54 = vmul.f32 %v4992_v31, %v6196_v15  ;;  %3476 = vst [vmem:[%s6387_s20 + $0x18] sm:$0xff] %v3444_v5  ;;  %v3368_v15 = vadd.f32 1.0, %v6361_v50 }
 0x3a2   : > { %v4996_v13 = vpop.eup %4995  ;;  %5015 = vrcp.f32 %v3362_v11  ;;  %v3447_v52 = vmul.f32 %v4994_v32, %v6199_v33  ;;  %3477 = vst [vmem:[%s6387_s20 + $0x20] sm:$0xff] %v3445_v17  ;;  %v3369_v33 = vadd.f32 1.0, %v6364_v27 }
 0x3a3   : > { %v4998_v18 = vpop.eup %4997  ;;  %5017 = vrcp.f32 %v3363_v58  ;;  %v3448_v2 = vmul.f32 %v4996_v13, %v6211_v47  ;;  %3478 = vst [vmem:[%s6387_s20 + $0x28] sm:$0xff] %v3446_v54  ;;  %v3370_v47 = vadd.f32 1.0, %v6367_v29  ;;  %v6483_v54 = vld [vmem:[#allocation4_spill] sm:$0xff] }
 0x3a4   : > { %v5000_v37 = vpop.eup %4999  ;;  %5019 = vrcp.f32 %v3364_v14  ;;  %v3449_v44 = vmul.f32 %v4998_v18, %v6219_v46  ;;  %3479 = vst [vmem:[%s6387_s20 + $0x30] sm:$0xff] %v3447_v52  ;;  %v3371_v46 = vadd.f32 1.0, %v6370_v22 }
 0x3a5   : > { %v5002_v0 = vpop.eup %5001  ;;  %5021 = vrcp.f32 %v3365_v38  ;;  %v3450_v61 = vmul.f32 %v5000_v37, %v6225_v25  ;;  %3480 = vst [vmem:[%s6387_s20 + $0x38] sm:$0xff] %v3448_v2  ;;  %v3372_v25 = vadd.f32 1.0, %v6372_v59 }
 0x3a6   : > { %v5004_v26 = vpop.eup %5003  ;;  %5023 = vrcp.f32 %v3366_v36  ;;  %v3451_v48 = vmul.f32 %v5002_v0, %v6230_v57  ;;  %3481 = vst [vmem:[%s6387_s20 + $0x40] sm:$0xff] %v3449_v44  ;;  %v3373_v57 = vadd.f32 1.0, %v6374_v28  ;;  %v6484_v36 = vld [vmem:[#allocation5_spill] sm:$0xff] }
 0x3a7   : > { %v5006_v50 = vpop.eup %5005  ;;  %5025 = vrcp.f32 %v3367_v12  ;;  %v3452_v20 = vmul.f32 %v5004_v26, %v6235_v21  ;;  %3482 = vst [vmem:[%s6387_s20 + $0x48] sm:$0xff] %v3450_v61  ;;  %v3374_v21 = vadd.f32 1.0, %v6376_v1 }
 0x3a8   : > { %v5008_v27 = vpop.eup %5007  ;;  %5027 = vrcp.f32 %v3368_v15  ;;  %v3453_v24 = vmul.f32 %v5006_v50, %v6239_v30  ;;  %3483 = vst [vmem:[%s6387_s20 + $0x50] sm:$0xff] %v3451_v48  ;;  %v3375_v30 = vadd.f32 1.0, %v6378_v39 }
 0x3a9   : > { %v5010_v29 = vpop.eup %5009  ;;  %5029 = vrcp.f32 %v3369_v33  ;;  %v3454_v8 = vmul.f32 %v5008_v27, %v6243_v56  ;;  %3484 = vst [vmem:[%s6387_s20 + $0x58] sm:$0xff] %v3452_v20  ;;  %v3376_v56 = vadd.f32 1.0, %v6380_v63 }
 0x3aa   : > { %v5012_v22 = vpop.eup %5011  ;;  %5031 = vrcp.f32 %v3370_v47  ;;  %v3455_v59 = vmul.f32 %v5010_v29, %v6247_v49  ;;  %3485 = vst [vmem:[%s6387_s20 + $0x60] sm:$0xff] %v3453_v24 }
 0x3ab   : > { %v5014_v3 = vpop.eup %5013  ;;  %5033 = vrcp.f32 %v3371_v46  ;;  %v3456_v28 = vmul.f32 %v5012_v22, %v6251_v23  ;;  %3486 = vst [vmem:[%s6387_s20 + $0x68] sm:$0xff] %v3454_v8 }
 0x3ac   : > { %v5016_v53 = vpop.eup %5015  ;;  %5035 = vrcp.f32 %v3372_v25  ;;  %v3457_v1 = vmul.f32 %v5014_v3, %v6255_v62  ;;  %3487 = vst [vmem:[%s6387_s20 + $0x70] sm:$0xff] %v3455_v59 }
 0x3ad   : > { %v5018_v7 = vpop.eup %5017  ;;  %5037 = vrcp.f32 %v3373_v57  ;;  %v3458_v49 = vmul.f32 %v5016_v53, %v6259_v41  ;;  %3488 = vst [vmem:[%s6387_s20 + $0x78] sm:$0xff] %v3456_v28 }
 0x3ae   : > { %v5020_v39 = vpop.eup %5019  ;;  %5039 = vrcp.f32 %v3374_v21  ;;  %v3459_v23 = vmul.f32 %v5018_v7, %v6263_v19  ;;  %3489 = vst [vmem:[%s6387_s20 + $0x80] sm:$0xff] %v3457_v1 }
 0x3af   : > { %v5022_v4 = vpop.eup %5021  ;;  %5041 = vrcp.f32 %v3375_v30  ;;  %v3460_v63 = vmul.f32 %v5020_v39, %v6267_v55  ;;  %3490 = vst [vmem:[%s6387_s20 + $0x88] sm:$0xff] %v3458_v49 }
 0x3b0   : > { %v5024_v62 = vpop.eup %5023  ;;  %5043 = vrcp.f32 %v3376_v56  ;;  %v3461_v34 = vmul.f32 %v5022_v4, %v6272_v45  ;;  %3491 = vst [vmem:[%s6387_s20 + $0x90] sm:$0xff] %v3459_v23 }
 0x3b1   : > { %v5026_v41 = vpop.eup %5025  ;;  %v3462_v11 = vmul.f32 %v5024_v62, %v6277_v16  ;;  %3492 = vst [vmem:[%s6387_s20 + $0x98] sm:$0xff] %v3460_v63 }
 0x3b2   : > { %v5028_v19 = vpop.eup %5027  ;;  %v3463_v43 = vmul.f32 %v5026_v41, %v6284_v42  ;;  %3493 = vst [vmem:[%s6387_s20 + $0xa0] sm:$0xff] %v3461_v34 }
 0x3b3   : > { %v5030_v60 = vpop.eup %5029  ;;  %v3464_v55 = vmul.f32 %v5028_v19, %v6291_v6  ;;  %3494 = vst [vmem:[%s6387_s20 + $0xa8] sm:$0xff] %v3462_v11 }
 0x3b4   : > { %v5032_v58 = vpop.eup %5031  ;;  %v3465_v45 = vmul.f32 %v5030_v60, %v6298_v35  ;;  %3495 = vst [vmem:[%s6387_s20 + $0xb0] sm:$0xff] %v3463_v43  ;;  %v6482_v35 = vld [vmem:[#allocation3_spill] sm:$0xff] }
 0x3b5   : > { %v5034_v5 = vpop.eup %5033  ;;  %v3466_v16 = vmul.f32 %v5032_v58, %v6305_v10  ;;  %3496 = vst [vmem:[%s6387_s20 + $0xb8] sm:$0xff] %v3464_v55 }
 0x3b6   : > { %v5036_v31 = vpop.eup %5035  ;;  %v3467_v42 = vmul.f32 %v5034_v5, %v6312_v51  ;;  %3497 = vst [vmem:[%s6387_s20 + $0xc0] sm:$0xff] %v3465_v45 }
 0x3b7   : > { %v5038_v6 = vpop.eup %5037  ;;  %v3468_v14 = vmul.f32 %v5036_v31, %v6319_v40  ;;  %3498 = vst [vmem:[%s6387_s20 + $0xc8] sm:$0xff] %v3466_v16 }
 0x3b8   : > { %v5040_v17 = vpop.eup %5039  ;;  %v3469_v32 = vmul.f32 %v5038_v6, %v6482_v35  ;;  %3499 = vst [vmem:[%s6387_s20 + $0xd0] sm:$0xff] %v3467_v42 }
 0x3b9   : > { %v5042_v38 = vpop.eup %5041  ;;  %v3470_v10 = vmul.f32 %v5040_v17, %v6483_v54  ;;  %3500 = vst [vmem:[%s6387_s20 + $0xd8] sm:$0xff] %v3468_v14 }
 0x3ba   : > { %v5044_v13 = vpop.eup %5043  ;;  %v3471_v52 = vmul.f32 %v5042_v38, %v6484_v36  ;;  %3501 = vst [vmem:[%s6387_s20 + $0xe0] sm:$0xff] %v3469_v32 }
 0x3bb   : > { %v3472_v51 = vmul.f32 %v5044_v13, %v6343_v9  ;;  %3502 = vst [vmem:[%s6387_s20 + $0xe8] sm:$0xff] %v3470_v10 }
 0x3bc   : > { %3503 = vst [vmem:[%s6387_s20 + $0xf0] sm:$0xff] %v3471_v52 }
 0x3bd   : > { %3504 = vst [vmem:[%s6387_s20 + $0xf8] sm:$0xff] %v3472_v51 }
 0x3be PF: > { %s16_s21 = sadd.s32 1, %s5052_s21  }
 0x3bf   : > { %p13_p4 = scmp.ge.s32.totalorder %s16_s21, 4  }
 0x3c1   :  { %15 = sbr.rel (!%p13_p4) target bundleno = 1 (0x1), region = 83 }

// kernel: resnet_block_forward.7
= control target key start
LH: loop header
LB: loop body
LE: loop exit
PB: predicated region body
PF: predicated region fallthrough
CT: control target
= control target key end

     0   :  { %s5742_s13 = smov 0   ;;  %s7406_s0 = inlined_call_operand.vmem [shape: f32[2,16,16,128], index: 0, kind: input, shape index: {}]   ;;  %s7407_s1 = inlined_call_operand.vmem [shape: f32[2,1,128], index: 1, kind: input, shape index: {}]   ;;  %s7408_s2 = inlined_call_operand.vmem [shape: f32[2,16,16,128], index: 2, kind: input, shape index: {}]   ;;  %s7409_s3 = inlined_call_operand.vmem [shape: bf16[9,128,128], index: 3, kind: input, shape index: {}]   ;;  %s7410_s4 = inlined_call_operand.vmem [shape: f32[1,128], index: 4, kind: input, shape index: {}]   ;;  %s7411_s5 = inlined_call_operand.vmem [shape: f32[1,128], index: 5, kind: input, shape index: {}]   ;;  %s7412_s6 = inlined_call_operand.vmem [shape: f32[1,128], index: 6, kind: input, shape index: {}]   ;;  %s7413_s7 = inlined_call_operand.vmem [shape: f32[128,128], index: 7, kind: input, shape index: {}]   ;;  %s7414_s8 = inlined_call_operand.vmem [shape: bf16[128,128], index: 8, kind: input, shape index: {}]   ;;  %s7415_s9 = inlined_call_operand.vmem [shape: f32[1,128], index: 9, kind: input, shape index: {}]   ;;  %s7416_s10 = inlined_call_operand.vmem [shape: f32[2,16,16,128], index: 10, kind: output, shape index: {}]  }
   0x1 LB: > { %s4074_s14 = sadd.s32 4294967295, %s5682_s13   ;;  %p4078_p0 = scmp.ge.s32.totalorder %s5682_s13, 1  ;;  %s5682_s13 = sphi %s5742_s13, %s20_s13  }
   0x2   : > { %p330_p1 = scmp.lt.s32.totalorder %s5682_s13, 3 }
   0x4   : > { %p331_p2 = pnand %p4078_p0, %p330_p1 }
   0x6   : > { %334 = sbr.rel (%p331_p2) target bundleno = 1005 (0x3ed), region = 60 }
   0xd   : > { %v5458_v0 = vld [vmem:[%s7409_s3 + $0xc0] sm:$0xff]   ;;  %v5759_v2 = vld [vmem:[%s7409_s3 + $0xc8] sm:$0xff]   ;;  %p5763_p3 = scmp.lt.s32.totalorder %s4074_s14, 1  ;;  %v5684_v3 = vmov 0.0   ;;  %v5462_v5 = vld [vmem:[%s7409_s3 + $0xd0] sm:$0xff]   ;;  %vm5686_vm0 = vmmov 0  }
   0xe   : > { %v5459_v1 = vld [vmem:[%s7409_s3 + $0x40] sm:$0xff]   ;;  %4577 = vmatprep.subr.bf16.mxu1 %v5458_v0  ;;  %469 = vst [vmem:[#allocation2 + $0x18] sm:$0xff] %v5684_v3  ;;  %470 = vst [vmem:[#allocation2 + $0x20] sm:$0xff] %v5684_v3  ;;  %v5461_v4 = vld [vmem:[%s7409_s3 + $0x48] sm:$0xff]  }
   0xf   : > { %471 = vst [vmem:[#allocation2 + $0x28] sm:$0x3] %v5684_v3  ;;  %466 = vst [vmem:[#allocation2] sm:$0xff] %v5684_v3  ;;  %4721 = vmatprep.subr.bf16.mxu0 %v5459_v1  ;;  %4578 = vmatpush3.bf16.msra.mxu1 %v5458_v0  ;;  %v5463_v6 = vld [vmem:[%s7409_s3 + $0x50] sm:$0xff]   ;;  %s7440_s14 = smov (!%p5763_p3, %s4074_s14), 1  ;;  %v5464_v7 = vld [vmem:[%s7409_s3 + $0xd8] sm:$0xff]  }
  0x10   : > { %467 = vst [vmem:[#allocation2 + $0x8] sm:$0xff] %v5684_v3  ;;  %468 = vst [vmem:[#allocation2 + $0x10] sm:$0x3] %v5684_v3  ;;  %4722 = vmatpush3.bf16.msra.mxu0 %v5459_v1  ;;  %4579 = vmatprep.subr.bf16.mxu1 %v5759_v2  ;;  %v5465_v8 = vld [vmem:[%s7409_s3 + $0x58] sm:$0xff]   ;;  %s5788_s12 = sshll.u32 %s7440_s14, 8  ;;  %v5466_v9 = vld [vmem:[%s7409_s3 + $0xe0] sm:$0xff]   ;;  %s383_s24 = scalar_lea.vmem %s7407_s1, %s7440_s14 }
  0x11   : > { %472 = vst [vmem:[#allocation2 + $0x30] sm:$0xff] %v5684_v3  ;;  %473 = vst [vmem:[#allocation2 + $0x38] sm:$0xff] %v5684_v3  ;;  %4723 = vmatprep.subr.bf16.mxu0 %v5461_v4  ;;  %v5467_v10 = vld [vmem:[%s7409_s3 + $0x60] sm:$0xff]   ;;  %s5800_s21 = scalar_lea.vmem %s7406_s0, %s5788_s12  ;;  %v5468_v11 = vld [vmem:[%s7409_s3 + $0xe8] sm:$0xff]   ;;  %s6818_s20 = scalar_lea.vmem %s7408_s2, %s5788_s12 }
  0x12   : > { %474 = vst [vmem:[#allocation2 + $0x40] sm:$0x3] %v5684_v3  ;;  %475 = vst [vmem:[#allocation2 + $0x48] sm:$0xff] %v5684_v3  ;;  %v5469_v12 = vld [vmem:[%s7409_s3 + $0x68] sm:$0xff]   ;;  %v395_v13 = vld [vmem:[%s5800_s21] sm:$0xff]  ;;  %s7127_s28 = scalar_lea.vmem %s7416_s10, %s5788_s12 }
  0x13   : > { %476 = vst [vmem:[#allocation2 + $0x50] sm:$0xff] %v5684_v3  ;;  %477 = vst [vmem:[#allocation2 + $0x58] sm:$0x3] %v5684_v3  ;;  %4580 = vmatpush3.bf16.msra.mxu1 %v5759_v2  ;;  %v396_v14 = vld [vmem:[%s5800_s21 + $0x8] sm:$0xff]  ;;  %v5813_v15 = vld [vmem:[%s383_s24] ss:$0 sm:$0xff] }
  0x14   : > { %478 = vst [vmem:[#allocation2 + $0x60] sm:$0xff] %v5684_v3  ;;  %479 = vst [vmem:[#allocation2 + $0x68] sm:$0xff] %v5684_v3  ;;  %4724 = vmatpush3.bf16.msra.mxu0 %v5461_v4  ;;  %4581 = vmatprep.subr.bf16.mxu1 %v5462_v5  ;;  %v5816_v16 = vadd.f32 %v5813_v15, %v395_v13  ;;  %v5819_v17 = vadd.f32 %v5813_v15, %v396_v14  ;;  %v397_v20 = vld [vmem:[%s5800_s21 + $0x10] sm:$0xff]  ;;  %v398_v22 = vld [vmem:[%s5800_s21 + $0x18] sm:$0xff] }
  0x15   : > { %480 = vst [vmem:[#allocation2 + $0x70] sm:$0x3] %v5684_v3  ;;  %481 = vst [vmem:[#allocation2 + $0x78] sm:$0xff] %v5684_v3  ;;  %4725 = vmatprep.subr.bf16.mxu0 %v5463_v6  ;;  %v5824_v23 = vadd.f32 %v5813_v15, %v397_v20  ;;  %v5470_v24 = vld [vmem:[%s7409_s3 + $0xf0] sm:$0xff]   ;;  %v5832_v25 = vadd.f32 %v5813_v15, %v398_v22  ;;  %v399_v27 = vld [vmem:[%s5800_s21 + $0x20] sm:$0xff] }
  0x16   : > { %482 = vst [vmem:[#allocation2 + $0x80] sm:$0xff] %v5684_v3  ;;  %483 = vst [vmem:[#allocation2 + $0x88] sm:$0x3] %v5684_v3  ;;  %v5837_v26 = vld [vmem:[%s7409_s3 + $0x70] sm:$0xff]   ;;  %v400_v28 = vld [vmem:[%s5800_s21 + $0x28] sm:$0xff]  ;;  %v5844_v29 = vadd.f32 %v5813_v15, %v399_v27  ;;  %v5918_v62 = vpack.c.bf16 %v5819_v17, %v5816_v16 }
  0x17   : > { %484 = vst [vmem:[#allocation2 + $0x90] sm:$0xff] %v5684_v3  ;;  %485 = vst [vmem:[#allocation2 + $0x98] sm:$0xff] %v5684_v3  ;;  %4582 = vmatpush3.bf16.msra.mxu1 %v5462_v5  ;;  %v1316_v18 = vld [vmem:[#allocation2 + $0x1] sm:$0xff]  ;;  %v1317_v19 = vld [vmem:[#allocation2 + $0x9] sm:$0xff]  ;;  %v5847_v30 = vadd.f32 %v5813_v15, %v400_v28  ;;  %v5930_v1 = vpack.c.bf16 %v5832_v25, %v5824_v23 }
  0x18   : > { %486 = vst [vmem:[#allocation2 + $0xa0] sm:$0x3] %v5684_v3  ;;  %487 = vst [vmem:[#allocation2 + $0xa8] sm:$0xff] %v5684_v3  ;;  %4726 = vmatpush3.bf16.msra.mxu0 %v5463_v6  ;;  %4583 = vmatprep.subr.bf16.mxu1 %v5464_v7  ;;  %v1352_v21 = vpack.c.bf16 %v1317_v19, %v1316_v18  ;;  %v401_v31 = vld [vmem:[%s5800_s21 + $0x30] sm:$0xff]  ;;  %v402_v32 = vld [vmem:[%s5800_s21 + $0x38] sm:$0xff] }
  0x19   : > { %488 = vst [vmem:[#allocation2 + $0xb0] sm:$0xff] %v5684_v3  ;;  %489 = vst [vmem:[#allocation2 + $0xb8] sm:$0x3] %v5684_v3  ;;  %4727 = vmatprep.subr.bf16.mxu0 %v5465_v8  ;;  %v5852_v33 = vadd.f32 %v5813_v15, %v401_v31  ;;  %v5855_v34 = vadd.f32 %v5813_v15, %v402_v32  ;;  %v5472_v35 = vld [vmem:[%s7409_s3 + $0xf8] sm:$0xff]   ;;  %v403_v36 = vld [vmem:[%s5800_s21 + $0x40] sm:$0xff]  ;;  %v5968_v18 = vpack.c.bf16 %v5847_v30, %v5844_v29 }
  0x1a   : > { %490 = vst [vmem:[#allocation2 + $0xc0] sm:$0xff] %v5684_v3  ;;  %491 = vst [vmem:[#allocation2 + $0xc8] sm:$0xff] %v5684_v3  ;;  %4737 = vmatprep.mubr.bf16.mxu0 %v1352_v21  ;;  %v404_v37 = vld [vmem:[%s5800_s21 + $0x48] sm:$0xff]  ;;  %v5867_v38 = vadd.f32 %v5813_v15, %v403_v36  ;;  %v405_v39 = vld [vmem:[%s5800_s21 + $0x50] sm:$0xff] }
  0x1b   : > { %492 = vst [vmem:[#allocation2 + $0xd0] sm:$0x3] %v5684_v3  ;;  %493 = vst [vmem:[#allocation2 + $0xd8] sm:$0xff] %v5684_v3  ;;  %4584 = vmatpush3.bf16.msra.mxu1 %v5464_v7  ;;  %v406_v40 = vld [vmem:[%s5800_s21 + $0x58] sm:$0xff]  ;;  %v5878_v42 = vadd.f32 %v5813_v15, %v404_v37  ;;  %v5881_v43 = vadd.f32 %v5813_v15, %v405_v39  ;;  %v5474_v49 = vld [vmem:[%s7409_s3 + $0x100] sm:$0xff]   ;;  %v5980_v22 = vpack.c.bf16 %v5855_v34, %v5852_v33 }
  0x1c   : > { %494 = vst [vmem:[#allocation2 + $0xe0] sm:$0xff] %v5684_v3  ;;  %495 = vst [vmem:[#allocation2 + $0xe8] sm:$0x3] %v5684_v3  ;;  %4728 = vmatpush3.bf16.msra.mxu0 %v5465_v8  ;;  %4585 = vmatprep.subr.bf16.mxu1 %v5466_v9  ;;  %v5875_v41 = vld [vmem:[%s7409_s3 + $0x78] sm:$0xff]   ;;  %v5884_v44 = vadd.f32 %v5813_v15, %v406_v40  ;;  %v407_v51 = vld [vmem:[%s5800_s21 + $0x60] sm:$0xff] }
  0x1d   : > { %496 = vst [vmem:[#allocation2 + $0xf0] sm:$0xff] %v5684_v3  ;;  %497 = vst [vmem:[#allocation2 + $0xf8] sm:$0xff] %v5684_v3  ;;  %4729 = vmatprep.subr.bf16.mxu0 %v5467_v10  ;;  %v408_v52 = vld [vmem:[%s5800_s21 + $0x68] sm:$0xff]  ;;  %v5901_v53 = vadd.f32 %v5813_v15, %v407_v51  ;;  %v409_v55 = vld [vmem:[%s5800_s21 + $0x70] sm:$0xff] }
  0x1e   : > { %498 = vst [vmem:[#allocation2 + $0x100] sm:$0x3] %v5684_v3  ;;  %499 = vst [vmem:[#allocation2 + $0x108] sm:$0xff] %v5684_v3  ;;  %v5904_v54 = vadd.f32 %v5813_v15, %v408_v52  ;;  %v410_v56 = vld [vmem:[%s5800_s21 + $0x78] sm:$0xff]  ;;  %v5911_v60 = vadd.f32 %v5813_v15, %v409_v55  ;;  %v5475_v0 = vld [vmem:[%s7409_s3 + $0x108] sm:$0xff]  }
  0x1f   : > { %500 = vst [vmem:[#allocation2 + $0x110] sm:$0xff] %v5684_v3  ;;  %501 = vst [vmem:[#allocation2 + $0x118] sm:$0x3] %v5684_v3  ;;  %4586 = vmatpush3.bf16.msra.mxu1 %v5466_v9  ;;  %v5914_v61 = vadd.f32 %v5813_v15, %v410_v56  ;;  %v412_v4 = vld [vmem:[%s5800_s21 + $0x88] sm:$0xff]  ;;  %v5482_v14 = vld [vmem:[%s7409_s3] sm:$0xff]  }
  0x20   : > { %502 = vst [vmem:[#allocation2 + $0x120] sm:$0xff] %v5684_v3  ;;  %503 = vst [vmem:[#allocation2 + $0x128] sm:$0xff] %v5684_v3  ;;  %4730 = vmatpush3.bf16.msra.mxu0 %v5467_v10  ;;  %4587 = vmatprep.subr.bf16.mxu1 %v5468_v11  ;;  %v5941_v9 = vadd.f32 %v5813_v15, %v412_v4  ;;  %v413_v10 = vld [vmem:[%s5800_s21 + $0x90] sm:$0xff]  ;;  %v5477_v19 = vld [vmem:[%s7409_s3 + $0x118] sm:$0xff]  }
  0x21   : > { %504 = vst [vmem:[#allocation2 + $0x130] sm:$0x3] %v5684_v3  ;;  %505 = vst [vmem:[#allocation2 + $0x138] sm:$0xff] %v5684_v3  ;;  %4731 = vmatprep.subr.bf16.mxu0 %v5469_v12  ;;  %v5484_v21 = vld [vmem:[%s7409_s3 + $0x8] sm:$0xff]   ;;  %v5485_v32 = vld [vmem:[%s7409_s3 + $0x10] sm:$0xff]  }
  0x22   : > { %506 = vst [vmem:[#allocation2 + $0x140] sm:$0xff] %v5684_v3  ;;  %507 = vst [vmem:[#allocation2 + $0x148] sm:$0x3] %v5684_v3  ;;  %v5478_v37 = vld [vmem:[%s7409_s3 + $0x120] sm:$0xff]   ;;  %v5487_v39 = vld [vmem:[%s7409_s3 + $0x18] sm:$0xff]  }
  0x23   : > { %508 = vst [vmem:[#allocation2 + $0x150] sm:$0xff] %v5684_v3  ;;  %509 = vst [vmem:[#allocation2 + $0x158] sm:$0xff] %v5684_v3  ;;  %4588 = vmatpush3.bf16.msra.mxu1 %v5468_v11  ;;  %v414_v11 = vld [vmem:[%s5800_s21 + $0x98] sm:$0xff]  ;;  %v419_v40 = vld [vmem:[%s5800_s21 + $0xc0] sm:$0xff] }
  0x24   : > { %510 = vst [vmem:[#allocation2 + $0x160] sm:$0x3] %v5684_v3  ;;  %511 = vst [vmem:[#allocation2 + $0x168] sm:$0xff] %v5684_v3  ;;  %4732 = vmatpush3.bf16.msra.mxu0 %v5469_v12  ;;  %4589 = vmatprep.subr.bf16.mxu1 %v5470_v24  ;;  %v5951_v12 = vadd.f32 %v5813_v15, %v413_v10  ;;  %v5954_v13 = vadd.f32 %v5813_v15, %v414_v11  ;;  %v422_v51 = vld [vmem:[%s5800_s21 + $0xd8] sm:$0xff]  ;;  %v423_v4 = vld [vmem:[%s5800_s21 + $0xe0] sm:$0xff] }
  0x25   : > { %512 = vst [vmem:[#allocation2 + $0x170] sm:$0xff] %v5684_v3  ;;  %513 = vst [vmem:[#allocation2 + $0x178] sm:$0x3] %v5684_v3  ;;  %4733 = vmatprep.subr.bf16.mxu0 %v5837_v26  ;;  %v425_v10 = vld [vmem:[%s5800_s21 + $0xf0] sm:$0xff]  ;;  %v426_v11 = vld [vmem:[%s5800_s21 + $0xf8] sm:$0xff] }
  0x26   : > { %514 = vst [vmem:[#allocation2 + $0x180] sm:$0xff] %v5684_v3  ;;  %515 = vst [vmem:[#allocation2 + $0x188] sm:$0xff] %v5684_v3 }
  0x27   : > { %516 = vst [vmem:[#allocation2 + $0x190] sm:$0x3] %v5684_v3  ;;  %517 = vst [vmem:[#allocation2 + $0x198] sm:$0xff] %v5684_v3  ;;  %4590 = vmatpush3.bf16.msra.mxu1 %v5470_v24  ;;  %v416_v24 = vld [vmem:[%s5800_s21 + $0xa8] sm:$0xff] }
  0x28   : > { %518 = vst [vmem:[#allocation2 + $0x1a0] sm:$0xff] %v5684_v3  ;;  %519 = vst [vmem:[#allocation2 + $0x1a8] sm:$0x3] %v5684_v3  ;;  %4734 = vmatpush3.bf16.msra.mxu0 %v5837_v26  ;;  %4591 = vmatprep.subr.bf16.mxu1 %v5472_v35  ;;  %v411_v3 = vld [vmem:[%s5800_s21 + $0x80] sm:$0xff]  ;;  %v5989_v28 = vadd.f32 %v5813_v15, %v416_v24  ;;  %v6077_v24 = vpack.c.bf16 %v5904_v54, %v5901_v53 }
  0x29   : > { %521 = vst [vmem:[#allocation2 + $0x19] sm:$0xff] %v5816_v16  ;;  %522 = vst [vmem:[#allocation2 + $0x21] sm:$0xff] %v5819_v17  ;;  %4735 = vmatprep.subr.bf16.mxu0 %v5875_v41  ;;  %v5938_v8 = vadd.f32 %v5813_v15, %v411_v3  ;;  %v5476_v16 = vld [vmem:[%s7409_s3 + $0x110] sm:$0xff]  }
  0x2a   : > { %523 = vst [vmem:[#allocation2 + $0x31] sm:$0xff] %v5824_v23  ;;  %524 = vst [vmem:[#allocation2 + $0x39] sm:$0xff] %v5832_v25  ;;  %v415_v23 = vld [vmem:[%s5800_s21 + $0xa0] sm:$0xff]  ;;  %v417_v25 = vld [vmem:[%s5800_s21 + $0xb0] sm:$0xff] }
  0x2b   : > { %525 = vst [vmem:[#allocation2 + $0x49] sm:$0xff] %v5844_v29  ;;  %526 = vst [vmem:[#allocation2 + $0x51] sm:$0xff] %v5847_v30  ;;  %4592 = vmatpush3.bf16.msra.mxu1 %v5472_v35  ;;  %v5986_v27 = vadd.f32 %v5813_v15, %v415_v23  ;;  %v418_v29 = vld [vmem:[%s5800_s21 + $0xb8] sm:$0xff]  ;;  %v5993_v30 = vadd.f32 %v5813_v15, %v417_v25  ;;  %v5490_v23 = vld [vmem:[%s7409_s3 + $0x28] sm:$0xff]  }
  0x2c   : > { %527 = vst [vmem:[#allocation2 + $0x61] sm:$0xff] %v5852_v33  ;;  %528 = vst [vmem:[#allocation2 + $0x69] sm:$0xff] %v5855_v34  ;;  %4736 = vmatpush3.bf16.msra.mxu0 %v5875_v41  ;;  %4625 = vmatprep.subr.bf16.mxu1 %v5482_v14  ;;  %v5997_v31 = vadd.f32 %v5813_v15, %v418_v29  ;;  %v5481_v29 = vld [vmem:[%s7409_s3 + $0x138] sm:$0xff]  }
  0x2d   : > { %529 = vst [vmem:[#allocation2 + $0x79] sm:$0xff] %v5867_v38  ;;  %530 = vst [vmem:[#allocation2 + $0x81] sm:$0xff] %v5878_v42  ;;  %4769 = vmatprep.subr.bf16.mxu0 %v5474_v49 }
  0x2e   : > { %531 = vst [vmem:[#allocation2 + $0x91] sm:$0xff] %v5881_v43  ;;  %532 = vst [vmem:[#allocation2 + $0x99] sm:$0xff] %v5884_v44 }
  0x2f   : > { %533 = vst [vmem:[#allocation2 + $0xa9] sm:$0xff] %v5901_v53  ;;  %534 = vst [vmem:[#allocation2 + $0xb1] sm:$0xff] %v5904_v54  ;;  %4738 = vmatmul.mubr.bf16.vlgmr.msra.gmra.mrb[0].mxu0 %v5918_v62  ;;  %v5491_v53 = vld [vmem:[%s7409_s3 + $0x30] sm:$0xff]  }
  0x30   : > { %v555_v45 = vld [vmem:[#allocation2 + $0x18] sm:$0xff]  ;;  %v556_v46 = vld [vmem:[#allocation2 + $0x20] sm:$0xff]  ;;  %535 = vst [vmem:[#allocation2 + $0xc1] sm:$0xff] %v5911_v60  ;;  %536 = vst [vmem:[#allocation2 + $0xc9] sm:$0xff] %v5914_v61  ;;  %4770 = vmatpush3.bf16.msra.mxu0 %v5474_v49  ;;  %4741 = vmatprep.mubr.bf16.mxu0 %v5930_v1  ;;  %v6024_v49 = vadd.f32 %v5813_v15, %v419_v40 }
  0x31   : > { %v5887_v47 = vpack.c.bf16 %v556_v46, %v555_v45  ;;  %v557_v48 = vld [vmem:[#allocation2 + $0x30] sm:$0xff]  ;;  %v558_v50 = vld [vmem:[#allocation2 + $0x38] sm:$0xff]  ;;  %537 = vst [vmem:[#allocation2 + $0xd9] sm:$0xff] %v5938_v8  ;;  %538 = vst [vmem:[#allocation2 + $0xe1] sm:$0xff] %v5941_v9  ;;  %4771 = vmatprep.subr.bf16.mxu0 %v5475_v0  ;;  %v6020_v46 = vpack.c.bf16 %v5878_v42, %v5867_v38  ;;  %v6040_v42 = vpack.c.bf16 %v5884_v44, %v5881_v43 }
  0x32   : > { %v5908_v57 = vpack.c.bf16 %v558_v50, %v557_v48  ;;  %v559_v58 = vld [vmem:[#allocation2 + $0x48] sm:$0xff]  ;;  %v560_v59 = vld [vmem:[#allocation2 + $0x50] sm:$0xff]  ;;  %539 = vst [vmem:[#allocation2 + $0xf1] sm:$0xff] %v5951_v12  ;;  %540 = vst [vmem:[#allocation2 + $0xf9] sm:$0xff] %v5954_v13 }
  0x33   : > { %4593 = vmatprep.mubr.bf16.mxu1 %v5887_v47  ;;  %v5920_v63 = vpack.c.bf16 %v560_v59, %v559_v58  ;;  %v561_v2 = vld [vmem:[#allocation2 + $0x60] sm:$0xff]  ;;  %v562_v5 = vld [vmem:[#allocation2 + $0x68] sm:$0xff]  ;;  %541 = vst [vmem:[#allocation2 + $0x109] sm:$0xff] %v5986_v27  ;;  %542 = vst [vmem:[#allocation2 + $0x111] sm:$0xff] %v5989_v28  ;;  %v461_v58 = vadd.f32 %v5813_v15, %v422_v51 }
  0x34   : > { %4594 = vmatmul.mubr.bf16.vlgmr.msra.gmra.mrb[0].mxu1 %v5908_v57  ;;  %v563_v6 = vld [vmem:[#allocation2 + $0x78] sm:$0xff]  ;;  %v564_v7 = vld [vmem:[#allocation2 + $0x80] sm:$0xff]  ;;  %v5962_v17 = vpack.c.bf16 %v562_v5, %v561_v2  ;;  %4772 = vmatpush3.bf16.msra.mxu0 %v5475_v0  ;;  %543 = vst [vmem:[#allocation2 + $0x121] sm:$0xff] %v5993_v30  ;;  %544 = vst [vmem:[#allocation2 + $0x129] sm:$0xff] %v5997_v31 }
  0x35   : > { %4597 = vmatprep.mubr.bf16.mxu1 %v5920_v63  ;;  %v5973_v20 = vpack.c.bf16 %v564_v7, %v563_v6  ;;  %4626 = vmatpush3.bf16.msra.mxu1 %v5482_v14  ;;  %v565_v33 = vld [vmem:[#allocation2 + $0x90] sm:$0xff]  ;;  %v566_v34 = vld [vmem:[#allocation2 + $0x98] sm:$0xff]  ;;  %v420_v48 = vld [vmem:[%s5800_s21 + $0xc8] sm:$0xff]  ;;  %545 = vst [vmem:[#allocation2 + $0x139] sm:$0xff] %v6024_v49  ;;  %v6056_v6 = vadd.f32 %v5813_v15, %v423_v4 }
  0x36   : > { %4773 = vmatprep.subr.bf16.mxu0 %v5476_v16  ;;  %4627 = vmatprep.subr.bf16.mxu1 %v5484_v21  ;;  %v567_v35 = vld [vmem:[#allocation2 + $0xa8] sm:$0xff]  ;;  %v568_v36 = vld [vmem:[#allocation2 + $0xb0] sm:$0xff]  ;;  %v6016_v45 = vpack.c.bf16 %v566_v34, %v565_v33  ;;  %v6031_v55 = vadd.f32 %v5813_v15, %v420_v48  ;;  %548 = vst [vmem:[#allocation2 + $0x159] sm:$0xff] %v461_v58  ;;  %v5488_v44 = vld [vmem:[%s7409_s3 + $0x20] sm:$0xff]  }
  0x37   : > { %4742 = vmatmul.mubr.bf16.gmra.mrb[4].mxu0 %v5968_v18  ;;  %v421_v50 = vld [vmem:[%s5800_s21 + $0xd0] sm:$0xff]  ;;  %v6028_v52 = vpack.c.bf16 %v568_v36, %v567_v35  ;;  %v5479_v38 = vld [vmem:[%s7409_s3 + $0x128] sm:$0xff]   ;;  %v569_v59 = vld [vmem:[#allocation2 + $0xc0] sm:$0xff]  ;;  %549 = vst [vmem:[#allocation2 + $0x169] sm:$0xff] %v6056_v6 }
  0x38   : > { %4774 = vmatpush3.bf16.msra.mxu0 %v5476_v16  ;;  %4745 = vmatprep.mubr.bf16.mxu0 %v5980_v22  ;;  %v460_v56 = vadd.f32 %v5813_v15, %v421_v50  ;;  %546 = vst [vmem:[#allocation2 + $0x141] sm:$0xff] %v6031_v55  ;;  %v570_v2 = vld [vmem:[#allocation2 + $0xc8] sm:$0xff]  ;;  %v571_v43 = vld [vmem:[#allocation2 + $0xd8] sm:$0xff]  ;;  %v572_v3 = vld [vmem:[#allocation2 + $0xe0] sm:$0xff]  ;;  %v464_v16 = vadd.f32 %v5813_v15, %v425_v10 }
  0x39   : > { %4775 = vmatprep.subr.bf16.mxu0 %v5477_v19  ;;  %4628 = vmatpush3.bf16.msra.mxu1 %v5484_v21  ;;  %v424_v5 = vld [vmem:[%s5800_s21 + $0xe8] sm:$0xff]  ;;  %v5480_v14 = vld [vmem:[%s7409_s3 + $0x130] sm:$0xff]   ;;  %v6068_v21 = vpack.c.bf16 %v570_v2, %v569_v59  ;;  %v6079_v25 = vpack.c.bf16 %v572_v3, %v571_v43  ;;  %v574_v33 = vld [vmem:[#allocation2 + $0xf8] sm:$0xff] }
  0x3a   : > { %4629 = vmatprep.subr.bf16.mxu1 %v5485_v32  ;;  %547 = vst [vmem:[#allocation2 + $0x151] sm:$0xff] %v460_v56  ;;  %v6044_v0 = vpack.c.bf16 %v461_v58, %v460_v56  ;;  %v6059_v7 = vadd.f32 %v5813_v15, %v424_v5  ;;  %551 = vst [vmem:[#allocation2 + $0x181] sm:$0xff] %v464_v16  ;;  %v575_v54 = vld [vmem:[#allocation2 + $0x108] sm:$0xff]  ;;  %v576_v34 = vld [vmem:[#allocation2 + $0x110] sm:$0xff] }
  0x3b   : > { %v5483_v35 = vld [vmem:[%s7409_s3 + $0x1c0] sm:$0xff]   ;;  %v578_v48 = vld [vmem:[#allocation2 + $0x128] sm:$0xff]  ;;  %v5489_v58 = vld [vmem:[%s7409_s3 + $0x1d0] sm:$0xff]  }
  0x3c   : > { %4598 = vmatmul.mubr.bf16.gmra.mrb[4].mxu1 %v5962_v17  ;;  %4776 = vmatpush3.bf16.msra.mxu0 %v5477_v19  ;;  %v465_v19 = vadd.f32 %v5813_v15, %v426_v11  ;;  %550 = vst [vmem:[#allocation2 + $0x171] sm:$0xff] %v6059_v7  ;;  %v577_v40 = vld [vmem:[#allocation2 + $0x120] sm:$0xff]  ;;  %v579_v51 = vld [vmem:[#allocation2 + $0x138] sm:$0xff] }
  0x3d   : > { %4601 = vmatprep.mubr.bf16.mxu1 %v5973_v20  ;;  %4777 = vmatprep.subr.bf16.mxu0 %v5478_v37  ;;  %v6110_v50 = vld [vmem:[%s7409_s3 + $0x180] sm:$0xff]   ;;  %v5492_v2 = vld [vmem:[%s7409_s3 + $0x1d8] sm:$0xff]  }
  0x3e   : > { %4630 = vmatpush3.bf16.msra.mxu1 %v5485_v32  ;;  %552 = vst [vmem:[#allocation2 + $0x189] sm:$0xff] %v465_v19  ;;  %v6081_v15 = vpack.c.bf16 %v465_v19, %v464_v16  ;;  %v573_v32 = vld [vmem:[#allocation2 + $0xf0] sm:$0xff]  ;;  %v583_v3 = vld [vmem:[#allocation2 + $0x168] sm:$0xff]  ;;  %v5494_v5 = vld [vmem:[%s7409_s3 + $0x1e0] sm:$0xff]  }
  0x3f   : > { %4631 = vmatprep.subr.bf16.mxu1 %v5487_v39  ;;  %4746 = vmatmul.mubr.bf16.gmra.mrb[8].mxu0 %v6020_v46  ;;  %v6096_v36 = vpack.c.bf16 %v574_v33, %v573_v32  ;;  %v580_v56 = vld [vmem:[#allocation2 + $0x140] sm:$0xff]  ;;  %v6151_v32 = vpack.c.bf16 %v5914_v61, %v5911_v60  ;;  %v6155_v33 = vpack.c.bf16 %v5941_v9, %v5938_v8  ;;  %v5500_v9 = vld [vmem:[%s7409_s3 + $0x188] sm:$0xff]  }
  0x40   : > { %4778 = vmatpush3.bf16.msra.mxu0 %v5478_v37  ;;  %4749 = vmatprep.mubr.bf16.mxu0 %v6040_v42  ;;  %v5493_v37 = vld [vmem:[%s7409_s3 + $0x38] sm:$0xff]   ;;  %v6121_v59 = vpack.c.bf16 %v580_v56, %v579_v51  ;;  %v5499_v60 = vld [vmem:[%s7409_s3 + $0x80] sm:$0xff]   ;;  %v6169_v61 = vpack.c.bf16 %v5954_v13, %v5951_v12  ;;  %v6173_v8 = vpack.c.bf16 %v5989_v28, %v5986_v27  ;;  %v5501_v12 = vld [vmem:[%s7409_s3 + $0x190] sm:$0xff]  }
  0x41   : > { %4779 = vmatprep.subr.bf16.mxu0 %v5479_v38  ;;  %v581_v43 = vld [vmem:[#allocation2 + $0x150] sm:$0xff]  ;;  %v585_v16 = vld [vmem:[#allocation2 + $0x180] sm:$0xff]  ;;  %v6188_v13 = vpack.c.bf16 %v5997_v31, %v5993_v30  ;;  %v5503_v27 = vld [vmem:[%s7409_s3 + $0x198] sm:$0xff]   ;;  %v6206_v30 = vpack.c.bf16 %v6059_v7, %v6056_v6 }
  0x42   : > { %4632 = vmatpush3.bf16.msra.mxu1 %v5487_v39  ;;  %v6101_v39 = vpack.c.bf16 %v576_v34, %v575_v54  ;;  %v5685_v54 = vmov 0.0|0.0   ;;  %v5504_v28 = vld [vmem:[%s7409_s3 + $0x1a0] sm:$0xff]   ;;  %v5506_v31 = vld [vmem:[%s7409_s3 + $0x1a8] sm:$0xff]   ;;  %v5508_v34 = vld [vmem:[%s7409_s3 + $0x98] sm:$0xff]  }
  0x43   : > { %4633 = vmatprep.subr.bf16.mxu1 %v5488_v44  ;;  %v584_v4 = vld [vmem:[#allocation2 + $0x170] sm:$0xff]  ;;  %v5502_v6 = vld [vmem:[%s7409_s3 + $0x88] sm:$0xff]   ;;  %v5668_v7 = vld [vmem:[%s7409_s3 + $0x40] sm:$0xff]  }
  0x44   : > { %4602 = vmatmul.mubr.bf16.gmra.mrb[8].mxu1 %v6016_v45  ;;  %4780 = vmatpush3.bf16.msra.mxu0 %v5479_v38  ;;  %v6118_v38 = vpack.c.bf16 %v578_v48, %v577_v40  ;;  %v6135_v11 = vpack.c.bf16 %v584_v4, %v583_v3  ;;  %v5673_v40 = vld [vmem:[%s7409_s3 + $0x68] sm:$0xff]   ;;  %v2148_v51 = vld [vmem:[#allocation2 + $0x32] sm:$0xff]  ;;  %v2149_v56 = vld [vmem:[#allocation2 + $0x3a] sm:$0xff] }
  0x45   : > { %4605 = vmatprep.mubr.bf16.mxu1 %v6028_v52  ;;  %4781 = vmatprep.subr.bf16.mxu0 %v5480_v14  ;;  %v586_v19 = vld [vmem:[#allocation2 + $0x188] sm:$0xff]  ;;  %v2154_v4 = vld [vmem:[#allocation2 + $0x7a] sm:$0xff] }
  0x46   : > { %4634 = vmatpush3.bf16.msra.mxu1 %v5488_v44  ;;  %v582_v44 = vld [vmem:[#allocation2 + $0x158] sm:$0xff] }
  0x47   : > { %4635 = vmatprep.subr.bf16.mxu1 %v5490_v23  ;;  %4750 = vmatmul.mubr.bf16.gmra.mrb[12].mxu0 %v6077_v24  ;;  %v6133_v10 = vpack.c.bf16 %v582_v44, %v581_v43  ;;  %v2152_v43 = vld [vmem:[#allocation2 + $0x62] sm:$0xff]  ;;  %v2153_v44 = vld [vmem:[#allocation2 + $0x6a] sm:$0xff] }
  0x48   : > { %4782 = vmatpush3.bf16.msra.mxu0 %v5480_v14  ;;  %4785 = vmatprep.mubr.bf16.mxu0 %v5918_v62  ;;  %v5486_v62 = vld [vmem:[%s7409_s3 + $0x1c8] sm:$0xff]  }
  0x49   : > { %4783 = vmatprep.subr.bf16.mxu0 %v5481_v29  ;;  %v5495_v14 = vld [vmem:[%s7409_s3 + $0x1e8] sm:$0xff]  }
  0x4a   : > { %4636 = vmatpush3.bf16.msra.mxu1 %v5490_v23  ;;  %v5496_v23 = vld [vmem:[%s7409_s3 + $0x1f0] sm:$0xff]  }
  0x4b   : > { %4637 = vmatprep.subr.bf16.mxu1 %v5491_v53 }
  0x4c   : > { %4606 = vmatmul.mubr.bf16.gmra.mrb[12].mxu1 %v6068_v21  ;;  %4784 = vmatpush3.bf16.msra.mxu0 %v5481_v29  ;;  %v6147_v29 = vpack.c.bf16 %v586_v19, %v585_v16  ;;  %v2157_v16 = vld [vmem:[#allocation2 + $0x9a] sm:$0xff] }
  0x4d   : > { %4609 = vmatprep.mubr.bf16.mxu1 %v6079_v25  ;;  %4817 = vmatprep.subr.bf16.mxu0 %v5483_v35  ;;  %v5518_v19 = vld [vmem:[%s7409_s3 + $0x160] sm:$0xff]  }
  0x4e   : > { %4638 = vmatpush3.bf16.msra.mxu1 %v5491_v53  ;;  %v5497_v53 = vld [vmem:[%s7409_s3 + $0x1f8] sm:$0xff]  }
  0x4f   : > { %4639 = vmatprep.subr.bf16.mxu1 %v5493_v37  ;;  %4786 = vmatmul.mubr.bf16.vlgmr.msra.gmra.mrb[0].mxu0 %v5930_v1 }
  0x50   : > { %4818 = vmatpush3.bf16.msra.mxu0 %v5483_v35  ;;  %4789 = vmatprep.mubr.bf16.mxu0 %v5968_v18  ;;  %v5670_v35 = vld [vmem:[%s7409_s3 + $0x50] sm:$0xff]  }
  0x51   : > { %4819 = vmatprep.subr.bf16.mxu0 %v5486_v62 }
  0x52   : > { %4640 = vmatpush3.bf16.msra.mxu1 %v5493_v37  ;;  %v2144_v37 = vld [vmem:[#allocation2 + $0x2] sm:$0xff] }
  0x53   : > { %4673 = vmatprep.subr.bf16.mxu1 %v6110_v50 }
  0x54   : > { %4610 = vmatmul.mubr.bf16.gmra.mrb[16].mxu1 %v6096_v36  ;;  %4820 = vmatpush3.bf16.msra.mxu0 %v5486_v62  ;;  %v2145_v62 = vld [vmem:[#allocation2 + $0xa] sm:$0xff] }
  0x55   : > { %4613 = vmatprep.mubr.bf16.mxu1 %v6101_v39  ;;  %4821 = vmatprep.subr.bf16.mxu0 %v5489_v58 }
  0x57   : > { %4790 = vmatmul.mubr.bf16.gmra.mrb[4].mxu0 %v5980_v22 }
  0x58   : > { %4793 = vmatprep.mubr.bf16.mxu0 %v6020_v46  ;;  %4822 = vmatpush3.bf16.msra.mxu0 %v5489_v58 }
  0x59   : > { %4823 = vmatprep.subr.bf16.mxu0 %v5492_v2 }
  0x5c   : > { %4614 = vmatmul.mubr.bf16.gmra.mrb[20].mxu1 %v6118_v38  ;;  %4824 = vmatpush3.bf16.msra.mxu0 %v5492_v2  ;;  %v2151_v2 = vld [vmem:[#allocation2 + $0x52] sm:$0xff] }
  0x5d   : > { %4617 = vmatprep.mubr.bf16.mxu1 %v6121_v59  ;;  %4825 = vmatprep.subr.bf16.mxu0 %v5494_v5 }
  0x5f   : > { %4794 = vmatmul.mubr.bf16.gmra.mrb[8].mxu0 %v6040_v42 }
  0x60   : > { %4797 = vmatprep.mubr.bf16.mxu0 %v6077_v24  ;;  %4826 = vmatpush3.bf16.msra.mxu0 %v5494_v5  ;;  %v2155_v5 = vld [vmem:[#allocation2 + $0x82] sm:$0xff] }
  0x61   : > { %4827 = vmatprep.subr.bf16.mxu0 %v5495_v14 }
  0x64   : > { %4618 = vmatmul.mubr.bf16.gmra.mrb[24].mxu1 %v6133_v10  ;;  %4828 = vmatpush3.bf16.msra.mxu0 %v5495_v14  ;;  %v2156_v14 = vld [vmem:[#allocation2 + $0x92] sm:$0xff] }
  0x65   : > { %4621 = vmatprep.mubr.bf16.mxu1 %v6135_v11  ;;  %4829 = vmatprep.subr.bf16.mxu0 %v5496_v23 }
  0x67   : > { %4798 = vmatmul.mubr.bf16.gmra.mrb[12].mxu0 %v6151_v32 }
  0x68   : > { %4801 = vmatprep.mubr.bf16.mxu0 %v6155_v33  ;;  %4830 = vmatpush3.bf16.msra.mxu0 %v5496_v23  ;;  %v6331_v23 = vpack.c.bf16 %v2155_v5, %v2154_v4 }
  0x69   : > { %4831 = vmatprep.subr.bf16.mxu0 %v5497_v53 }
  0x6c   : > { %4622 = vmatmul.mubr.bf16.gmra.mrb[28].mxu1 %v6147_v29  ;;  %4832 = vmatpush3.bf16.msra.mxu0 %v5497_v53  ;;  %v6333_v53 = vpack.c.bf16 %v2157_v16, %v2156_v14 }
  0x6d   : > { %4641 = vmatprep.mubr.bf16.mxu1 %v5685_v54  ;;  %4865 = vmatprep.subr.bf16.mxu0 %v5499_v60 }
  0x6f   : > { %4802 = vmatmul.mubr.bf16.gmra.mrb[16].mxu0 %v6169_v61 }
  0x70   : > { %4805 = vmatprep.mubr.bf16.mxu0 %v6173_v8 }
  0x74   : > { %4642 = vmatmul.mubr.bf16.vlgmr.msra.gmra.mrb[0].mxu1 %v5887_v47  ;;  %v6192_v47 = vpack.c.bf16 %v6031_v55, %v6024_v49  ;;  %v5507_v49 = vld [vmem:[%s7409_s3 + $0x1b0] sm:$0xff]   ;;  %v5509_v55 = vld [vmem:[%s7409_s3 + $0x1b8] sm:$0xff]  }
  0x75   : > { %4645 = vmatprep.mubr.bf16.mxu1 %v5908_v57  ;;  %4674 = vmatpush3.bf16.msra.mxu1 %v6110_v50  ;;  %v2180_v50 = vpack.c.bf16 %v2145_v62, %v2144_v37  ;;  %v5527_v37 = vld [vmem:[%s7409_s3 + $0x228] sm:$0xff]   ;;  %v5528_v62 = vld [vmem:[%s7409_s3 + $0x230] sm:$0xff]  }
  0x76   : > { %4675 = vmatprep.subr.bf16.mxu1 %v5500_v9 }
  0x77   : > { %4806 = vmatmul.mubr.bf16.gmra.mrb[20].mxu0 %v6188_v13 }
  0x78   : > { %4809 = vmatprep.mubr.bf16.mxu0 %v6192_v47 }
  0x79   : > { %4676 = vmatpush3.bf16.msra.mxu1 %v5500_v9  ;;  %v2160_v9 = vld [vmem:[#allocation2 + $0xc2] sm:$0xff] }
  0x7a   : > { %4677 = vmatprep.subr.bf16.mxu1 %v5501_v12 }
  0x7c   : > { %4646 = vmatmul.mubr.bf16.gmra.mrb[4].mxu1 %v5920_v63 }
  0x7d   : > { %4649 = vmatprep.mubr.bf16.mxu1 %v5962_v17  ;;  %4678 = vmatpush3.bf16.msra.mxu1 %v5501_v12  ;;  %v2161_v12 = vld [vmem:[#allocation2 + $0xca] sm:$0xff] }
  0x7e   : > { %4679 = vmatprep.subr.bf16.mxu1 %v5503_v27 }
  0x7f   : > { %4810 = vmatmul.mubr.bf16.gmra.mrb[24].mxu0 %v6044_v0 }
  0x80   : > { %4813 = vmatprep.mubr.bf16.mxu0 %v6206_v30 }
  0x81   : > { %4680 = vmatpush3.bf16.msra.mxu1 %v5503_v27  ;;  %v5520_v27 = vld [vmem:[%s7409_s3 + $0x170] sm:$0xff]  }
  0x82   : > { %4681 = vmatprep.subr.bf16.mxu1 %v5504_v28 }
  0x84   : > { %4650 = vmatmul.mubr.bf16.gmra.mrb[8].mxu1 %v5973_v20 }
  0x85   : > { %4653 = vmatprep.mubr.bf16.mxu1 %v6016_v45  ;;  %4682 = vmatpush3.bf16.msra.mxu1 %v5504_v28 }
  0x86   : > { %4683 = vmatprep.subr.bf16.mxu1 %v5506_v31 }
  0x87   : > { %4814 = vmatmul.mubr.bf16.gmra.mrb[28].mxu0 %v6081_v15 }
  0x88   : > { %4833 = vmatprep.mubr.bf16.mxu0 %v5930_v1  ;;  %v5505_v1 = vld [vmem:[%s7409_s3 + $0x90] sm:$0xff]  }
  0x89   : > { %4684 = vmatpush3.bf16.msra.mxu1 %v5506_v31  ;;  %v6347_v31 = vpack.c.bf16 %v2161_v12, %v2160_v9 }
  0x8a   : > { %4685 = vmatprep.subr.bf16.mxu1 %v5507_v49 }
  0x8c   : > { %4654 = vmatmul.mubr.bf16.gmra.mrb[12].mxu1 %v6028_v52 }
  0x8d   : > { %4657 = vmatprep.mubr.bf16.mxu1 %v6068_v21  ;;  %4686 = vmatpush3.bf16.msra.mxu1 %v5507_v49  ;;  %v2163_v49 = vld [vmem:[#allocation2 + $0xe2] sm:$0xff] }
  0x8e   : > { %4687 = vmatprep.subr.bf16.mxu1 %v5509_v55 }
  0x8f   : > { %4834 = vmatmul.mubr.bf16.vlgmr.msra.gmra.mrb[0].mxu0 %v5968_v18  ;;  %v5510_v18 = vld [vmem:[%s7409_s3 + $0xa0] sm:$0xff]  }
  0x90   : > { %4866 = vmatpush3.bf16.msra.mxu0 %v5499_v60  ;;  %4837 = vmatprep.mubr.bf16.mxu0 %v5980_v22  ;;  %v5511_v22 = vld [vmem:[%s7409_s3 + $0xa8] sm:$0xff]   ;;  %v2159_v60 = vld [vmem:[#allocation2 + $0xb2] sm:$0xff] }
  0x91   : > { %4688 = vmatpush3.bf16.msra.mxu1 %v5509_v55  ;;  %4867 = vmatprep.subr.bf16.mxu0 %v5502_v6  ;;  %v2164_v55 = vld [vmem:[#allocation2 + $0xf2] sm:$0xff] }
  0x92   : > { %5175 = vmatprep.subr.bf16.mxu1 %v5668_v7 }
  0x94   : > { %4658 = vmatmul.mubr.bf16.gmra.mrb[16].mxu1 %v6079_v25  ;;  %4868 = vmatpush3.bf16.msra.mxu0 %v5502_v6  ;;  %v2165_v6 = vld [vmem:[#allocation2 + $0xfa] sm:$0xff] }
  0x95   : > { %4661 = vmatprep.mubr.bf16.mxu1 %v6096_v36  ;;  %4869 = vmatprep.subr.bf16.mxu0 %v5505_v1 }
  0x97   : > { %4838 = vmatmul.mubr.bf16.gmra.mrb[4].mxu0 %v6020_v46  ;;  %v5512_v46 = vld [vmem:[%s7409_s3 + $0xb0] sm:$0xff]  }
  0x98   : > { %4841 = vmatprep.mubr.bf16.mxu0 %v6040_v42  ;;  %4870 = vmatpush3.bf16.msra.mxu0 %v5505_v1  ;;  %v5513_v42 = vld [vmem:[%s7409_s3 + $0xb8] sm:$0xff]  }
  0x99   : > { %4871 = vmatprep.subr.bf16.mxu0 %v5508_v34 }
  0x9c   : > { %4662 = vmatmul.mubr.bf16.gmra.mrb[20].mxu1 %v6101_v39  ;;  %4872 = vmatpush3.bf16.msra.mxu0 %v5508_v34  ;;  %v6361_v34 = vpack.c.bf16 %v2165_v6, %v2164_v55  ;;  %v3122_v6 = vld [vmem:[%s7413_s7 + $0x10] sm:$0xff] }
  0x9d   : > { %4665 = vmatprep.mubr.bf16.mxu1 %v6118_v38  ;;  %4873 = vmatprep.subr.bf16.mxu0 %v5510_v18 }
  0x9f   : > { %4842 = vmatmul.mubr.bf16.gmra.mrb[8].mxu0 %v6077_v24  ;;  %v5514_v24 = vld [vmem:[%s7409_s3 + $0x140] sm:$0xff]  }
  0xa0   : > { %4845 = vmatprep.mubr.bf16.mxu0 %v6151_v32  ;;  %4874 = vmatpush3.bf16.msra.mxu0 %v5510_v18  ;;  %v2167_v18 = vld [vmem:[#allocation2 + $0x112] sm:$0xff] }
  0xa1   : > { %4875 = vmatprep.subr.bf16.mxu0 %v5511_v22 }
  0xa4   : > { %4666 = vmatmul.mubr.bf16.gmra.mrb[24].mxu1 %v6121_v59  ;;  %4876 = vmatpush3.bf16.msra.mxu0 %v5511_v22  ;;  %v2168_v22 = vld [vmem:[#allocation2 + $0x122] sm:$0xff] }
  0xa5   : > { %4669 = vmatprep.mubr.bf16.mxu1 %v6133_v10  ;;  %4877 = vmatprep.subr.bf16.mxu0 %v5512_v46 }
  0xa7   : > { %4846 = vmatmul.mubr.bf16.gmra.mrb[12].mxu0 %v6155_v33 }
  0xa8   : > { %4849 = vmatprep.mubr.bf16.mxu0 %v6169_v61  ;;  %4878 = vmatpush3.bf16.msra.mxu0 %v5512_v46  ;;  %v2169_v46 = vld [vmem:[#allocation2 + $0x12a] sm:$0xff] }
  0xa9   : > { %4879 = vmatprep.subr.bf16.mxu0 %v5513_v42 }
  0xac   : > { %4670 = vmatmul.mubr.bf16.gmra.mrb[28].mxu1 %v6135_v11  ;;  %4880 = vmatpush3.bf16.msra.mxu0 %v5513_v42 }
  0xad   : > { %4689 = vmatprep.mubr.bf16.mxu1 %v5908_v57  ;;  %4913 = vmatprep.subr.bf16.mxu0 %v5514_v24  ;;  %v5669_v57 = vld [vmem:[%s7409_s3 + $0x48] sm:$0xff]  }
  0xaf   : > { %4850 = vmatmul.mubr.bf16.gmra.mrb[16].mxu0 %v6173_v8 }
  0xb0   : > { %4853 = vmatprep.mubr.bf16.mxu0 %v6188_v13 }
  0xb4   : > { %4690 = vmatmul.mubr.bf16.vlgmr.msra.gmra.mrb[0].mxu1 %v5920_v63  ;;  %v5671_v63 = vld [vmem:[%s7409_s3 + $0x58] sm:$0xff]  }
  0xb5   : > { %4693 = vmatprep.mubr.bf16.mxu1 %v5962_v17  ;;  %5183 = vmatpush3.bf16.msra.mxu1 %v5668_v7  ;;  %v5672_v17 = vld [vmem:[%s7409_s3 + $0x60] sm:$0xff]  }
  0xb6   : > { %5176 = vmatprep.subr.bf16.mxu1 %v5669_v57  ;;  %v5522_v7 = vld [vmem:[%s7409_s3 + $0x200] sm:$0xff]  }
  0xb7   : > { %4854 = vmatmul.mubr.bf16.gmra.mrb[20].mxu0 %v6192_v47 }
  0xb8   : > { %4857 = vmatprep.mubr.bf16.mxu0 %v6044_v0 }
  0xb9   : > { %5184 = vmatpush3.bf16.msra.mxu1 %v5669_v57  ;;  %v2172_v57 = vld [vmem:[#allocation2 + $0x152] sm:$0xff] }
  0xba   : > { %5177 = vmatprep.subr.bf16.mxu1 %v5670_v35 }
  0xbc   : > { %4694 = vmatmul.mubr.bf16.gmra.mrb[4].mxu1 %v5973_v20  ;;  %v1350_v20 = vld [vmem:[#allocation2 + $0x199] sm:$0xff] }
  0xbd   : > { %4697 = vmatprep.mubr.bf16.mxu1 %v6016_v45  ;;  %5185 = vmatpush3.bf16.msra.mxu1 %v5670_v35  ;;  %v1351_v45 = vld [vmem:[#allocation2 + $0x1a1] sm:$0xff] }
  0xbe   : > { %5178 = vmatprep.subr.bf16.mxu1 %v5671_v63  ;;  %v1369_v48 = vpack.c.bf16 %v1351_v45, %v1350_v20  ;;  %v2173_v35 = vld [vmem:[#allocation2 + $0x15a] sm:$0xff]  ;;  %v2174_v20 = vld [vmem:[#allocation2 + $0x16a] sm:$0xff] }
  0xbf   : > { %4858 = vmatmul.mubr.bf16.gmra.mrb[24].mxu0 %v6206_v30 }
  0xc0   : > { %4861 = vmatprep.mubr.bf16.mxu0 %v6081_v15  ;;  %v5674_v15 = vld [vmem:[%s7409_s3 + $0x70] sm:$0xff]  }
  0xc1   : > { %5186 = vmatpush3.bf16.msra.mxu1 %v5671_v63 }
  0xc2   : > { %5179 = vmatprep.subr.bf16.mxu1 %v5672_v17 }
  0xc4   : > { %4698 = vmatmul.mubr.bf16.gmra.mrb[8].mxu1 %v6028_v52  ;;  %v2146_v52 = vld [vmem:[#allocation2 + $0x1a] sm:$0xff] }
  0xc5   : > { %4701 = vmatprep.mubr.bf16.mxu1 %v6068_v21  ;;  %5187 = vmatpush3.bf16.msra.mxu1 %v5672_v17  ;;  %v2147_v21 = vld [vmem:[#allocation2 + $0x22] sm:$0xff]  ;;  %v2194_v17 = vpack.c.bf16 %v2173_v35, %v2172_v57 }
  0xc6   : > { %5180 = vmatprep.subr.bf16.mxu1 %v5673_v40  ;;  %v6302_v58 = vpack.c.bf16 %v2147_v21, %v2146_v52  ;;  %v2178_v21 = vld [vmem:[#allocation2 + $0x19a] sm:$0xff] }
  0xc7   : > { %4862 = vmatmul.mubr.bf16.gmra.mrb[28].mxu0 %v1369_v48  ;;  %v2176_v48 = vld [vmem:[#allocation2 + $0x182] sm:$0xff] }
  0xc8   : > { %4881 = vmatprep.mubr.bf16.mxu0 %v2180_v50  ;;  %v2177_v50 = vld [vmem:[#allocation2 + $0x18a] sm:$0xff]  ;;  %v3128_v35 = vld [vmem:[%s7413_s7 + $0x40] sm:$0xff] }
  0xc9   : > { %5188 = vmatpush3.bf16.msra.mxu1 %v5673_v40  ;;  %v5529_v40 = vld [vmem:[%s7409_s3 + $0x238] sm:$0xff]   ;;  %v2196_v52 = vpack.c.bf16 %v2177_v50, %v2176_v48 }
  0xca   : > { %5181 = vmatprep.subr.bf16.mxu1 %v5837_v26  ;;  %v6304_v26 = vpack.c.bf16 %v2149_v56, %v2148_v51 }
  0xcc   : > { %4702 = vmatmul.mubr.bf16.gmra.mrb[12].mxu1 %v6079_v25  ;;  %v5515_v25 = vld [vmem:[%s7409_s3 + $0x148] sm:$0xff]  }
  0xcd   : > { %4705 = vmatprep.mubr.bf16.mxu1 %v6096_v36  ;;  %5189 = vmatpush3.bf16.msra.mxu1 %v5674_v15  ;;  %v2150_v36 = vld [vmem:[#allocation2 + $0x4a] sm:$0xff]  ;;  %v2179_v15 = vld [vmem:[#allocation2 + $0x1a2] sm:$0xff] }
  0xce   : > { %5182 = vmatprep.subr.bf16.mxu1 %v5875_v41  ;;  %v6317_v3 = vpack.c.bf16 %v2151_v2, %v2150_v36 }
  0xcf   : > { %4882 = vmatmul.mubr.bf16.vlgmr.msra.gmra.mrb[0].mxu0 %v6302_v58 }
  0xd0   : > { %4914 = vmatpush3.bf16.msra.mxu0 %v5514_v24  ;;  %4885 = vmatprep.mubr.bf16.mxu0 %v6304_v26  ;;  %v6369_v24 = vpack.c.bf16 %v2169_v46, %v2168_v22  ;;  %v3124_v22 = vld [vmem:[%s7413_s7 + $0x20] sm:$0xff]  ;;  %v3125_v46 = vld [vmem:[%s7413_s7 + $0x28] sm:$0xff] }
  0xd1   : > { %5190 = vmatpush3.bf16.msra.mxu1 %v5875_v41  ;;  %4915 = vmatprep.subr.bf16.mxu0 %v5515_v25  ;;  %v5516_v41 = vld [vmem:[%s7409_s3 + $0x150] sm:$0xff]  }
  0xd2   : > { %5127 = vmatprep.subr.bf16.mxu1 %v5685_v54 }
  0xd4   : > { %4706 = vmatmul.mubr.bf16.gmra.mrb[16].mxu1 %v6101_v39  ;;  %4916 = vmatpush3.bf16.msra.mxu0 %v5515_v25  ;;  %v6319_v39 = vpack.c.bf16 %v2153_v44, %v2152_v43 }
  0xd5   : > { %4709 = vmatprep.mubr.bf16.mxu1 %v6118_v38  ;;  %4917 = vmatprep.subr.bf16.mxu0 %v5516_v41  ;;  %v5517_v38 = vld [vmem:[%s7409_s3 + $0x158] sm:$0xff]  }
  0xd7   : > { %4886 = vmatmul.mubr.bf16.gmra.mrb[4].mxu0 %v6317_v3 }
  0xd8   : > { %4889 = vmatprep.mubr.bf16.mxu0 %v6319_v39  ;;  %4918 = vmatpush3.bf16.msra.mxu0 %v5516_v41 }
  0xd9   : > { %4919 = vmatprep.subr.bf16.mxu0 %v5517_v38 }
  0xdc   : > { %4710 = vmatmul.mubr.bf16.gmra.mrb[20].mxu1 %v6121_v59  ;;  %4920 = vmatpush3.bf16.msra.mxu0 %v5517_v38  ;;  %v5519_v59 = vld [vmem:[%s7409_s3 + $0x168] sm:$0xff]  }
  0xdd   : > { %4713 = vmatprep.mubr.bf16.mxu1 %v6133_v10  ;;  %4921 = vmatprep.subr.bf16.mxu0 %v5518_v19  ;;  %v2158_v10 = vld [vmem:[#allocation2 + $0xaa] sm:$0xff] }
  0xde   : > { %v6345_v28 = vpack.c.bf16 %v2159_v60, %v2158_v10 }
  0xdf   : > { %4890 = vmatmul.mubr.bf16.gmra.mrb[8].mxu0 %v6331_v23 }
  0xe0   : > { %4893 = vmatprep.mubr.bf16.mxu0 %v6333_v53  ;;  %4922 = vmatpush3.bf16.msra.mxu0 %v5518_v19 }
  0xe1   : > { %4923 = vmatprep.subr.bf16.mxu0 %v5519_v59 }
  0xe4   : > { %4714 = vmatmul.mubr.bf16.gmra.mrb[24].mxu1 %v6135_v11  ;;  %4924 = vmatpush3.bf16.msra.mxu0 %v5519_v59  ;;  %v5521_v11 = vld [vmem:[%s7409_s3 + $0x178] sm:$0xff]  }
  0xe5   : > { %4717 = vmatprep.mubr.bf16.mxu1 %v6147_v29  ;;  %4925 = vmatprep.subr.bf16.mxu0 %v5520_v27  ;;  %v2162_v29 = vld [vmem:[#allocation2 + $0xda] sm:$0xff] }
  0xe6   : > { %v6359_v1 = vpack.c.bf16 %v2163_v49, %v2162_v29  ;;  %v3121_v29 = vld [vmem:[%s7413_s7 + $0x8] sm:$0xff] }
  0xe7   : > { %4894 = vmatmul.mubr.bf16.gmra.mrb[12].mxu0 %v6345_v28 }
  0xe8   : > { %4897 = vmatprep.mubr.bf16.mxu0 %v6347_v31  ;;  %4926 = vmatpush3.bf16.msra.mxu0 %v5520_v27 }
  0xe9   : > { %4927 = vmatprep.subr.bf16.mxu0 %v5521_v11 }
  0xec   : > { %4718 = vmatmul.mubr.bf16.gmra.mrb[28].mxu1 %v5685_v54  ;;  %4928 = vmatpush3.bf16.msra.mxu0 %v5521_v11  ;;  %v3120_v11 = vld [vmem:[%s7413_s7] sm:$0xff] }
  0xed   : > { %4753 = vmatprep.mubr.bf16.mxu1 %v6151_v32  ;;  %4961 = vmatprep.subr.bf16.mxu0 %v5522_v7  ;;  %v2166_v32 = vld [vmem:[#allocation2 + $0x10a] sm:$0xff]  ;;  %v6484_v55 = vpack.c.bf16 %v3121_v29, %v3120_v11 }
  0xee   : > { %v6367_v42 = vpack.c.bf16 %v2167_v18, %v2166_v32 }
  0xef   : > { %4898 = vmatmul.mubr.bf16.gmra.mrb[16].mxu0 %v6359_v1 }
  0xf0   : > { %4901 = vmatprep.mubr.bf16.mxu0 %v6361_v34 }
  0xf4   : > { %4754 = vmatmul.mubr.bf16.vlgmr.msra.gmra.mrb[16].mxu1 %v6155_v33  ;;  %v2170_v33 = vld [vmem:[#allocation2 + $0x13a] sm:$0xff] }
  0xf5   : > { %4757 = vmatprep.mubr.bf16.mxu1 %v6169_v61  ;;  %v2171_v61 = vld [vmem:[#allocation2 + $0x142] sm:$0xff]  ;;  %5129 = vmatpush3.bf16.msra.mxu1 %v6484_v55 }
  0xf6   : > { %v2193_v63 = vpack.c.bf16 %v2171_v61, %v2170_v33  ;;  %5130 = vmatprep.subr.bf16.mxu1 %v5685_v54  ;;  %v3126_v33 = vld [vmem:[%s7413_s7 + $0x30] sm:$0xff]  ;;  %v3127_v61 = vld [vmem:[%s7413_s7 + $0x38] sm:$0xff] }
  0xf7   : > { %4902 = vmatmul.mubr.bf16.gmra.mrb[20].mxu0 %v6367_v42  ;;  %v6523_v57 = vpack.c.bf16 %v3127_v61, %v3126_v33 }
  0xf8   : > { %4905 = vmatprep.mubr.bf16.mxu0 %v6369_v24 }
  0xfc   : > { %4758 = vmatmul.mubr.bf16.gmra.mrb[20].mxu1 %v6173_v8  ;;  %v2175_v8 = vld [vmem:[#allocation2 + $0x172] sm:$0xff] }
  0xfd   : > { %4761 = vmatprep.mubr.bf16.mxu1 %v6188_v13  ;;  %v2195_v45 = vpack.c.bf16 %v2175_v8, %v2174_v20  ;;  %v5523_v13 = vld [vmem:[%s7409_s3 + $0x208] sm:$0xff]   ;;  %v3130_v20 = vld [vmem:[%s7413_s7 + $0x50] sm:$0xff]  ;;  %v3131_v8 = vld [vmem:[%s7413_s7 + $0x58] sm:$0xff] }
  0xff   : > { %4906 = vmatmul.mubr.bf16.gmra.mrb[24].mxu0 %v2193_v63 }
 0x100   : > { %4909 = vmatprep.mubr.bf16.mxu0 %v2194_v17 }
 0x104   : > { %4762 = vmatmul.mubr.bf16.gmra.mrb[24].mxu1 %v6192_v47  ;;  %v5525_v47 = vld [vmem:[%s7409_s3 + $0x218] sm:$0xff]  }
 0x105   : > { %4765 = vmatprep.mubr.bf16.mxu1 %v6044_v0  ;;  %v5524_v0 = vld [vmem:[%s7409_s3 + $0x210] sm:$0xff]  }
 0x107   : > { %4910 = vmatmul.mubr.bf16.gmra.mrb[28].mxu0 %v2195_v45 }
 0x108   : > { %4929 = vmatprep.mubr.bf16.mxu0 %v6302_v58 }
 0x10c   : > { %4766 = vmatmul.mubr.bf16.gmra.mrb[28].mxu1 %v6206_v30  ;;  %v5526_v30 = vld [vmem:[%s7409_s3 + $0x220] sm:$0xff]  }
 0x10f   : > { %4930 = vmatmul.mubr.bf16.vlgmr.msra.gmra.mrb[0].mxu0 %v6304_v26 }
 0x110   : > { %4962 = vmatpush3.bf16.msra.mxu0 %v5522_v7  ;;  %4933 = vmatprep.mubr.bf16.mxu0 %v6317_v3  ;;  %v3123_v7 = vld [vmem:[%s7413_s7 + $0x18] sm:$0xff] }
 0x111   : > { %4963 = vmatprep.subr.bf16.mxu0 %v5523_v13 }
 0x114   : > { %4964 = vmatpush3.bf16.msra.mxu0 %v5523_v13  ;;  %v3132_v13 = vld [vmem:[%s7413_s7 + $0x60] sm:$0xff] }
 0x115   : > { %4965 = vmatprep.subr.bf16.mxu0 %v5524_v0 }
 0x117   : > { %4934 = vmatmul.mubr.bf16.gmra.mrb[4].mxu0 %v6319_v39 }
 0x118   : > { %4937 = vmatprep.mubr.bf16.mxu0 %v6331_v23  ;;  %4966 = vmatpush3.bf16.msra.mxu0 %v5524_v0  ;;  %v3133_v0 = vld [vmem:[%s7413_s7 + $0x68] sm:$0xff] }
 0x119   : > { %4967 = vmatprep.subr.bf16.mxu0 %v5525_v47 }
 0x11c   : > { %4968 = vmatpush3.bf16.msra.mxu0 %v5525_v47  ;;  %v6553_v47 = vpack.c.bf16 %v3133_v0, %v3132_v13 }
 0x11d   : > { %4969 = vmatprep.subr.bf16.mxu0 %v5526_v30 }
 0x11f   : > { %4938 = vmatmul.mubr.bf16.gmra.mrb[8].mxu0 %v6333_v53 }
 0x120   : > { %4941 = vmatprep.mubr.bf16.mxu0 %v6345_v28  ;;  %4970 = vmatpush3.bf16.msra.mxu0 %v5526_v30  ;;  %v3134_v30 = vld [vmem:[%s7413_s7 + $0x70] sm:$0xff] }
 0x121   : > { %4971 = vmatprep.subr.bf16.mxu0 %v5527_v37 }
 0x124   : > { %4972 = vmatpush3.bf16.msra.mxu0 %v5527_v37  ;;  %v3135_v37 = vld [vmem:[%s7413_s7 + $0x78] sm:$0xff] }
 0x125   : > { %4973 = vmatprep.subr.bf16.mxu0 %v5528_v62 }
 0x127   : > { %4942 = vmatmul.mubr.bf16.gmra.mrb[12].mxu0 %v6347_v31 }
 0x128   : > { %4945 = vmatprep.mubr.bf16.mxu0 %v6359_v1  ;;  %4974 = vmatpush3.bf16.msra.mxu0 %v5528_v62  ;;  %v6561_v62 = vld [vmem:[#allocation2] sm:$0xff] }
 0x129   : > { %4975 = vmatprep.subr.bf16.mxu0 %v5529_v40  ;;  %5041 = vmatprep.mubr.msk.f32.mxu1 %vm5686_vm0, %v6561_v62 }
 0x12c   : > { %4976 = vmatpush3.bf16.msra.mxu0 %v5529_v40  ;;  %v6566_v40 = vpack.c.bf16 %v3135_v37, %v3134_v30 }
 0x12f   : > { %4946 = vmatmul.mubr.bf16.gmra.mrb[16].mxu0 %v6361_v34 }
 0x130   : > { %4949 = vmatprep.mubr.bf16.mxu0 %v6367_v42 }
 0x137   : > { %4950 = vmatmul.mubr.bf16.gmra.mrb[20].mxu0 %v6369_v24 }
 0x138   : > { %4953 = vmatprep.mubr.bf16.mxu0 %v2193_v63 }
 0x13f   : > { %4954 = vmatmul.mubr.bf16.gmra.mrb[24].mxu0 %v2194_v17 }
 0x140   : > { %4957 = vmatprep.mubr.bf16.mxu0 %v2195_v45 }
 0x147   : > { %4958 = vmatmul.mubr.bf16.gmra.mrb[28].mxu0 %v2196_v52 }
 0x148   : > { %4977 = vmatprep.mubr.bf16.mxu0 %v6304_v26  ;;  %v2197_v26 = vpack.c.bf16 %v2179_v15, %v2178_v21 }
 0x14f   : > { %4978 = vmatmul.mubr.bf16.vlgmr.msra.gmra.mrb[0].mxu0 %v6317_v3 }
 0x150   : > { %4981 = vmatprep.mubr.bf16.mxu0 %v6319_v39 }
 0x157   : > { %4982 = vmatmul.mubr.bf16.gmra.mrb[4].mxu0 %v6331_v23 }
 0x158   : > { %4985 = vmatprep.mubr.bf16.mxu0 %v6333_v53 }
 0x15f   : > { %4986 = vmatmul.mubr.bf16.gmra.mrb[8].mxu0 %v6345_v28 }
 0x160   : > { %4989 = vmatprep.mubr.bf16.mxu0 %v6347_v31 }
 0x167   : > { %4990 = vmatmul.mubr.bf16.gmra.mrb[12].mxu0 %v6359_v1  ;;  %v6495_v1 = vpack.c.bf16 %v3123_v7, %v3122_v6 }
 0x168   : > { %4993 = vmatprep.mubr.bf16.mxu0 %v6361_v34 }
 0x169   : > { %5132 = vmatpush3.bf16.msra.mxu1 %v6495_v1 }
 0x16a   : > { %5133 = vmatprep.subr.bf16.mxu1 %v5685_v54 }
 0x16f   : > { %4994 = vmatmul.mubr.bf16.gmra.mrb[16].mxu0 %v6367_v42 }
 0x170   : > { %4997 = vmatprep.mubr.bf16.mxu0 %v6369_v24  ;;  %v6513_v24 = vpack.c.bf16 %v3125_v46, %v3124_v22 }
 0x172   : > { %5135 = vmatpush3.bf16.msra.mxu1 %v6513_v24 }
 0x173   : > { %5136 = vmatprep.subr.bf16.mxu1 %v5685_v54 }
 0x176   : > { %5138 = vmatpush3.bf16.msra.mxu1 %v6523_v57 }
 0x177   : > { %4998 = vmatmul.mubr.bf16.gmra.mrb[20].mxu0 %v2193_v63  ;;  %5139 = vmatprep.subr.bf16.mxu1 %v5685_v54  ;;  %v3129_v63 = vld [vmem:[%s7413_s7 + $0x48] sm:$0xff] }
 0x178   : > { %5001 = vmatprep.mubr.bf16.mxu0 %v2194_v17  ;;  %v6533_v17 = vpack.c.bf16 %v3129_v63, %v3128_v35 }
 0x17a   : > { %5141 = vmatpush3.bf16.msra.mxu1 %v6533_v17 }
 0x17b   : > { %5142 = vmatprep.subr.bf16.mxu1 %v5685_v54 }
 0x17f   : > { %5002 = vmatmul.mubr.bf16.gmra.mrb[24].mxu0 %v2195_v45  ;;  %v6543_v45 = vpack.c.bf16 %v3131_v8, %v3130_v20 }
 0x180   : > { %5005 = vmatprep.mubr.bf16.mxu0 %v2196_v52  ;;  %v6575_v52 = vld [vmem:[%s7410_s4] ss:$0 sm:$0xff] }
 0x181   : > { %5144 = vmatpush3.bf16.msra.mxu1 %v6543_v45 }
 0x182   : > { %5145 = vmatprep.subr.bf16.mxu1 %v5685_v54 }
 0x185   : > { %5147 = vmatpush3.bf16.msra.mxu1 %v6553_v47 }
 0x186   : > { %5148 = vmatprep.subr.bf16.mxu1 %v5685_v54 }
 0x187   : > { %v6422_v51 = vpop.f32.mrb[0].mxu1  ;;  %5006 = vmatmul.mubr.bf16.gmra.mrb[28].mxu0 %v2197_v26 }
 0x188   : > { %v6424_v56 = vpop.f32.mrb[1].mxu1 }
 0x189   : > { %v6426_v58 = vpop.f32.mrb[2].mxu1  ;;  %5150 = vmatpush3.bf16.msra.mxu1 %v6566_v40 }
 0x18a   : > { %v6428_v25 = vpop.f32.mrb[3].mxu1  ;;  %5151 = vmatprep.subr.bf16.mxu1 %v5685_v54 }
 0x18f   : > { %v6430_v36 = vpop.f32.mrb[4].mxu1 }
 0x190   : > { %v6432_v2 = vpop.f32.mrb[5].mxu1 }
 0x191   : > { %v6434_v43 = vpop.f32.mrb[6].mxu1 }
 0x192   : > { %v6436_v44 = vpop.f32.mrb[7].mxu1 }
 0x197   : > { %v6438_v41 = vpop.f32.mrb[8].mxu1 }
 0x198   : > { %v6440_v3 = vpop.f32.mrb[9].mxu1 }
 0x199   : > { %v6442_v39 = vpop.f32.mrb[10].mxu1 }
 0x19a   : > { %v6444_v38 = vpop.f32.mrb[11].mxu1 }
 0x19f   : > { %v6446_v4 = vpop.f32.mrb[12].mxu1 }
 0x1a0   : > { %v6448_v5 = vpop.f32.mrb[13].mxu1 }
 0x1a1   : > { %v6450_v14 = vpop.f32.mrb[14].mxu1 }
 0x1a2   : > { %v6452_v16 = vpop.f32.mrb[15].mxu1 }
 0x1c7   : > { %v6454_v19 = vpop.f32.mrb[16].mxu1 }
 0x1c8   : > { %v6456_v23 = vpop.f32.mrb[17].mxu1 }
 0x1c9   : > { %v6458_v53 = vpop.f32.mrb[18].mxu1 }
 0x1ca   : > { %v6460_v59 = vpop.f32.mrb[19].mxu1 }
 0x1cf   : > { %v6462_v10 = vpop.f32.mrb[20].mxu1 }
 0x1d0   : > { %v6464_v60 = vpop.f32.mrb[21].mxu1 }
 0x1d1   : > { %v6466_v9 = vpop.f32.mrb[22].mxu1 }
 0x1d2   : > { %v6468_v12 = vpop.f32.mrb[23].mxu1 }
 0x1d7   : > { %v6470_v27 = vpop.f32.mrb[24].mxu1 }
 0x1d8   : > { %v6472_v28 = vpop.f32.mrb[25].mxu1 }
 0x1d9   : > { %v6474_v31 = vpop.f32.mrb[26].mxu1 }
 0x1da   : > { %v6482_v49 = vpop.f32.mrb[27].mxu1 }
 0x1df   : > { %v6497_v34 = vpop.f32.mrb[28].mxu1 }
 0x1e0   : > { %v6499_v32 = vpop.f32.mrb[29].mxu1 }
 0x1e1   : > { %v6502_v18 = vpop.f32.mrb[30].mxu1 }
 0x1e2   : > { %v6511_v42 = vpop.f32.mrb[31].mxu1 }
 0x222   : > { %v4979_v48 = vpop.f32.mrb[0].mxu0 }
 0x223   : > { %v5191_v50 = vadd.f32 %v4979_v48, %v6422_v51  ;;  %v2813_v21 = vpop.f32.mrb[1].mxu0 }
 0x224   : > { %v5192_v15 = vadd.f32 %v2813_v21, %v6424_v56  ;;  %v4980_v26 = vpop.f32.mrb[2].mxu0 }
 0x225   : > { %v5193_v11 = vadd.f32 %v4980_v26, %v6426_v58  ;;  %v2816_v29 = vpop.f32.mrb[3].mxu0  ;;  %v6584_v22 = vadd.f32 %v5191_v50, %v6575_v52 }
 0x226   : > { %v6580_v6 = vadd.f32 %v5192_v15, %v6575_v52  ;;  %v5194_v7 = vadd.f32 %v2816_v29, %v6428_v25 }
 0x227   : > { %v6590_v46 = vadd.f32 %v5193_v11, %v6575_v52  ;;  %v3052_v63 = vmul.f32 %v6584_v22, %v6584_v22 }
 0x228   : > { %v6587_v51 = vadd.f32 %v5194_v7, %v6575_v52  ;;  %v3050_v56 = vmul.f32 %v6580_v6, %v6580_v6 }
 0x229   : > { %v3053_v30 = vmul.f32 %v6590_v46, %v6590_v46 }
 0x22a   : > { %v3011_v58 = vadd.f32 %v6587_v51, %v6580_v6  ;;  %v3051_v33 = vmul.f32 %v6587_v51, %v6587_v51  ;;  %v4983_v61 = vpop.f32.mrb[4].mxu0 }
 0x22b   : > { %v5195_v25 = vadd.f32 %v4983_v61, %v6430_v36  ;;  %v2829_v35 = vpop.f32.mrb[5].mxu0 }
 0x22c   : > { %v3012_v20 = vadd.f32 %v3011_v58, %v6584_v22  ;;  %v3082_v8 = vadd.f32 %v3051_v33, %v3050_v56  ;;  %v5196_v13 = vadd.f32 %v2829_v35, %v6432_v2  ;;  %v4984_v0 = vpop.f32.mrb[6].mxu0 }
 0x22d   : > { %v5197_v37 = vadd.f32 %v4984_v0, %v6434_v43  ;;  %v2832_v48 = vpop.f32.mrb[7].mxu0  ;;  %v6612_v26 = vadd.f32 %v5195_v25, %v6575_v52 }
 0x22e   : > { %v3083_v50 = vadd.f32 %v3082_v8, %v3052_v63  ;;  %v6607_v21 = vadd.f32 %v5196_v13, %v6575_v52  ;;  %v3013_v36 = vadd.f32 %v3012_v20, %v6590_v46  ;;  %v5198_v15 = vadd.f32 %v2832_v48, %v6436_v44 }
 0x22f   : > { %v6621_v7 = vadd.f32 %v5197_v37, %v6575_v52  ;;  %v3056_v35 = vmul.f32 %v6612_v26, %v6612_v26 }
 0x230   : > { %v3014_v2 = vadd.f32 %v3013_v36, %v6607_v21  ;;  %v3054_v11 = vmul.f32 %v6607_v21, %v6607_v21  ;;  %v3084_v29 = vadd.f32 %v3083_v50, %v3053_v30  ;;  %v6618_v43 = vadd.f32 %v5198_v15, %v6575_v52 }
 0x231   : > { %v3057_v0 = vmul.f32 %v6621_v7, %v6621_v7 }
 0x232   : > { %v3085_v56 = vadd.f32 %v3084_v29, %v3054_v11  ;;  %v3015_v58 = vadd.f32 %v3014_v2, %v6618_v43  ;;  %v3055_v44 = vmul.f32 %v6618_v43, %v6618_v43  ;;  %v4987_v33 = vpop.f32.mrb[8].mxu0 }
 0x233   : > { %v5199_v61 = vadd.f32 %v4987_v33, %v6438_v41  ;;  %v2845_v25 = vpop.f32.mrb[9].mxu0 }
 0x234   : > { %v3016_v63 = vadd.f32 %v3015_v58, %v6612_v26  ;;  %v3086_v20 = vadd.f32 %v3085_v56, %v3055_v44  ;;  %v5200_v8 = vadd.f32 %v2845_v25, %v6440_v3  ;;  %v4988_v13 = vpop.f32.mrb[10].mxu0 }
 0x235   : > { %v5201_v30 = vadd.f32 %v4988_v13, %v6442_v39  ;;  %v2848_v37 = vpop.f32.mrb[11].mxu0  ;;  %v6640_v15 = vadd.f32 %v5199_v61, %v6575_v52 }
 0x236   : > { %v3087_v48 = vadd.f32 %v3086_v20, %v3056_v35  ;;  %v6635_v50 = vadd.f32 %v5200_v8, %v6575_v52  ;;  %v3017_v41 = vadd.f32 %v3016_v63, %v6621_v7  ;;  %v5202_v36 = vadd.f32 %v2848_v37, %v6444_v38 }
 0x237   : > { %v6649_v29 = vadd.f32 %v5201_v30, %v6575_v52  ;;  %v3060_v25 = vmul.f32 %v6640_v15, %v6640_v15 }
 0x238   : > { %v3018_v3 = vadd.f32 %v3017_v41, %v6635_v50  ;;  %v3058_v2 = vmul.f32 %v6635_v50, %v6635_v50  ;;  %v3088_v11 = vadd.f32 %v3087_v48, %v3057_v0  ;;  %v6646_v39 = vadd.f32 %v5202_v36, %v6575_v52 }
 0x239   : > { %v3061_v13 = vmul.f32 %v6649_v29, %v6649_v29 }
 0x23a   : > { %v3089_v56 = vadd.f32 %v3088_v11, %v3058_v2  ;;  %v3019_v58 = vadd.f32 %v3018_v3, %v6646_v39  ;;  %v3059_v38 = vmul.f32 %v6646_v39, %v6646_v39  ;;  %v4991_v44 = vpop.f32.mrb[12].mxu0 }
 0x23b   : > { %v5203_v33 = vadd.f32 %v4991_v44, %v6446_v4  ;;  %v2861_v61 = vpop.f32.mrb[13].mxu0 }
 0x23c   : > { %v3020_v35 = vadd.f32 %v3019_v58, %v6640_v15  ;;  %v3090_v63 = vadd.f32 %v3089_v56, %v3059_v38  ;;  %v5204_v20 = vadd.f32 %v2861_v61, %v6448_v5  ;;  %v4992_v8 = vpop.f32.mrb[14].mxu0 }
 0x23d   : > { %v5205_v0 = vadd.f32 %v4992_v8, %v6450_v14  ;;  %v2864_v30 = vpop.f32.mrb[15].mxu0  ;;  %v6668_v36 = vadd.f32 %v5203_v33, %v6575_v52 }
 0x23e   : > { %v3091_v37 = vadd.f32 %v3090_v63, %v3060_v25  ;;  %v6663_v48 = vadd.f32 %v5204_v20, %v6575_v52  ;;  %v3021_v4 = vadd.f32 %v3020_v35, %v6649_v29  ;;  %v5206_v41 = vadd.f32 %v2864_v30, %v6452_v16 }
 0x23f   : > { %v6677_v11 = vadd.f32 %v5205_v0, %v6575_v52  ;;  %v3064_v61 = vmul.f32 %v6668_v36, %v6668_v36 }
 0x240   : > { %v3022_v5 = vadd.f32 %v3021_v4, %v6663_v48  ;;  %v3062_v3 = vmul.f32 %v6663_v48, %v6663_v48  ;;  %v3092_v2 = vadd.f32 %v3091_v37, %v3061_v13  ;;  %v6674_v14 = vadd.f32 %v5206_v41, %v6575_v52 }
 0x241   : > { %v3065_v8 = vmul.f32 %v6677_v11, %v6677_v11 }
 0x242   : > { %v3093_v56 = vadd.f32 %v3092_v2, %v3062_v3  ;;  %v3023_v58 = vadd.f32 %v3022_v5, %v6674_v14  ;;  %v3063_v16 = vmul.f32 %v6674_v14, %v6674_v14  ;;  %v4995_v38 = vpop.f32.mrb[16].mxu0 }
 0x243   : > { %v5207_v44 = vadd.f32 %v4995_v38, %v6454_v19  ;;  %v2877_v33 = vpop.f32.mrb[17].mxu0 }
 0x244   : > { %v3024_v25 = vadd.f32 %v3023_v58, %v6668_v36  ;;  %v3094_v35 = vadd.f32 %v3093_v56, %v3063_v16  ;;  %v5208_v63 = vadd.f32 %v2877_v33, %v6456_v23  ;;  %v4996_v20 = vpop.f32.mrb[18].mxu0 }
 0x245   : > { %v5209_v13 = vadd.f32 %v4996_v20, %v6458_v53  ;;  %v2880_v0 = vpop.f32.mrb[19].mxu0  ;;  %v6696_v41 = vadd.f32 %v5207_v44, %v6575_v52 }
 0x246   : > { %v3095_v30 = vadd.f32 %v3094_v35, %v3064_v61  ;;  %v6691_v37 = vadd.f32 %v5208_v63, %v6575_v52  ;;  %v3025_v19 = vadd.f32 %v3024_v25, %v6677_v11  ;;  %v5210_v4 = vadd.f32 %v2880_v0, %v6460_v59 }
 0x247   : > { %v6705_v2 = vadd.f32 %v5209_v13, %v6575_v52  ;;  %v3068_v33 = vmul.f32 %v6696_v41, %v6696_v41 }
 0x248   : > { %v3026_v23 = vadd.f32 %v3025_v19, %v6691_v37  ;;  %v3066_v5 = vmul.f32 %v6691_v37, %v6691_v37  ;;  %v3096_v3 = vadd.f32 %v3095_v30, %v3065_v8  ;;  %v6702_v53 = vadd.f32 %v5210_v4, %v6575_v52 }
 0x249   : > { %v3069_v20 = vmul.f32 %v6705_v2, %v6705_v2 }
 0x24a   : > { %v3097_v56 = vadd.f32 %v3096_v3, %v3066_v5  ;;  %v3027_v58 = vadd.f32 %v3026_v23, %v6702_v53  ;;  %v3067_v59 = vmul.f32 %v6702_v53, %v6702_v53  ;;  %v4999_v16 = vpop.f32.mrb[20].mxu0 }
 0x24b   : > { %v5211_v38 = vadd.f32 %v4999_v16, %v6462_v10  ;;  %v2893_v44 = vpop.f32.mrb[21].mxu0 }
 0x24c   : > { %v3028_v61 = vadd.f32 %v3027_v58, %v6696_v41  ;;  %v3098_v25 = vadd.f32 %v3097_v56, %v3067_v59  ;;  %v5212_v35 = vadd.f32 %v2893_v44, %v6464_v60  ;;  %v5000_v63 = vpop.f32.mrb[22].mxu0 }
 0x24d   : > { %v5213_v8 = vadd.f32 %v5000_v63, %v6466_v9  ;;  %v2896_v13 = vpop.f32.mrb[23].mxu0  ;;  %v6724_v4 = vadd.f32 %v5211_v38, %v6575_v52 }
 0x24e   : > { %v3099_v0 = vadd.f32 %v3098_v25, %v3068_v33  ;;  %v6719_v30 = vadd.f32 %v5212_v35, %v6575_v52  ;;  %v3029_v10 = vadd.f32 %v3028_v61, %v6705_v2  ;;  %v5214_v19 = vadd.f32 %v2896_v13, %v6468_v12 }
 0x24f   : > { %v6733_v3 = vadd.f32 %v5213_v8, %v6575_v52  ;;  %v3072_v44 = vmul.f32 %v6724_v4, %v6724_v4 }
 0x250   : > { %v3030_v60 = vadd.f32 %v3029_v10, %v6719_v30  ;;  %v3070_v23 = vmul.f32 %v6719_v30, %v6719_v30  ;;  %v3100_v5 = vadd.f32 %v3099_v0, %v3069_v20  ;;  %v6730_v9 = vadd.f32 %v5214_v19, %v6575_v52 }
 0x251   : > { %v3073_v63 = vmul.f32 %v6733_v3, %v6733_v3 }
 0x252   : > { %v3101_v56 = vadd.f32 %v3100_v5, %v3070_v23  ;;  %v3031_v58 = vadd.f32 %v3030_v60, %v6730_v9  ;;  %v3071_v12 = vmul.f32 %v6730_v9, %v6730_v9  ;;  %v5003_v59 = vpop.f32.mrb[24].mxu0 }
 0x253   : > { %v5215_v16 = vadd.f32 %v5003_v59, %v6470_v27  ;;  %v2909_v38 = vpop.f32.mrb[25].mxu0 }
 0x254   : > { %v3032_v33 = vadd.f32 %v3031_v58, %v6724_v4  ;;  %v3102_v61 = vadd.f32 %v3101_v56, %v3071_v12  ;;  %v5216_v25 = vadd.f32 %v2909_v38, %v6472_v28  ;;  %v5004_v35 = vpop.f32.mrb[26].mxu0 }
 0x255   : > { %v5217_v20 = vadd.f32 %v5004_v35, %v6474_v31  ;;  %v2912_v8 = vpop.f32.mrb[27].mxu0  ;;  %v6758_v31 = vadd.f32 %v5215_v16, %v6575_v52 }
 0x256   : > { %v3103_v13 = vadd.f32 %v3102_v61, %v3072_v44  ;;  %v6747_v0 = vadd.f32 %v5216_v25, %v6575_v52  ;;  %v3033_v27 = vadd.f32 %v3032_v33, %v6733_v3  ;;  %v5218_v10 = vadd.f32 %v2912_v8, %v6482_v49 }
 0x257   : > { %v6762_v58 = vadd.f32 %v5217_v20, %v6575_v52 }
 0x258   : > { %v3034_v19 = vadd.f32 %v3033_v27, %v6747_v0  ;;  %v3074_v28 = vmul.f32 %v6747_v0, %v6747_v0  ;;  %v3104_v60 = vadd.f32 %v3103_v13, %v3073_v63  ;;  %v6755_v23 = vadd.f32 %v5218_v10, %v6575_v52 }
 0x25a   : > { %v3035_v5 = vadd.f32 %v3034_v19, %v6755_v23  ;;  %v5007_v56 = vpop.f32.mrb[28].mxu0  ;;  %v3105_v59 = vadd.f32 %v3104_v60, %v3074_v28  ;;  %v3075_v44 = vmul.f32 %v6755_v23, %v6755_v23  ;;  %v3077_v28 = vmul.f32 %v6762_v58, %v6762_v58 }
 0x25b   : > { %v5219_v49 = vadd.f32 %v5007_v56, %v6497_v34  ;;  %v2925_v12 = vpop.f32.mrb[29].mxu0 }
 0x25c   : > { %v3036_v38 = vadd.f32 %v3035_v5, %v6758_v31  ;;  %v5220_v33 = vadd.f32 %v2925_v12, %v6499_v32  ;;  %v5008_v61 = vpop.f32.mrb[30].mxu0  ;;  %v3106_v20 = vadd.f32 %v3105_v59, %v3075_v44  ;;  %v3076_v32 = vmul.f32 %v6758_v31, %v6758_v31 }
 0x25d   : > { %v5221_v16 = vadd.f32 %v5008_v61, %v6502_v18  ;;  %v2928_v25 = vpop.f32.mrb[31].mxu0  ;;  %v6782_v27 = vadd.f32 %v5219_v49, %v6575_v52 }
 0x25e   : > { %v6771_v35 = vadd.f32 %v5220_v33, %v6575_v52  ;;  %v3037_v63 = vadd.f32 %v3036_v38, %v6762_v58  ;;  %v5222_v34 = vadd.f32 %v2928_v25, %v6511_v42  ;;  %v3107_v10 = vadd.f32 %v3106_v20, %v3076_v32 }
 0x25f   : > { %7422 = vst [vmem:[#allocation4_spill] sm:$0xff] %v6782_v27  ;;  %v6786_v19 = vadd.f32 %v5221_v16, %v6575_v52  ;;  %v3080_v16 = vmul.f32 %v6782_v27, %v6782_v27 }
 0x260   : > { %7421 = vst [vmem:[#allocation3_spill] sm:$0xff] %v6771_v35  ;;  %v3038_v8 = vadd.f32 %v3037_v63, %v6771_v35  ;;  %v6777_v13 = vadd.f32 %v5222_v34, %v6575_v52  ;;  %v3078_v5 = vmul.f32 %v6771_v35, %v6771_v35  ;;  %v3108_v56 = vadd.f32 %v3107_v10, %v3077_v28  ;;  %v5531_v28 = vld [vmem:[%s7414_s8 + $0x8] sm:$0xff]  }
 0x261   : > { %v3081_v20 = vmul.f32 %v6786_v19, %v6786_v19 }
 0x262   : > { %v3039_v18 = vadd.f32 %v3038_v8, %v6777_v13  ;;  %v3109_v59 = vadd.f32 %v3108_v56, %v3078_v5  ;;  %v3079_v44 = vmul.f32 %v6777_v13, %v6777_v13  ;;  %v5536_v5 = vld [vmem:[%s7414_s8 + $0x30] sm:$0xff]   ;;  %v5537_v56 = vld [vmem:[%s7414_s8 + $0x38] sm:$0xff]  }
 0x264   : > { %v3040_v42 = vadd.f32 %v3039_v18, %v6782_v27  ;;  %v3110_v33 = vadd.f32 %v3109_v59, %v3079_v44  ;;  %v3658_v59 = vld [vmem:[%s6818_s20 + $0x20] sm:$0xff] }
 0x266   : > { %v3041_v60 = vadd.f32 %v3040_v42, %v6786_v19  ;;  %v3111_v63 = vadd.f32 %v3110_v33, %v3080_v16  ;;  %v3660_v33 = vld [vmem:[%s6818_s20 + $0x30] sm:$0xff]  ;;  %v3662_v16 = vld [vmem:[%s6818_s20 + $0x40] sm:$0xff] }
 0x268   : > { %v3042_v12 = vrot.slane %v3041_v60, 4  ;;  %v3112_v8 = vadd.f32 %v3111_v63, %v3081_v20  ;;  %v3664_v20 = vld [vmem:[%s6818_s20 + $0x50] sm:$0xff] }
 0x26a   : > { %v3043_v49 = vadd.f32 %v3042_v12, %v3041_v60  ;;  %v3113_v32 = vrot.slane %v3112_v8, 4  ;;  %v5535_v60 = vld [vmem:[%s7414_s8 + $0x28] sm:$0xff]   ;;  %v3656_v12 = vld [vmem:[%s6818_s20 + $0x10] sm:$0xff] }
 0x26c   : > { %v3044_v38 = vrot.slane %v3043_v49, 2  ;;  %v3114_v18 = vadd.f32 %v3113_v32, %v3112_v8  ;;  %v3665_v8 = vld [vmem:[%s6818_s20 + $0x58] sm:$0xff]  ;;  %v3666_v32 = vld [vmem:[%s6818_s20 + $0x60] sm:$0xff] }
 0x26e   : > { %v3045_v52 = vadd.f32 %v3044_v38, %v3043_v49  ;;  %v3657_v49 = vld [vmem:[%s6818_s20 + $0x18] sm:$0xff]  ;;  %v3659_v38 = vld [vmem:[%s6818_s20 + $0x28] sm:$0xff] }
 0x26f   : > { %v3687_v44 = vpack.c.bf16 %v3657_v49, %v3656_v12  ;;  %v3678_v12 = vld [vmem:[%s6818_s20 + $0xc0] sm:$0xff]  ;;  %v3679_v49 = vld [vmem:[%s6818_s20 + $0xc8] sm:$0xff] }
 0x270   : > { %v3046_v61 = vrot.slane %v3045_v52, 1 }
 0x272   : > { %v3047_v25 = vadd.f32 %v3046_v61, %v3045_v52  ;;  %v3688_v52 = vpack.c.bf16 %v3659_v38, %v3658_v59  ;;  %v3661_v61 = vld [vmem:[%s6818_s20 + $0x38] sm:$0xff]  ;;  %v3698_v38 = vpack.c.bf16 %v3679_v49, %v3678_v12 }
 0x273   : > { %v3689_v63 = vpack.c.bf16 %v3661_v61, %v3660_v33  ;;  %v3682_v33 = vld [vmem:[%s6818_s20 + $0xe0] sm:$0xff]  ;;  %v3683_v61 = vld [vmem:[%s6818_s20 + $0xe8] sm:$0xff] }
 0x274   : > { %v3049_v34 = vmul.f32 0.00390625, %v3047_v25  ;;  %v3663_v25 = vld [vmem:[%s6818_s20 + $0x48] sm:$0xff] }
 0x276   : > { %5042 = vmatmul.mubr.f32.vlgmr.msra.gmra.mrb[32].mxu1 %v3049_v34  ;;  %v3690_v34 = vpack.c.bf16 %v3663_v25, %v3662_v16  ;;  %v3700_v25 = vpack.c.bf16 %v3683_v61, %v3682_v33  ;;  %v6930_v33 = vld [vmem:[%s7411_s5] ss:$0 sm:$0xff] }
 0x277   : > { %5153 = vmatpush3.bf16.msra.mxu1 %v6484_v55  ;;  %5076 = vmatprep.mubr.msk.f32.mxu1 %vm5686_vm0, %v6561_v62  ;;  %v3115_v55 = vrot.slane %v3114_v18, 2 }
 0x278   : > { %5154 = vmatprep.subr.bf16.mxu1 %v5685_v54 }
 0x279   : > { %v3116_v62 = vadd.f32 %v3115_v55, %v3114_v18  ;;  %v3667_v18 = vld [vmem:[%s6818_s20 + $0x68] sm:$0xff]  ;;  %v3691_v55 = vpack.c.bf16 %v3665_v8, %v3664_v20 }
 0x27b   : > { %5156 = vmatpush3.bf16.msra.mxu1 %v6495_v1  ;;  %v3117_v1 = vrot.slane %v3116_v62, 1 }
 0x27c   : > { %5157 = vmatprep.subr.bf16.mxu1 %v5685_v54 }
 0x27f   : > { %5159 = vmatpush3.bf16.msra.mxu1 %v6513_v24  ;;  %v3118_v24 = vadd.f32 %v3117_v1, %v3116_v62  ;;  %v3692_v62 = vpack.c.bf16 %v3667_v18, %v3666_v32  ;;  %v3668_v1 = vld [vmem:[%s6818_s20 + $0x70] sm:$0xff]  ;;  %v3278_v18 = vlaneseq }
 0x280   : > { %5160 = vmatprep.subr.bf16.mxu1 %v5685_v54 }
 0x281   : > { %v3119_v42 = vmul.f32 0.00390625, %v3118_v24  ;;  %v3669_v24 = vld [vmem:[%s6818_s20 + $0x78] sm:$0xff] }
 0x283   : > { %5162 = vmatpush3.bf16.msra.mxu1 %v6523_v57  ;;  %v5530_v57 = vld [vmem:[%s7414_s8] sm:$0xff]  }
 0x284   : > { %5163 = vmatprep.subr.bf16.mxu1 %v5685_v54 }
 0x287   : > { %5165 = vmatpush3.bf16.msra.mxu1 %v6533_v17  ;;  %v3654_v17 = vld [vmem:[%s6818_s20] sm:$0xff] }
 0x288   : > { %5166 = vmatprep.subr.bf16.mxu1 %v5685_v54 }
 0x28b   : > { %5168 = vmatpush3.bf16.msra.mxu1 %v6543_v45  ;;  %v3655_v45 = vld [vmem:[%s6818_s20 + $0x8] sm:$0xff] }
 0x28c   : > { %5169 = vmatprep.subr.bf16.mxu1 %v5685_v54  ;;  %v3686_v10 = vpack.c.bf16 %v3655_v45, %v3654_v17  ;;  %v3671_v17 = vld [vmem:[%s6818_s20 + $0x88] sm:$0xff]  ;;  %v3693_v45 = vpack.c.bf16 %v3669_v24, %v3668_v1 }
 0x28f   : > { %5171 = vmatpush3.bf16.msra.mxu1 %v6553_v47  ;;  %v5533_v47 = vld [vmem:[%s7414_s8 + $0x18] sm:$0xff]  }
 0x290   : > { %5172 = vmatprep.subr.bf16.mxu1 %v5685_v54  ;;  %v5532_v54 = vld [vmem:[%s7414_s8 + $0x10] sm:$0xff]  }
 0x293   : > { %5174 = vmatpush3.bf16.msra.mxu1 %v6566_v40  ;;  %v5534_v40 = vld [vmem:[%s7414_s8 + $0x20] sm:$0xff]  }
 0x294   : > { %5079 = vmatprep.subr.bf16.mxu1 %v5530_v57 }
 0x296   : > { %5077 = vmatmul.mubr.f32.vlgmr.msra.gmra.mrb[34].mxu1 %v3119_v42  ;;  %v3672_v42 = vld [vmem:[%s6818_s20 + $0x90] sm:$0xff] }
 0x297   : > { %5080 = vmatpush3.bf16.msra.mxu1 %v5530_v57  ;;  %5095 = vmatprep.mubr.bf16.mxu1 %v3686_v10  ;;  %v3670_v57 = vld [vmem:[%s6818_s20 + $0x80] sm:$0xff] }
 0x298   : > { %5081 = vmatprep.subr.bf16.mxu1 %v5531_v28  ;;  %v3694_v10 = vpack.c.bf16 %v3671_v17, %v3670_v57 }
 0x29b   : > { %5082 = vmatpush3.bf16.msra.mxu1 %v5531_v28  ;;  %v3673_v28 = vld [vmem:[%s6818_s20 + $0x98] sm:$0xff] }
 0x29c   : > { %5083 = vmatprep.subr.bf16.mxu1 %v5532_v54 }
 0x29f   : > { %5084 = vmatpush3.bf16.msra.mxu1 %v5532_v54  ;;  %v3674_v54 = vld [vmem:[%s6818_s20 + $0xa0] sm:$0xff] }
 0x2a0   : > { %5085 = vmatprep.subr.bf16.mxu1 %v5533_v47 }
 0x2a3   : > { %5086 = vmatpush3.bf16.msra.mxu1 %v5533_v47  ;;  %v3675_v47 = vld [vmem:[%s6818_s20 + $0xa8] sm:$0xff] }
 0x2a4   : > { %5087 = vmatprep.subr.bf16.mxu1 %v5534_v40 }
 0x2a7   : > { %5088 = vmatpush3.bf16.msra.mxu1 %v5534_v40  ;;  %v3695_v40 = vpack.c.bf16 %v3673_v28, %v3672_v42 }
 0x2a8   : > { %5089 = vmatprep.subr.bf16.mxu1 %v5535_v60 }
 0x2ab   : > { %5090 = vmatpush3.bf16.msra.mxu1 %v5535_v60  ;;  %v3696_v60 = vpack.c.bf16 %v3675_v47, %v3674_v54 }
 0x2ac   : > { %5091 = vmatprep.subr.bf16.mxu1 %v5536_v5 }
 0x2af   : > { %5092 = vmatpush3.bf16.msra.mxu1 %v5536_v5  ;;  %v3676_v5 = vld [vmem:[%s6818_s20 + $0xb0] sm:$0xff] }
 0x2b0   : > { %5093 = vmatprep.subr.bf16.mxu1 %v5537_v56 }
 0x2b3   : > { %5094 = vmatpush3.bf16.msra.mxu1 %v5537_v56  ;;  %v3677_v56 = vld [vmem:[%s6818_s20 + $0xb8] sm:$0xff] }
 0x2b4   : > { %v3697_v59 = vpack.c.bf16 %v3677_v56, %v3676_v5 }
 0x2b6   : > { %5096 = vmatmul.mubr.bf16.vlgmr.msra.gmra.mrb[36].mxu1 %v3687_v44  ;;  %v3680_v44 = vld [vmem:[%s6818_s20 + $0xd0] sm:$0xff] }
 0x2b7   : > { %5099 = vmatprep.mubr.bf16.mxu1 %v3688_v52  ;;  %v3681_v52 = vld [vmem:[%s6818_s20 + $0xd8] sm:$0xff] }
 0x2b8   : > { %v3699_v16 = vpack.c.bf16 %v3681_v52, %v3680_v44 }
 0x2be   : > { %5100 = vmatmul.mubr.bf16.gmra.mrb[40].mxu1 %v3689_v63  ;;  %v3684_v63 = vld [vmem:[%s6818_s20 + $0xf0] sm:$0xff] }
 0x2bf   : > { %5103 = vmatprep.mubr.bf16.mxu1 %v3690_v34  ;;  %v3685_v34 = vld [vmem:[%s6818_s20 + $0xf8] sm:$0xff] }
 0x2c0   : > { %v3701_v20 = vpack.c.bf16 %v3685_v34, %v3684_v63 }
 0x2c6   : > { %5104 = vmatmul.mubr.bf16.gmra.mrb[44].mxu1 %v3691_v55 }
 0x2c7   : > { %5107 = vmatprep.mubr.bf16.mxu1 %v3692_v62  ;;  %v3279_v62 = vshrl.u32 %v3278_v18, 7  ;;  %v6947_v18 = vld [vmem:[%s7412_s6] ss:$0 sm:$0xff] }
 0x2c9   : > { %v3280_v17 = vsub.s32 0, %v3279_v62 }
 0x2ce   : > { %5108 = vmatmul.mubr.bf16.gmra.mrb[48].mxu1 %v3693_v45 }
 0x2cf   : > { %5111 = vmatprep.mubr.bf16.mxu1 %v3694_v10 }
 0x2d6   : > { %5112 = vmatmul.mubr.bf16.gmra.mrb[52].mxu1 %v3695_v40 }
 0x2d7   : > { %5115 = vmatprep.mubr.bf16.mxu1 %v3696_v60 }
 0x2de   : > { %5116 = vmatmul.mubr.bf16.gmra.mrb[56].mxu1 %v3697_v59 }
 0x2df   : > { %5119 = vmatprep.mubr.bf16.mxu1 %v3698_v38 }
 0x2e6   : > { %5120 = vmatmul.mubr.bf16.gmra.mrb[60].mxu1 %v3699_v16 }
 0x2e7   : > { %5123 = vmatprep.mubr.bf16.mxu1 %v3700_v25 }
 0x2ee   : > { %5124 = vmatmul.mubr.bf16.gmra.mrb[64].mxu1 %v3701_v20 }
 0x349   : > { %v3202_v8 = vpop.f32.mrb[32].mxu1 }
 0x34a   : > { %v5043_v32 = vpop.f32.mrb[33].mxu1  ;;  %v3276_v55 = vmul.f32 %v3202_v8, %v3202_v8  ;;  %v6879_v10 = vrot.slane %v3202_v8, %v3280_v17 }
 0x34c   : > { %v3284_v42 = vsub.f32 %v6584_v22, %v6879_v10  ;;  %v3282_v28 = vsub.f32 %v6580_v6, %v6879_v10  ;;  %v3285_v54 = vsub.f32 %v6590_v46, %v6879_v10  ;;  %v3283_v47 = vsub.f32 %v6587_v51, %v6879_v10 }
 0x34d   : > { %v3288_v40 = vsub.f32 %v6612_v26, %v6879_v10  ;;  %v3286_v60 = vsub.f32 %v6607_v21, %v6879_v10  ;;  %v3289_v5 = vsub.f32 %v6621_v7, %v6879_v10  ;;  %v3287_v22 = vsub.f32 %v6618_v43, %v6879_v10 }
 0x34e   : > { %v3292_v6 = vsub.f32 %v6640_v15, %v6879_v10  ;;  %v3290_v46 = vsub.f32 %v6635_v50, %v6879_v10  ;;  %v3293_v51 = vsub.f32 %v6649_v29, %v6879_v10  ;;  %v3291_v26 = vsub.f32 %v6646_v39, %v6879_v10 }
 0x34f   : > { %v3296_v21 = vsub.f32 %v6668_v36, %v6879_v10  ;;  %v3294_v7 = vsub.f32 %v6663_v48, %v6879_v10  ;;  %v3297_v43 = vsub.f32 %v6677_v11, %v6879_v10  ;;  %v3295_v15 = vsub.f32 %v6674_v14, %v6879_v10 }
 0x350   : > { %v3300_v50 = vsub.f32 %v6696_v41, %v6879_v10  ;;  %v3298_v12 = vsub.f32 %v6691_v37, %v6879_v10 }
 0x369   : > { %v3272_v1 = vpop.f32.mrb[34].mxu1 }
 0x36a   : > { %v3277_v24 = vsub.f32 %v3272_v1, %v3276_v55  ;;  %v5078_v57 = vpop.f32.mrb[35].mxu1 }
 0x36c   : > { %v3314_v45 = vadd.f32 1e-05, %v3277_v24 }
 0x36e   : > { %5538 = vrsqrt.f32 %v3314_v45 }
 0x378   : > { %v5539_v56 = vpop.eup %5538 }
 0x379   : > { %v6919_v59 = vrot.slane %v5539_v56, %v3280_v17 }
 0x37b   : > { %v3322_v34 = vmul.f32 %v6919_v59, %v3284_v42  ;;  %v3320_v20 = vmul.f32 %v6919_v59, %v3282_v28  ;;  %v3323_v8 = vmul.f32 %v6919_v59, %v3285_v54  ;;  %v3321_v32 = vmul.f32 %v6919_v59, %v3283_v47 }
 0x37c   : > { %v3326_v55 = vmul.f32 %v6919_v59, %v3288_v40  ;;  %v3324_v62 = vmul.f32 %v6919_v59, %v3286_v60  ;;  %v3327_v1 = vmul.f32 %v6919_v59, %v3289_v5  ;;  %v3325_v24 = vmul.f32 %v6919_v59, %v3287_v22 }
 0x37d   : > { %v3361_v57 = vmul.f32 %v6930_v33, %v3322_v34  ;;  %v3359_v17 = vmul.f32 %v6930_v33, %v3320_v20  ;;  %v3362_v45 = vmul.f32 %v6930_v33, %v3323_v8  ;;  %v3360_v42 = vmul.f32 %v6930_v33, %v3321_v32 }
 0x37e   : > { %v3365_v28 = vmul.f32 %v6930_v33, %v3326_v55  ;;  %v3363_v54 = vmul.f32 %v6930_v33, %v3324_v62  ;;  %v3366_v47 = vmul.f32 %v6930_v33, %v3327_v1  ;;  %v3364_v40 = vmul.f32 %v6930_v33, %v3325_v24 }
 0x37f   : > { %v6962_v60 = vadd.f32 %v6947_v18, %v3361_v57  ;;  %v6965_v5 = vadd.f32 %v6947_v18, %v3359_v17  ;;  %v6968_v22 = vadd.f32 %v6947_v18, %v3362_v45  ;;  %v6971_v56 = vadd.f32 %v6947_v18, %v3360_v42 }
 0x380   : > { %v6974_v34 = vadd.f32 %v6947_v18, %v3365_v28  ;;  %v6977_v20 = vadd.f32 %v6947_v18, %v3363_v54  ;;  %v6980_v8 = vadd.f32 %v6947_v18, %v3366_v47  ;;  %v6983_v32 = vadd.f32 %v6947_v18, %v3364_v40 }
 0x381   : > { %v3432_v55 = vsub.f32 0.0, %v6962_v60  ;;  %v3430_v62 = vsub.f32 0.0, %v6965_v5  ;;  %v3433_v1 = vsub.f32 0.0, %v6968_v22  ;;  %v3431_v24 = vsub.f32 0.0, %v6971_v56 }
 0x382   : > { %v3436_v57 = vsub.f32 0.0, %v6974_v34  ;;  %v3434_v17 = vsub.f32 0.0, %v6977_v20  ;;  %v3437_v45 = vsub.f32 0.0, %v6980_v8  ;;  %v3435_v42 = vsub.f32 0.0, %v6983_v32 }
 0x383   : > { %v3466_v28 = vmul.f32 1.442695, %v3432_v55  ;;  %v3462_v54 = vmul.f32 1.442695, %v3430_v62  ;;  %v3468_v47 = vmul.f32 1.442695, %v3433_v1  ;;  %v3330_v40 = vmul.f32 %v6919_v59, %v3292_v6 }
 0x384   : > { %v3464_v63 = vmul.f32 1.442695, %v3431_v24  ;;  %v3474_v25 = vmul.f32 1.442695, %v3436_v57  ;;  %v3470_v16 = vmul.f32 1.442695, %v3434_v17  ;;  %v3328_v61 = vmul.f32 %v6919_v59, %v3290_v46 }
 0x385   : > { %5540 = vpow2.f32 %v3466_v28  ;;  %v3476_v52 = vmul.f32 1.442695, %v3437_v45  ;;  %v3472_v44 = vmul.f32 1.442695, %v3435_v42  ;;  %v3369_v38 = vmul.f32 %v6930_v33, %v3330_v40 }
 0x386   : > { %5542 = vpow2.f32 %v3462_v54  ;;  %v3367_v49 = vmul.f32 %v6930_v33, %v3328_v61  ;;  %v3331_v55 = vmul.f32 %v6919_v59, %v3293_v51  ;;  %v3329_v6 = vmul.f32 %v6919_v59, %v3291_v26 }
 0x387   : > { %5544 = vpow2.f32 %v3468_v47  ;;  %v7006_v46 = vadd.f32 %v6947_v18, %v3369_v38  ;;  %v3334_v62 = vmul.f32 %v6919_v59, %v3296_v21  ;;  %v3332_v29 = vmul.f32 %v6919_v59, %v3294_v7 }
 0x388   : > { %5546 = vpow2.f32 %v3464_v63  ;;  %v7017_v51 = vadd.f32 %v6947_v18, %v3367_v49  ;;  %v3370_v39 = vmul.f32 %v6930_v33, %v3331_v55  ;;  %v3368_v26 = vmul.f32 %v6930_v33, %v3329_v6 }
 0x389   : > { %v5097_v38 = vpop.f32.mrb[36].mxu1  ;;  %5548 = vpow2.f32 %v3474_v25  ;;  %v3440_v61 = vsub.f32 0.0, %v7006_v46  ;;  %v3373_v36 = vmul.f32 %v6930_v33, %v3334_v62  ;;  %v3371_v63 = vmul.f32 %v6930_v33, %v3332_v29 }
 0x38a   : > { %v3807_v48 = vpop.f32.mrb[37].mxu1  ;;  %5550 = vpow2.f32 %v3470_v16  ;;  %v3438_v7 = vsub.f32 0.0, %v7017_v51  ;;  %v7027_v49 = vadd.f32 %v6947_v18, %v3370_v39  ;;  %v7031_v25 = vadd.f32 %v6947_v18, %v3368_v26  ;;  %v7038_v16 = vld [vmem:[%s7415_s9] ss:$0 sm:$0xff] }
 0x38b   : > { %v5098_v1 = vpop.f32.mrb[38].mxu1  ;;  %5552 = vpow2.f32 %v3476_v52  ;;  %v3482_v24 = vmul.f32 1.442695, %v3440_v61  ;;  %v7045_v54 = vadd.f32 %v6947_v18, %v3373_v36  ;;  %v7050_v55 = vadd.f32 %v6947_v18, %v3371_v63 }
 0x38c   : > { %v3810_v17 = vpop.f32.mrb[39].mxu1  ;;  %5554 = vpow2.f32 %v3472_v44  ;;  %v3478_v45 = vmul.f32 1.442695, %v3438_v7  ;;  %v3441_v42 = vsub.f32 0.0, %v7027_v49  ;;  %v3439_v28 = vsub.f32 0.0, %v7031_v25 }
 0x38d   : > { %5556 = vpow2.f32 %v3482_v24  ;;  %v3335_v44 = vmul.f32 %v6919_v59, %v3297_v43  ;;  %v7057_v62 = vadd.f32 %v5097_v38, %v7038_v16  ;;  %v7060_v29 = vadd.f32 %v7038_v16, %v3807_v48 }
 0x38e   : > { %5558 = vpow2.f32 %v3478_v45  ;;  %v3484_v40 = vmul.f32 1.442695, %v3441_v42  ;;  %v3480_v39 = vmul.f32 1.442695, %v3439_v28  ;;  %v3333_v26 = vmul.f32 %v6919_v59, %v3295_v15 }
 0x38f   : > { %v5541_v6 = vpop.eup %5540  ;;  %v3444_v11 = vsub.f32 0.0, %v7045_v54  ;;  %v3374_v43 = vmul.f32 %v6930_v33, %v3335_v44  ;;  %v3442_v48 = vsub.f32 0.0, %v7050_v55  ;;  %v7071_v15 = vadd.f32 %v5098_v1, %v7038_v16 }
 0x390   : > { %v5543_v61 = vpop.eup %5542  ;;  %v3528_v36 = vadd.f32 1.0, %v5541_v6  ;;  %5560 = vpow2.f32 %v3484_v40  ;;  %v3372_v24 = vmul.f32 %v6930_v33, %v3333_v26  ;;  %v3338_v28 = vmul.f32 %v6919_v59, %v3300_v50 }
 0x391   : > { %v5545_v7 = vpop.eup %5544  ;;  %v3526_v63 = vadd.f32 1.0, %v5543_v61  ;;  %v5101_v38 = vpop.f32.mrb[40].mxu1  ;;  %5562 = vpow2.f32 %v3480_v39  ;;  %v7078_v6 = vadd.f32 %v7038_v16, %v3810_v17  ;;  %v7081_v26 = vadd.f32 %v6947_v18, %v3374_v43 }
 0x392   : > { %v5547_v45 = vpop.eup %5546  ;;  %5564 = vrcp.f32 %v3528_v36  ;;  %v3529_v14 = vadd.f32 1.0, %v5545_v7  ;;  %v3823_v42 = vpop.f32.mrb[41].mxu1  ;;  %v3490_v7 = vmul.f32 1.442695, %v3444_v11  ;;  %v7084_v47 = vadd.f32 %v6947_v18, %v3372_v24 }
 0x393   : > { %v5549_v40 = vpop.eup %5548  ;;  %5566 = vrcp.f32 %v3526_v63  ;;  %v3527_v44 = vadd.f32 1.0, %v5547_v45  ;;  %v5102_v39 = vpop.f32.mrb[42].mxu1  ;;  %v7087_v50 = vadd.f32 %v5101_v38, %v7038_v16  ;;  %v3486_v17 = vmul.f32 1.442695, %v3442_v48 }
 0x394   : > { %v5551_v61 = vpop.eup %5550  ;;  %5568 = vrcp.f32 %v3529_v14  ;;  %v3532_v1 = vadd.f32 1.0, %v5549_v40  ;;  %v3826_v36 = vpop.f32.mrb[43].mxu1  ;;  %v7090_v43 = vadd.f32 %v7038_v16, %v3823_v42  ;;  %v3377_v14 = vmul.f32 %v6930_v33, %v3338_v28 }
 0x395   : > { %v5553_v41 = vpop.eup %5552  ;;  %5570 = vrcp.f32 %v3527_v44  ;;  %v3530_v63 = vadd.f32 1.0, %v5551_v61  ;;  %v3445_v24 = vsub.f32 0.0, %v7081_v26  ;;  %v3336_v38 = vmul.f32 %v6919_v59, %v3298_v12 }
 0x396   : > { %v5555_v45 = vpop.eup %5554  ;;  %5572 = vrcp.f32 %v3532_v1  ;;  %v3533_v52 = vadd.f32 1.0, %v5553_v41  ;;  %v3443_v61 = vsub.f32 0.0, %v7084_v47  ;;  %v7100_v42 = vadd.f32 %v6947_v18, %v3377_v14 }
 0x397   : > { %v5557_v40 = vpop.eup %5556  ;;  %5574 = vrcp.f32 %v3530_v63  ;;  %v3531_v11 = vadd.f32 1.0, %v5555_v45  ;;  %v7103_v28 = vadd.f32 %v5102_v39, %v7038_v16  ;;  %v3375_v63 = vmul.f32 %v6930_v33, %v3336_v38 }
 0x398   : > { %v5559_v44 = vpop.eup %5558  ;;  %5576 = vrcp.f32 %v3533_v52  ;;  %v3536_v48 = vadd.f32 1.0, %v5557_v40  ;;  %7423 = vst [vmem:[#allocation5_spill] sm:$0xff] %v7100_v42  ;;  %v3448_v12 = vsub.f32 0.0, %v7100_v42  ;;  %v7424_v52 = vsub.f32 %v6705_v2, %v6879_v10 }
 0x399   : > { %5578 = vrcp.f32 %v3531_v11  ;;  %v5105_v1 = vpop.f32.mrb[44].mxu1  ;;  %v3534_v41 = vadd.f32 1.0, %v5559_v44  ;;  %v7425_v14 = vsub.f32 %v6702_v53, %v6879_v10  ;;  %v7116_v44 = vadd.f32 %v7038_v16, %v3826_v36 }
 0x39a   : > { %v5561_v45 = vpop.eup %5560  ;;  %5580 = vrcp.f32 %v3536_v48  ;;  %v3839_v37 = vpop.f32.mrb[45].mxu1  ;;  %v3339_v40 = vmul.f32 %v6919_v59, %v7424_v52  ;;  %v7119_v57 = vadd.f32 %v6947_v18, %v3375_v63  ;;  %v3492_v52 = vmul.f32 1.442695, %v3445_v24 }
 0x39b   : > { %v3337_v39 = vmul.f32 %v6919_v59, %v7425_v14  ;;  %v5563_v11 = vpop.eup %5562  ;;  %5582 = vrcp.f32 %v3534_v41  ;;  %v3537_v38 = vadd.f32 1.0, %v5561_v45  ;;  %v5106_v48 = vpop.f32.mrb[46].mxu1  ;;  %v3488_v27 = vmul.f32 1.442695, %v3443_v61 }
 0x39c   : > { %v5565_v21 = vpop.eup %5564  ;;  %v3535_v2 = vadd.f32 1.0, %v5563_v11  ;;  %v3842_v35 = vpop.f32.mrb[47].mxu1  ;;  %5584 = vpow2.f32 %v3490_v7  ;;  %v3498_v42 = vmul.f32 1.442695, %v3448_v12  ;;  %v3446_v36 = vsub.f32 0.0, %v7119_v57 }
 0x39d   : > { %v5567_v53 = vpop.eup %5566  ;;  %v3624_v14 = vmul.f32 %v5565_v21, %v6962_v60  ;;  %5586 = vrcp.f32 %v3537_v38  ;;  %v3378_v7 = vmul.f32 %v6930_v33, %v3339_v40  ;;  %v3376_v24 = vmul.f32 %v6930_v33, %v3337_v39 }
 0x39e   : > { %v5569_v41 = vpop.eup %5568  ;;  %v3622_v63 = vmul.f32 %v5567_v53, %v6965_v5  ;;  %5588 = vrcp.f32 %v3535_v2  ;;  %v3494_v45 = vmul.f32 1.442695, %v3446_v36 }
 0x39f   : > { %v5571_v61 = vpop.eup %5570  ;;  %v3936_v60 = vadd.f32 %v7057_v62, %v3624_v14  ;;  %v3625_v21 = vmul.f32 %v5569_v41, %v6968_v22  ;;  %5590 = vpow2.f32 %v3486_v17  ;;  %v7137_v5 = vadd.f32 %v6947_v18, %v3378_v7 }
 0x3a0   : > { %v5573_v12 = vpop.eup %5572  ;;  %v3934_v11 = vadd.f32 %v7060_v29, %v3622_v63  ;;  %v3623_v38 = vmul.f32 %v5571_v61, %v6971_v56  ;;  %5592 = vpow2.f32 %v3492_v52  ;;  %v7145_v17 = vadd.f32 %v6947_v18, %v3376_v24 }
 0x3a1   : > { %v5575_v40 = vpop.eup %5574  ;;  %3968 = vst [vmem:[%s7127_s28 + $0x10] sm:$0xff] %v3936_v60  ;;  %v3937_v39 = vadd.f32 %v7071_v15, %v3625_v21  ;;  %v3628_v62 = vmul.f32 %v5573_v12, %v6974_v34  ;;  %v7142_v22 = vpop.f32.mrb[48].mxu1  ;;  %5594 = vpow2.f32 %v3488_v27  ;;  %v3848_v52 = vadd.f32 %v5105_v1, %v7038_v16 }
 0x3a2   : > { %v5577_v29 = vpop.eup %5576  ;;  %3966 = vst [vmem:[%s7127_s28] sm:$0xff] %v3934_v11  ;;  %v3935_v56 = vadd.f32 %v7078_v6, %v3623_v38  ;;  %v3626_v2 = vmul.f32 %v5575_v40, %v6977_v20  ;;  %v7151_v53 = vpop.f32.mrb[49].mxu1  ;;  %5596 = vpow2.f32 %v3498_v42  ;;  %v3840_v14 = vadd.f32 %v7038_v16, %v3839_v37 }
 0x3a3   : > { %v5579_v34 = vpop.eup %5578  ;;  %3969 = vst [vmem:[%s7127_s28 + $0x18] sm:$0xff] %v3937_v39  ;;  %v3940_v27 = vadd.f32 %v7087_v50, %v3628_v62  ;;  %v3629_v15 = vmul.f32 %v5577_v29, %v6980_v8  ;;  %v7157_v36 = vpop.f32.mrb[50].mxu1  ;;  %5598 = vpow2.f32 %v3494_v45  ;;  %v3851_v42 = vadd.f32 %v5106_v48, %v7038_v16 }
 0x3a4   : > { %v5581_v6 = vpop.eup %5580  ;;  %3967 = vst [vmem:[%s7127_s28 + $0x8] sm:$0xff] %v3935_v56  ;;  %v3938_v20 = vadd.f32 %v7090_v43, %v3626_v2  ;;  %v3627_v1 = vmul.f32 %v5579_v34, %v6983_v32  ;;  %v7163_v41 = vpop.f32.mrb[51].mxu1  ;;  %v3449_v50 = vsub.f32 0.0, %v7137_v5  ;;  %v3843_v7 = vadd.f32 %v7038_v16, %v3842_v35 }
 0x3a5   : > { %v5583_v8 = vpop.eup %5582  ;;  %3972 = vst [vmem:[%s7127_s28 + $0x30] sm:$0xff] %v3940_v27  ;;  %v3941_v37 = vadd.f32 %v7103_v28, %v3629_v15  ;;  %v3632_v63 = vmul.f32 %v5581_v6, %v7006_v46  ;;  %v3447_v43 = vsub.f32 0.0, %v7145_v17  ;;  %v7426_v60 = vsub.f32 %v6724_v4, %v6879_v10 }
 0x3a6   : > { %v5585_v24 = vpop.eup %5584  ;;  %3970 = vst [vmem:[%s7127_s28 + $0x20] sm:$0xff] %v3938_v20  ;;  %v3939_v32 = vadd.f32 %v7116_v44, %v3627_v1  ;;  %v3630_v48 = vmul.f32 %v5583_v8, %v7017_v51  ;;  %v3500_v61 = vmul.f32 1.442695, %v3449_v50  ;;  %v7427_v12 = vsub.f32 %v6719_v30, %v6879_v10 }
 0x3a7   : > { %v3342_v28 = vmul.f32 %v6919_v59, %v7426_v60  ;;  %v5587_v21 = vpop.eup %5586  ;;  %3973 = vst [vmem:[%s7127_s28 + $0x38] sm:$0xff] %v3941_v37  ;;  %v3944_v46 = vadd.f32 %v3848_v52, %v3632_v63  ;;  %v3540_v45 = vadd.f32 1.0, %v5585_v24  ;;  %v3496_v35 = vmul.f32 1.442695, %v3447_v43 }
 0x3a8   : > { %v3340_v44 = vmul.f32 %v6919_v59, %v7427_v12  ;;  %v5589_v11 = vpop.eup %5588  ;;  %3971 = vst [vmem:[%s7127_s28 + $0x28] sm:$0xff] %v3939_v32  ;;  %v3942_v51 = vadd.f32 %v3840_v14, %v3630_v48  ;;  %v3633_v38 = vmul.f32 %v5587_v21, %v7027_v49  ;;  %5600 = vpow2.f32 %v3500_v61 }
 0x3a9   : > { %v3381_v4 = vmul.f32 %v6930_v33, %v3342_v28  ;;  %v5591_v40 = vpop.eup %5590  ;;  %3976 = vst [vmem:[%s7127_s28 + $0x50] sm:$0xff] %v3944_v46  ;;  %v3631_v39 = vmul.f32 %v5589_v11, %v7031_v25  ;;  %5602 = vrcp.f32 %v3540_v45  ;;  %v5113_v62 = vpop.f32.mrb[52].mxu1  ;;  %v3313_v30 = vsub.f32 %v6786_v19, %v6879_v10 }
 0x3aa   : > { %v3379_v29 = vmul.f32 %v6930_v33, %v3340_v44  ;;  %v5593_v56 = vpop.eup %5592  ;;  %3974 = vst [vmem:[%s7127_s28 + $0x40] sm:$0xff] %v3942_v51  ;;  %v3945_v2 = vadd.f32 %v3851_v42, %v3633_v38  ;;  %v3538_v52 = vadd.f32 1.0, %v5591_v40  ;;  %v3871_v49 = vpop.f32.mrb[53].mxu1  ;;  %5604 = vpow2.f32 %v3496_v35 }
 0x3ab   : > { %v7428_v34 = vsub.f32 %v6733_v3, %v6879_v10  ;;  %v5595_v27 = vpop.eup %5594  ;;  %v3943_v15 = vadd.f32 %v3843_v7, %v3631_v39  ;;  %v3541_v14 = vadd.f32 1.0, %v5593_v56  ;;  %v7196_v6 = vpop.f32.mrb[54].mxu1  ;;  %v7199_v20 = vadd.f32 %v6947_v18, %v3381_v4 }
 0x3ac   : > { %v3311_v1 = vsub.f32 %v6777_v13, %v6879_v10  ;;  %v5597_v42 = vpop.eup %5596  ;;  %3977 = vst [vmem:[%s7127_s28 + $0x58] sm:$0xff] %v3945_v2  ;;  %v3864_v50 = vadd.f32 %v7142_v22, %v7038_v16  ;;  %5606 = vrcp.f32 %v3538_v52  ;;  %v3539_v3 = vadd.f32 1.0, %v5595_v27  ;;  %v7206_v8 = vpop.f32.mrb[55].mxu1 }
 0x3ad   : > { %v3343_v25 = vmul.f32 %v6919_v59, %v7428_v34  ;;  %v7209_v37 = vadd.f32 %v6947_v18, %v3379_v29  ;;  %v5599_v63 = vpop.eup %5598  ;;  %3975 = vst [vmem:[%s7127_s28 + $0x48] sm:$0xff] %v3943_v15  ;;  %v3856_v7 = vadd.f32 %v7038_v16, %v7151_v53  ;;  %5608 = vrcp.f32 %v3541_v14 }
 0x3ae   : > { %v3544_v43 = vadd.f32 1.0, %v5597_v42  ;;  %v3452_v24 = vsub.f32 0.0, %v7199_v20  ;;  %5610 = vrcp.f32 %v3539_v3  ;;  %v3542_v32 = vadd.f32 1.0, %v5599_v63 }
 0x3af   : > { %v3450_v22 = vsub.f32 0.0, %v7209_v37  ;;  %v3382_v48 = vmul.f32 %v6930_v33, %v3343_v25  ;;  %v7429_v60 = vsub.f32 %v6730_v9, %v6879_v10  ;;  %v7430_v53 = vsub.f32 %v6758_v31, %v6879_v10 }
 0x3b0   : > { %5612 = vrcp.f32 %v3544_v43  ;;  %v3506_v61 = vmul.f32 1.442695, %v3452_v24  ;;  %v7431_v35 = vsub.f32 %v6747_v0, %v6879_v10  ;;  %v3867_v9 = vadd.f32 %v7157_v36, %v7038_v16 }
 0x3b1   : > { %v3341_v28 = vmul.f32 %v6919_v59, %v7429_v60  ;;  %v3346_v21 = vmul.f32 %v6919_v59, %v7430_v53  ;;  %5614 = vrcp.f32 %v3542_v32  ;;  %v3502_v46 = vmul.f32 1.442695, %v3450_v22  ;;  %v7234_v44 = vpop.f32.mrb[56].mxu1 }
 0x3b2   : > { %v7226_v45 = vadd.f32 %v6947_v18, %v3382_v48  ;;  %v3344_v12 = vmul.f32 %v6919_v59, %v7431_v35  ;;  %5616 = vpow2.f32 %v3506_v61  ;;  %v5601_v51 = vpop.eup %5600  ;;  %v3859_v38 = vadd.f32 %v7038_v16, %v7163_v41  ;;  %v7240_v4 = vpop.f32.mrb[57].mxu1 }
 0x3b3   : > { %v3380_v31 = vmul.f32 %v6930_v33, %v3341_v28  ;;  %v3385_v11 = vmul.f32 %v6930_v33, %v3346_v21  ;;  %5618 = vpow2.f32 %v3502_v46  ;;  %v5603_v39 = vpop.eup %5602  ;;  %v3545_v36 = vadd.f32 1.0, %v5601_v51  ;;  %v7244_v29 = vpop.f32.mrb[58].mxu1  ;;  %v7434_v51 = vld [vmem:[#allocation5_spill] sm:$0xff] }
 0x3b4   : > { %v3453_v0 = vsub.f32 0.0, %v7226_v45  ;;  %v3383_v40 = vmul.f32 %v6930_v33, %v3344_v12  ;;  %v7432_v41 = vsub.f32 %v6762_v58, %v6879_v10  ;;  %v5605_v34 = vpop.eup %5604  ;;  %v3636_v25 = vmul.f32 %v5603_v39, %v7045_v54  ;;  %v7258_v14 = vpop.f32.mrb[59].mxu1 }
 0x3b5   : > { %v7247_v56 = vadd.f32 %v6947_v18, %v3380_v31  ;;  %v7250_v2 = vadd.f32 %v6947_v18, %v3385_v11  ;;  %v3880_v27 = vadd.f32 %v5113_v62, %v7038_v16  ;;  %v3872_v3 = vadd.f32 %v7038_v16, %v3871_v49 }
 0x3b6   : > { %v3347_v52 = vmul.f32 %v6919_v59, %v7432_v41  ;;  %v3508_v15 = vmul.f32 1.442695, %v3453_v0  ;;  %v7261_v42 = vadd.f32 %v6947_v18, %v3383_v40  ;;  %5620 = vrcp.f32 %v3545_v36  ;;  %v5607_v43 = vpop.eup %5606 }
 0x3b7   : > { %v3543_v63 = vadd.f32 1.0, %v5605_v34  ;;  %v3451_v58 = vsub.f32 0.0, %v7247_v56  ;;  %v3948_v24 = vadd.f32 %v3864_v50, %v3636_v25  ;;  %v3456_v54 = vsub.f32 0.0, %v7250_v2  ;;  %v5609_v32 = vpop.eup %5608 }
 0x3b8   : > { %5622 = vpow2.f32 %v3508_v15  ;;  %v3454_v62 = vsub.f32 0.0, %v7261_v42  ;;  %v3634_v22 = vmul.f32 %v5607_v43, %v7050_v55  ;;  %v3386_v61 = vmul.f32 %v6930_v33, %v3347_v52  ;;  %v5611_v60 = vpop.eup %5610 }
 0x3b9   : > { %5624 = vrcp.f32 %v3543_v63  ;;  %v3504_v48 = vmul.f32 1.442695, %v3451_v58  ;;  %3980 = vst [vmem:[%s7127_s28 + $0x70] sm:$0xff] %v3948_v24  ;;  %v3637_v49 = vmul.f32 %v5609_v32, %v7081_v26  ;;  %v3514_v28 = vmul.f32 1.442695, %v3456_v54  ;;  %v7276_v12 = vpop.f32.mrb[60].mxu1 }
 0x3ba   : > { %v3510_v53 = vmul.f32 1.442695, %v3454_v62  ;;  %v7433_v50 = vsub.f32 %v6755_v23, %v6879_v10  ;;  %v5613_v46 = vpop.eup %5612  ;;  %v3946_v35 = vadd.f32 %v3856_v7, %v3634_v22  ;;  %v3635_v55 = vmul.f32 %v5611_v60, %v7084_v47  ;;  %v7284_v40 = vpop.f32.mrb[61].mxu1  ;;  %v7435_v58 = vld [vmem:[#allocation4_spill] sm:$0xff]  ;;  %v7437_v24 = vld [vmem:[#allocation3_spill] sm:$0xff] }
 0x3bb   : > { %5626 = vpow2.f32 %v3504_v48  ;;  %v7279_v31 = vadd.f32 %v6947_v18, %v3386_v61  ;;  %v5615_v26 = vpop.eup %5614  ;;  %v3949_v11 = vadd.f32 %v3867_v9, %v3637_v49  ;;  %v3640_v0 = vmul.f32 %v5613_v46, %v7434_v51  ;;  %v7290_v9 = vpop.f32.mrb[62].mxu1 }
 0x3bc   : > { %v3345_v21 = vmul.f32 %v6919_v59, %v7433_v50  ;;  %v3883_v23 = vadd.f32 %v7196_v6, %v7038_v16  ;;  %5628 = vpow2.f32 %v3514_v28  ;;  %v5617_v7 = vpop.eup %5616  ;;  %3978 = vst [vmem:[%s7127_s28 + $0x60] sm:$0xff] %v3946_v35  ;;  %v3947_v47 = vadd.f32 %v3859_v38, %v3635_v55  ;;  %v3906_v25 = vpop.f32.mrb[63].mxu1 }
 0x3bd   : > { %v3638_v39 = vmul.f32 %v5615_v26, %v7119_v57  ;;  %v3875_v36 = vadd.f32 %v7038_v16, %v7206_v8  ;;  %5630 = vpow2.f32 %v3510_v53  ;;  %v5619_v41 = vpop.eup %5618  ;;  %3981 = vst [vmem:[%s7127_s28 + $0x78] sm:$0xff] %v3949_v11  ;;  %v3952_v52 = vadd.f32 %v3880_v27, %v3640_v0 }
 0x3be   : > { %v3548_v6 = vadd.f32 1.0, %v5617_v7  ;;  %v7295_v34 = vadd.f32 %v7234_v44, %v7038_v16  ;;  %v3457_v38 = vsub.f32 0.0, %v7279_v31  ;;  %3979 = vst [vmem:[%s7127_s28 + $0x68] sm:$0xff] %v3947_v47  ;;  %v3546_v15 = vadd.f32 1.0, %v5619_v41 }
 0x3bf   : > { %v3950_v57 = vadd.f32 %v3872_v3, %v3638_v39  ;;  %v3384_v8 = vmul.f32 %v6930_v33, %v3345_v21  ;;  %v7301_v63 = vadd.f32 %v7038_v16, %v3906_v25  ;;  %3984 = vst [vmem:[%s7127_s28 + $0x90] sm:$0xff] %v3952_v52  ;;  %v7436_v43 = vsub.f32 %v7435_v58, %v6879_v10 }
 0x3c0   : > { %5632 = vrcp.f32 %v3548_v6  ;;  %v3516_v27 = vmul.f32 1.442695, %v3457_v38  ;;  %v7438_v54 = vsub.f32 %v7437_v24, %v6879_v10  ;;  %v5621_v3 = vpop.eup %5620  ;;  %v3351_v22 = vmul.f32 %v6919_v59, %v3313_v30 }
 0x3c1   : > { %v3350_v44 = vmul.f32 %v6919_v59, %v7436_v43  ;;  %3982 = vst [vmem:[%s7127_s28 + $0x80] sm:$0xff] %v3950_v57  ;;  %5634 = vrcp.f32 %v3546_v15  ;;  %v7314_v32 = vadd.f32 %v6947_v18, %v3384_v8  ;;  %v3349_v48 = vmul.f32 %v6919_v59, %v3311_v1  ;;  %v5125_v19 = vpop.f32.mrb[64].mxu1 }
 0x3c2   : > { %v3348_v62 = vmul.f32 %v6919_v59, %v7438_v54  ;;  %v5623_v61 = vpop.eup %5622  ;;  %v3641_v60 = vmul.f32 %v5621_v3, %v7137_v5  ;;  %5636 = vpow2.f32 %v3516_v27  ;;  %v3390_v30 = vmul.f32 %v6930_v33, %v3351_v22  ;;  %v3919_v46 = vpop.f32.mrb[65].mxu1 }
 0x3c3   : > { %v3389_v49 = vmul.f32 %v6930_v33, %v3350_v44  ;;  %v5625_v53 = vpop.eup %5624  ;;  %v3549_v50 = vadd.f32 1.0, %v5623_v61  ;;  %v3455_v21 = vsub.f32 0.0, %v7314_v32  ;;  %v3388_v13 = vmul.f32 %v6930_v33, %v3349_v48 }
 0x3c4   : > { %v3387_v28 = vmul.f32 %v6930_v33, %v3348_v62  ;;  %v3953_v10 = vadd.f32 %v3883_v23, %v3641_v60  ;;  %v3639_v59 = vmul.f32 %v5625_v53, %v7145_v17  ;;  %v7335_v1 = vadd.f32 %v5125_v19, %v7038_v16  ;;  %v5126_v33 = vpop.f32.mrb[66].mxu1 }
 0x3c5   : > { %v7332_v5 = vadd.f32 %v6947_v18, %v3389_v49  ;;  %v5627_v35 = vpop.eup %5626  ;;  %5638 = vrcp.f32 %v3549_v50  ;;  %v3512_v55 = vmul.f32 1.442695, %v3455_v21  ;;  %v7341_v11 = vadd.f32 %v7038_v16, %v3919_v46  ;;  %v3922_v47 = vpop.f32.mrb[67].mxu1 }
 0x3c6   : > { %v7338_v26 = vadd.f32 %v6947_v18, %v3387_v28  ;;  %v5629_v51 = vpop.eup %5628  ;;  %3985 = vst [vmem:[%s7127_s28 + $0x98] sm:$0xff] %v3953_v10  ;;  %v3951_v17 = vadd.f32 %v3875_v36, %v3639_v59  ;;  %v3547_v0 = vadd.f32 1.0, %v5627_v35  ;;  %v7346_v7 = vadd.f32 %v6947_v18, %v3390_v30 }
 0x3c7   : > { %v3460_v23 = vsub.f32 0.0, %v7332_v5  ;;  %v5631_v39 = vpop.eup %5630  ;;  %v3552_v41 = vadd.f32 1.0, %v5629_v51  ;;  %5640 = vpow2.f32 %v3512_v55  ;;  %v7350_v6 = vadd.f32 %v5126_v33, %v7038_v16 }
 0x3c8   : > { %v3458_v52 = vsub.f32 0.0, %v7338_v26  ;;  %3983 = vst [vmem:[%s7127_s28 + $0x88] sm:$0xff] %v3951_v17  ;;  %5642 = vrcp.f32 %v3547_v0  ;;  %v3550_v38 = vadd.f32 1.0, %v5631_v39  ;;  %v3461_v36 = vsub.f32 0.0, %v7346_v7 }
 0x3c9   : > { %v3522_v25 = vmul.f32 1.442695, %v3460_v23  ;;  %5644 = vrcp.f32 %v3552_v41  ;;  %v7355_v15 = vadd.f32 %v6947_v18, %v3388_v13  ;;  %v7358_v8 = vadd.f32 %v7038_v16, %v3922_v47 }
 0x3ca   : > { %v3518_v57 = vmul.f32 1.442695, %v3458_v52  ;;  %v5633_v27 = vpop.eup %5632  ;;  %v3888_v58 = vadd.f32 %v7038_v16, %v7240_v4  ;;  %5646 = vrcp.f32 %v3550_v38  ;;  %v3524_v43 = vmul.f32 1.442695, %v3461_v36 }
 0x3cb   : > { %v5635_v44 = vpop.eup %5634  ;;  %v3644_v24 = vmul.f32 %v5633_v27, %v7199_v20  ;;  %5648 = vpow2.f32 %v3522_v25  ;;  %v3459_v54 = vsub.f32 0.0, %v7355_v15  ;;  %v3899_v61 = vadd.f32 %v7244_v29, %v7038_v16 }
 0x3cc   : > { %v5637_v62 = vpop.eup %5636  ;;  %v3642_v18 = vmul.f32 %v5635_v44, %v7209_v37  ;;  %5650 = vpow2.f32 %v3518_v57  ;;  %v3891_v37 = vadd.f32 %v7038_v16, %v7258_v14  ;;  %v3912_v53 = vadd.f32 %v7276_v12, %v7038_v16 }
 0x3cd   : > { %v3956_v3 = vadd.f32 %v7295_v34, %v3644_v24  ;;  %v3553_v22 = vadd.f32 1.0, %v5637_v62  ;;  %5652 = vpow2.f32 %v3524_v43  ;;  %v3520_v48 = vmul.f32 1.442695, %v3459_v54 }
 0x3ce   : > { %v3954_v4 = vadd.f32 %v3888_v58, %v3642_v18  ;;  %v3904_v19 = vadd.f32 %v7038_v16, %v7284_v40  ;;  %v3915_v40 = vadd.f32 %v7290_v9, %v7038_v16 }
 0x3cf   : > { %v5639_v60 = vpop.eup %5638  ;;  %3988 = vst [vmem:[%s7127_s28 + $0xb0] sm:$0xff] %v3956_v3  ;;  %5654 = vrcp.f32 %v3553_v22 }
 0x3d0   : > { %3986 = vst [vmem:[%s7127_s28 + $0xa0] sm:$0xff] %v3954_v4  ;;  %v3645_v20 = vmul.f32 %v5639_v60, %v7226_v45  ;;  %5656 = vpow2.f32 %v3520_v48 }
 0x3d1   : > { %v5641_v49 = vpop.eup %5640 }
 0x3d2   : > { %v5643_v34 = vpop.eup %5642  ;;  %v3957_v28 = vadd.f32 %v3899_v61, %v3645_v20  ;;  %v3551_v50 = vadd.f32 1.0, %v5641_v49 }
 0x3d3   : > { %v5645_v29 = vpop.eup %5644  ;;  %v3643_v21 = vmul.f32 %v5643_v34, %v7247_v56 }
 0x3d4   : > { %v5647_v45 = vpop.eup %5646  ;;  %3989 = vst [vmem:[%s7127_s28 + $0xb8] sm:$0xff] %v3957_v28  ;;  %v3648_v30 = vmul.f32 %v5645_v29, %v7250_v2  ;;  %5658 = vrcp.f32 %v3551_v50 }
 0x3d5   : > { %v5649_v14 = vpop.eup %5648  ;;  %v3955_v13 = vadd.f32 %v3891_v37, %v3643_v21  ;;  %v3646_v10 = vmul.f32 %v5647_v45, %v7261_v42 }
 0x3d6   : > { %v5651_v12 = vpop.eup %5650  ;;  %v3960_v59 = vadd.f32 %v3912_v53, %v3648_v30  ;;  %v3556_v46 = vadd.f32 1.0, %v5649_v14 }
 0x3d7   : > { %v5653_v35 = vpop.eup %5652  ;;  %3987 = vst [vmem:[%s7127_s28 + $0xa8] sm:$0xff] %v3955_v13  ;;  %v3958_v56 = vadd.f32 %v3904_v19, %v3646_v10  ;;  %v3554_v55 = vadd.f32 1.0, %v5651_v12 }
 0x3d8   : > { %3992 = vst [vmem:[%s7127_s28 + $0xd0] sm:$0xff] %v3960_v59  ;;  %5660 = vrcp.f32 %v3556_v46  ;;  %v3557_v2 = vadd.f32 1.0, %v5653_v35 }
 0x3d9   : > { %v5655_v33 = vpop.eup %5654  ;;  %3990 = vst [vmem:[%s7127_s28 + $0xc0] sm:$0xff] %v3958_v56  ;;  %5662 = vrcp.f32 %v3554_v55 }
 0x3da   : > { %v5657_v51 = vpop.eup %5656  ;;  %v3649_v42 = vmul.f32 %v5655_v33, %v7279_v31  ;;  %5664 = vrcp.f32 %v3557_v2 }
 0x3db   : > { %v3555_v17 = vadd.f32 1.0, %v5657_v51 }
 0x3dc   : > { %v3961_v0 = vadd.f32 %v3915_v40, %v3649_v42 }
 0x3dd   : > { %5666 = vrcp.f32 %v3555_v17 }
 0x3de   : > { %v5659_v23 = vpop.eup %5658  ;;  %3993 = vst [vmem:[%s7127_s28 + $0xd8] sm:$0xff] %v3961_v0 }
 0x3df   : > { %v3647_v47 = vmul.f32 %v5659_v23, %v7314_v32 }
 0x3e1   : > { %v3959_v16 = vadd.f32 %v7301_v63, %v3647_v47 }
 0x3e2   : > { %v5661_v9 = vpop.eup %5660 }
 0x3e3   : > { %v5663_v39 = vpop.eup %5662  ;;  %3991 = vst [vmem:[%s7127_s28 + $0xc8] sm:$0xff] %v3959_v16  ;;  %v3652_v41 = vmul.f32 %v5661_v9, %v7332_v5 }
 0x3e4   : > { %v5665_v31 = vpop.eup %5664  ;;  %v3650_v52 = vmul.f32 %v5663_v39, %v7338_v26 }
 0x3e5   : > { %v3964_v38 = vadd.f32 %v7335_v1, %v3652_v41  ;;  %v3653_v25 = vmul.f32 %v5665_v31, %v7346_v7 }
 0x3e6   : > { %v3962_v36 = vadd.f32 %v7341_v11, %v3650_v52 }
 0x3e7   : > { %v5667_v57 = vpop.eup %5666  ;;  %3996 = vst [vmem:[%s7127_s28 + $0xf0] sm:$0xff] %v3964_v38  ;;  %v3965_v32 = vadd.f32 %v7350_v6, %v3653_v25 }
 0x3e8   : > { %3994 = vst [vmem:[%s7127_s28 + $0xe0] sm:$0xff] %v3962_v36  ;;  %v3651_v63 = vmul.f32 %v5667_v57, %v7355_v15 }
 0x3e9   : > { %3997 = vst [vmem:[%s7127_s28 + $0xf8] sm:$0xff] %v3965_v32 }
 0x3ea   : > { %v3963_v27 = vadd.f32 %v7358_v8, %v3651_v63 }
 0x3ec   : > { %3995 = vst [vmem:[%s7127_s28 + $0xe8] sm:$0xff] %v3963_v27 }
 0x3ed PF: > { %s20_s13 = sadd.s32 1, %s5682_s13  }
 0x3ee   : > { %p17_p4 = scmp.ge.s32.totalorder %s20_s13, 4  }
 0x3f0   :  { %19 = sbr.rel (!%p17_p4) target bundleno = 1 (0x1), region = 105 }

</bundles_post_ra>
